<compile_context>
chip_gen: v7x
topology: tpu7x:2x2x1
jax: 0.10.0
libtpu: 0.0.40
codegen_flags: <defaults>
</compile_context>

<pallas_src>
import functools
import math

import jax
import jax.numpy as jnp
from jax.experimental import pallas as pl
from jax.experimental.pallas import tpu as pltpu


# ----------------------------- kernel --------------------------------------


def _layernorm(x, w, b, eps=1e-5):
    mu = jnp.mean(x, axis=-1, keepdims=True)
    var = jnp.mean((x - mu) ** 2, axis=-1, keepdims=True)
    return (x - mu) * jax.lax.rsqrt(var + eps) * w + b


def vit_fused_kernel(
    patches_ref, wpatch_ref, bpatch_ref, pos_ref,
    wqkv_ref, bqkv_ref, wo_ref, bo_ref,
    ln1w_ref, ln1b_ref, w1_ref, b1_ref, w2_ref, b2_ref, ln2w_ref, ln2b_ref,
    whead_ref, bhead_ref, mask_ref, gsum_ref, sel_ref,
    out_ref,
    *, depth, num_heads, batch, seq_len,
):
    B, N = batch, seq_len

    # ---- patch embedding + positional embedding, all B*N tokens at once ----
    x = (
        jnp.dot(patches_ref[...], wpatch_ref[...], preferred_element_type=jnp.float32)
        + bpatch_ref[...]
        + pos_ref[...]
    )  # (B*N, D)
    D = x.shape[-1]
    hd = D // num_heads
    scale = 1.0 / math.sqrt(hd)

    # ---- transformer encoder layers (post-norm, ReLU MLP, eval-mode dropout = id) ----
    for l in range(depth):
        qkv = jnp.dot(x, wqkv_ref[l], preferred_element_type=jnp.float32) + bqkv_ref[l]  # (B*N, 3D)

        per_batch = []
        for b in range(B):
            qkv_b = qkv[b * N:(b + 1) * N, :]          # (N, 3D)
            heads = []
            for h in range(num_heads):
                q = qkv_b[:, h * hd:(h + 1) * hd]
                k = qkv_b[:, D + h * hd:D + (h + 1) * hd]
                v = qkv_b[:, 2 * D + h * hd:2 * D + (h + 1) * hd]
                s = jnp.dot(q, k.T, preferred_element_type=jnp.float32) * scale
                s = s - jnp.max(s, axis=-1, keepdims=True)
                p = jnp.exp(s)
                p = p * pl.reciprocal(jnp.sum(p, axis=-1, keepdims=True), approx=True)
                heads.append(jnp.dot(p, v, preferred_element_type=jnp.float32))
            per_batch.append(jnp.concatenate(heads, axis=-1))   # (N, D)
        attn = jnp.concatenate(per_batch, axis=0)               # (B*N, D)
        attn = jnp.dot(attn, wo_ref[l], preferred_element_type=jnp.float32) + bo_ref[l]

        x = _layernorm(x + attn, ln1w_ref[l], ln1b_ref[l])

        h1 = jnp.dot(x, w1_ref[l], preferred_element_type=jnp.float32) + b1_ref[l]
        h1 = jnp.maximum(h1, 0.0)
        ff = jnp.dot(h1, w2_ref[l], preferred_element_type=jnp.float32) + b2_ref[l]

        x = _layernorm(x + ff, ln2w_ref[l], ln2b_ref[l])

    # ---- fused fc_mu / fc_var heads, flatten-free ----
    # Want out[b, j] = sum_{n,d} x[b*N+n, d] * W[n*D+d, j]  with W = [wmu | wvar].
    # W is rearranged on the host to W_r (D, 2L*N) with column (j*N + m) = W[m*D+:, j],
    # so r = x @ W_r holds every (token m, output j) partial product for every row;
    # a block-diagonal mask keeps only the matching token (m == n), then `gsum` sums the
    # rows of each batch element and `sel` sums the N-wide column blocks per output j.
    r = jnp.dot(x, whead_ref[...], preferred_element_type=jnp.float32)      # (B*N, 2L*N)
    r = r * mask_ref[...]
    pooled = jnp.dot(gsum_ref[...], r, preferred_element_type=jnp.float32)  # (B, 2L*N)
    out_ref[...] = (
        jnp.dot(pooled, sel_ref[...], preferred_element_type=jnp.float32) + bhead_ref[...]
    )                                                                        # (B, 2L) = [mu | logvar]


# ----------------------------- wrapper --------------------------------------


def _full_spec(shape):
    nd = len(shape)
    return pl.BlockSpec(tuple(shape), lambda i, _nd=nd: (0,) * _nd)


def vit_encoder_forward(x, params, *, patch_size, num_heads):
    """x: (B, C, H, W) float32 NCHW. Returns (mu, logvar)."""
    B, C, H, W = x.shape
    p = patch_size
    Hp, Wp = H // p, W // p
    N = Hp * Wp
    D = params["proj_w"].shape[0]
    L = params["wmu"].shape[1]
    depth = len(params["layers"])
    NL = 2 * L * N

    # im2col for the stride==kernel conv: token n = i*Wp + j, features ordered (c, ph, pw)
    patches = (
        x.reshape(B, C, Hp, p, Wp, p)
        .transpose(0, 2, 4, 1, 3, 5)
        .reshape(B * N, C * p * p)
    )
    w_flat = params["proj_w"].reshape(D, C * p * p).T                     # (P, D)
    pos = jnp.broadcast_to(params["pos_embed"], (B, N, D)).reshape(B * N, D)

    # stack per-layer params along a leading "layer" axis
    stack = lambda key: jnp.stack([lp[key] for lp in params["layers"]], axis=0)
    wqkv, bqkv = stack("wqkv"), stack("bqkv")
    wo, bo = stack("wo"), stack("bo")
    ln1w, ln1b = stack("ln1w"), stack("ln1b")
    w1, b1 = stack("w1"), stack("b1")
    w2, b2 = stack("w2"), stack("b2")
    ln2w, ln2b = stack("ln2w"), stack("ln2b")

    # fused (mu | logvar) head, rearranged for the flatten-free block-diagonal contraction
    whead = jnp.concatenate([params["wmu"], params["wvar"]], axis=1)      # (N*D, 2L)
    w3 = whead.reshape(N, D, 2 * L)
    w_r = w3.transpose(1, 2, 0).reshape(D, NL)                            # (D, 2L*N), col = j*N + m
    bhead = jnp.concatenate([params["bmu"], params["bvar"]], axis=1)      # (1, 2L)

    row_tok = jnp.arange(B * N, dtype=jnp.int32) % N
    col_tok = jnp.arange(NL, dtype=jnp.int32) % N
    mask = (row_tok[:, None] == col_tok[None, :]).astype(jnp.float32)     # (B*N, 2L*N)
    gsum = (
        jnp.arange(B, dtype=jnp.int32)[:, None]
        == (jnp.arange(B * N, dtype=jnp.int32)[None, :] // N)
    ).astype(jnp.float32)                                                 # (B, B*N)
    sel = (
        (jnp.arange(NL, dtype=jnp.int32)[:, None] // N)
        == jnp.arange(2 * L, dtype=jnp.int32)[None, :]
    ).astype(jnp.float32)                                                 # (2L*N, 2L)

    args = (
        patches, w_flat, params["proj_b"], pos,
        wqkv, bqkv, wo, bo, ln1w, ln1b, w1, b1, w2, b2, ln2w, ln2b,
        w_r, bhead, mask, gsum, sel,
    )

    kernel = functools.partial(
        vit_fused_kernel, depth=depth, num_heads=num_heads, batch=B, seq_len=N
    )
    out = pl.pallas_call(
        kernel,
        out_shape=jax.ShapeDtypeStruct((B, 2 * L), jnp.float32),
        grid=(1,),
        in_specs=[_full_spec(a.shape) for a in args],
        out_specs=_full_spec((B, 2 * L)),
        compiler_params=pltpu.CompilerParams(dimension_semantics=("arbitrary",)),
    )(*args)

    return out[:, :L], out[:, L:]


# ----------------------------- parameters ----------------------------------


def init_params(key, *, img_size, patch_size, in_chans, embed_dim, depth,
                num_heads, mlp_ratio, latent_dim):
    Hp, Wp = img_size[0] // patch_size, img_size[1] // patch_size
    N = Hp * Wp
    D = embed_dim
    F = int(embed_dim * mlp_ratio)
    P = in_chans * patch_size * patch_size

    keys = jax.random.split(key, 4 + depth)

    params = {}
    # kaiming_normal_ on the flattened conv weight (fan_in = P, gain = sqrt(2))
    params["proj_w"] = (
        jax.random.normal(keys[0], (D, in_chans, patch_size, patch_size), jnp.float32)
        * math.sqrt(2.0 / P)
    )
    params["proj_b"] = jnp.zeros((1, D), jnp.float32)
    params["pos_embed"] = jax.random.normal(keys[1], (1, N, D), jnp.float32) * 0.02

    layers = []
    for l in range(depth):
        lk = jax.random.split(keys[2 + l], 4)
        layers.append(dict(
            wqkv=jax.random.normal(lk[0], (D, 3 * D), jnp.float32) * 0.02,
            bqkv=jnp.zeros((1, 3 * D), jnp.float32),
            wo=jax.random.normal(lk[1], (D, D), jnp.float32) * 0.02,
            bo=jnp.zeros((1, D), jnp.float32),
            ln1w=jnp.ones((1, D), jnp.float32),
            ln1b=jnp.zeros((1, D), jnp.float32),
            w1=jax.random.normal(lk[2], (D, F), jnp.float32) * 0.02,
            b1=jnp.zeros((1, F), jnp.float32),
            w2=jax.random.normal(lk[3], (F, D), jnp.float32) * 0.02,
            b2=jnp.zeros((1, D), jnp.float32),
            ln2w=jnp.ones((1, D), jnp.float32),
            ln2b=jnp.zeros((1, D), jnp.float32),
        ))
    params["layers"] = layers

    hk = jax.random.split(keys[2 + depth], 2)
    params["wmu"] = jax.random.normal(hk[0], (N * D, latent_dim), jnp.float32) * 0.02
    params["bmu"] = jnp.zeros((1, latent_dim), jnp.float32)
    params["wvar"] = jax.random.normal(hk[1], (N * D, latent_dim), jnp.float32) * 0.02
    params["bvar"] = jnp.zeros((1, latent_dim), jnp.float32)
    return params


# ----------------------------- pure-JAX reference ---------------------------


def reference_forward(x, params, *, patch_size, num_heads):
    B, C, H, W = x.shape
    p = patch_size
    Hp, Wp = H // p, W // p
    N = Hp * Wp
    D = params["proj_w"].shape[0]
    hd = D // num_heads

    patches = (
        x.reshape(B, C, Hp, p, Wp, p)
        .transpose(0, 2, 4, 1, 3, 5)
        .reshape(B, N, C * p * p)
    )
    t = patches @ params["proj_w"].reshape(D, -1).T + params["proj_b"] + params["pos_embed"]

    def ln(y, w, b, eps=1e-5):
        mu = jnp.mean(y, axis=-1, keepdims=True)
        var = jnp.mean((y - mu) ** 2, axis=-1, keepdims=True)
        return (y - mu) * jax.lax.rsqrt(var + eps) * w + b

    for lp in params["layers"]:
        qkv = t @ lp["wqkv"] + lp["bqkv"]
        q, k, v = qkv[..., :D], qkv[..., D:2 * D], qkv[..., 2 * D:]
        qh = q.reshape(B, N, num_heads, hd).transpose(0, 2, 1, 3)
        kh = k.reshape(B, N, num_heads, hd).transpose(0, 2, 1, 3)
        vh = v.reshape(B, N, num_heads, hd).transpose(0, 2, 1, 3)
        s = jnp.einsum("bhqd,bhkd->bhqk", qh, kh) / math.sqrt(hd)
        pmat = jax.nn.softmax(s, axis=-1)
        a = jnp.einsum("bhqk,bhkd->bhqd", pmat, vh).transpose(0, 2, 1, 3).reshape(B, N, D)
        a = a @ lp["wo"] + lp["bo"]
        t = ln(t + a, lp["ln1w"][0], lp["ln1b"][0])
        h1 = jax.nn.relu(t @ lp["w1"] + lp["b1"])
        ff = h1 @ lp["w2"] + lp["b2"]
        t = ln(t + ff, lp["ln2w"][0], lp["ln2b"][0])

    xf = t.reshape(B, -1)
    mu = xf @ params["wmu"] + params["bmu"]
    logvar = xf @ params["wvar"] + params["bvar"]
    return mu, logvar


# ----------------------------- main -----------------------------------------


if __name__ == "__main__":
    # Small config consistent with the module's constructor.
    img_size = (16, 16)
    patch_size = 4
    in_chans = 1
    embed_dim = 32
    depth = 2
    num_heads = 4
    mlp_ratio = 4.0
    latent_dim = 4
    batch = 2

    key = jax.random.PRNGKey(0)
    pkey, xkey = jax.random.split(key)

    params = init_params(
        pkey, img_size=img_size, patch_size=patch_size, in_chans=in_chans,
        embed_dim=embed_dim, depth=depth, num_heads=num_heads,
        mlp_ratio=mlp_ratio, latent_dim=latent_dim,
    )

    x = jax.random.normal(xkey, (batch, in_chans, img_size[0], img_size[1]), jnp.float32)

    fwd = jax.jit(functools.partial(
        vit_encoder_forward, patch_size=patch_size, num_heads=num_heads))
    mu, logvar = fwd(x, params)
    mu = jax.block_until_ready(mu)
    logvar = jax.block_until_ready(logvar)

    mu_ref, lv_ref = reference_forward(x, params, patch_size=patch_size, num_heads=num_heads)
    # tolerance loosened slightly vs exact math because the kernel uses
    # pl.reciprocal(approx=True) for the softmax denominator.
    assert jnp.allclose(mu, mu_ref, rtol=1e-2, atol=1e-2), "mu mismatch vs reference"
    assert jnp.allclose(logvar, lv_ref, rtol=1e-2, atol=1e-2), "logvar mismatch vs reference"

    print("KERNEL_OK")
</pallas_src>

<mosaic_0001>
module attributes {stable_mosaic.version = 11 : i64} {
  func.func @vit_fused_kernel(%arg0: i32, %arg1: memref<32x16xf32, #tpu.memory_space<vmem>>, %arg2: memref<16x32xf32, #tpu.memory_space<vmem>>, %arg3: memref<1x32xf32, #tpu.memory_space<vmem>>, %arg4: memref<32x32xf32, #tpu.memory_space<vmem>>, %arg5: memref<2x32x96xf32, #tpu.memory_space<vmem>>, %arg6: memref<2x1x96xf32, #tpu.memory_space<vmem>>, %arg7: memref<2x32x32xf32, #tpu.memory_space<vmem>>, %arg8: memref<2x1x32xf32, #tpu.memory_space<vmem>>, %arg9: memref<2x1x32xf32, #tpu.memory_space<vmem>>, %arg10: memref<2x1x32xf32, #tpu.memory_space<vmem>>, %arg11: memref<2x32x128xf32, #tpu.memory_space<vmem>>, %arg12: memref<2x1x128xf32, #tpu.memory_space<vmem>>, %arg13: memref<2x128x32xf32, #tpu.memory_space<vmem>>, %arg14: memref<2x1x32xf32, #tpu.memory_space<vmem>>, %arg15: memref<2x1x32xf32, #tpu.memory_space<vmem>>, %arg16: memref<2x1x32xf32, #tpu.memory_space<vmem>>, %arg17: memref<32x128xf32, #tpu.memory_space<vmem>>, %arg18: memref<1x8xf32, #tpu.memory_space<vmem>>, %arg19: memref<32x128xf32, #tpu.memory_space<vmem>>, %arg20: memref<2x32xf32, #tpu.memory_space<vmem>>, %arg21: memref<128x8xf32, #tpu.memory_space<vmem>>, %arg22: memref<2x8xf32, #tpu.memory_space<vmem>>) attributes {dimension_semantics = [#tpu.dimension_semantics<arbitrary>], iteration_bounds = array<i64: 1>, scalar_prefetch = 0 : i64, scratch_operands = 0 : i64, tpu.core_type = #tpu.core_type<tc>, window_params = [{pipeline_mode = #tpu.pipeline_mode<synchronous>, transform_indices = @transform_0, window_bounds = array<i64: 32, 16>}, {pipeline_mode = #tpu.pipeline_mode<synchronous>, transform_indices = @transform_1, window_bounds = array<i64: 16, 32>}, {pipeline_mode = #tpu.pipeline_mode<synchronous>, transform_indices = @transform_2, window_bounds = array<i64: 1, 32>}, {pipeline_mode = #tpu.pipeline_mode<synchronous>, transform_indices = @transform_3, window_bounds = array<i64: 32, 32>}, {pipeline_mode = #tpu.pipeline_mode<synchronous>, transform_indices = @transform_4, window_bounds = array<i64: 2, 32, 96>}, {pipeline_mode = #tpu.pipeline_mode<synchronous>, transform_indices = @transform_5, window_bounds = array<i64: 2, 1, 96>}, {pipeline_mode = #tpu.pipeline_mode<synchronous>, transform_indices = @transform_6, window_bounds = array<i64: 2, 32, 32>}, {pipeline_mode = #tpu.pipeline_mode<synchronous>, transform_indices = @transform_7, window_bounds = array<i64: 2, 1, 32>}, {pipeline_mode = #tpu.pipeline_mode<synchronous>, transform_indices = @transform_8, window_bounds = array<i64: 2, 1, 32>}, {pipeline_mode = #tpu.pipeline_mode<synchronous>, transform_indices = @transform_9, window_bounds = array<i64: 2, 1, 32>}, {pipeline_mode = #tpu.pipeline_mode<synchronous>, transform_indices = @transform_10, window_bounds = array<i64: 2, 32, 128>}, {pipeline_mode = #tpu.pipeline_mode<synchronous>, transform_indices = @transform_11, window_bounds = array<i64: 2, 1, 128>}, {pipeline_mode = #tpu.pipeline_mode<synchronous>, transform_indices = @transform_12, window_bounds = array<i64: 2, 128, 32>}, {pipeline_mode = #tpu.pipeline_mode<synchronous>, transform_indices = @transform_13, window_bounds = array<i64: 2, 1, 32>}, {pipeline_mode = #tpu.pipeline_mode<synchronous>, transform_indices = @transform_14, window_bounds = array<i64: 2, 1, 32>}, {pipeline_mode = #tpu.pipeline_mode<synchronous>, transform_indices = @transform_15, window_bounds = array<i64: 2, 1, 32>}, {pipeline_mode = #tpu.pipeline_mode<synchronous>, transform_indices = @transform_16, window_bounds = array<i64: 32, 128>}, {pipeline_mode = #tpu.pipeline_mode<synchronous>, transform_indices = @transform_17, window_bounds = array<i64: 1, 8>}, {pipeline_mode = #tpu.pipeline_mode<synchronous>, transform_indices = @transform_18, window_bounds = array<i64: 32, 128>}, {pipeline_mode = #tpu.pipeline_mode<synchronous>, transform_indices = @transform_19, window_bounds = array<i64: 2, 32>}, {pipeline_mode = #tpu.pipeline_mode<synchronous>, transform_indices = @transform_20, window_bounds = array<i64: 128, 8>}, {pipeline_mode = #tpu.pipeline_mode<synchronous>, transform_indices = @transform_21, window_bounds = array<i64: 2, 8>}]} {
    %c0 = arith.constant 0 : index
    %c0_0 = arith.constant 0 : index
    %0 = vector.load %arg1[%c0, %c0_0] : memref<32x16xf32, #tpu.memory_space<vmem>>, vector<32x16xf32>
    %c0_1 = arith.constant 0 : index
    %c0_2 = arith.constant 0 : index
    %1 = vector.load %arg2[%c0_1, %c0_2] : memref<16x32xf32, #tpu.memory_space<vmem>>, vector<16x32xf32>
    %cst = arith.constant dense<0.000000e+00> : vector<32x32xf32>
    %2 = tpu.matmul %0, %1, %cst {dimension_numbers = #tpu.dot_dimension_numbers<[1], [0], [0], [1], [0, 0, 1, 1], [], []>} : vector<32x16xf32>, vector<16x32xf32>, vector<32x32xf32> -> vector<32x32xf32>
    %c0_3 = arith.constant 0 : index
    %c0_4 = arith.constant 0 : index
    %3 = vector.load %arg3[%c0_3, %c0_4] : memref<1x32xf32, #tpu.memory_space<vmem>>, vector<1x32xf32>
    %4 = vector.broadcast %3 : vector<1x32xf32> to vector<32x32xf32>
    %5 = arith.addf %2, %4 : vector<32x32xf32>
    %c0_5 = arith.constant 0 : index
    %c0_6 = arith.constant 0 : index
    %6 = vector.load %arg4[%c0_5, %c0_6] : memref<32x32xf32, #tpu.memory_space<vmem>>, vector<32x32xf32>
    %7 = arith.addf %5, %6 : vector<32x32xf32>
    %c0_7 = arith.constant 0 : index
    %c0_8 = arith.constant 0 : index
    %c0_9 = arith.constant 0 : index
    %8 = vector.load %arg5[%c0_7, %c0_8, %c0_9] : memref<2x32x96xf32, #tpu.memory_space<vmem>>, vector<1x32x96xf32>
    %9 = vector.shape_cast %8 : vector<1x32x96xf32> to vector<32x96xf32>
    %cst_10 = arith.constant dense<0.000000e+00> : vector<32x96xf32>
    %10 = tpu.matmul %7, %9, %cst_10 {dimension_numbers = #tpu.dot_dimension_numbers<[1], [0], [0], [1], [0, 0, 1, 1], [], []>} : vector<32x32xf32>, vector<32x96xf32>, vector<32x96xf32> -> vector<32x96xf32>
    %c0_11 = arith.constant 0 : index
    %c0_12 = arith.constant 0 : index
    %c0_13 = arith.constant 0 : index
    %11 = vector.load %arg6[%c0_11, %c0_12, %c0_13] : memref<2x1x96xf32, #tpu.memory_space<vmem>>, vector<1x1x96xf32>
    %12 = vector.shape_cast %11 : vector<1x1x96xf32> to vector<1x96xf32>
    %13 = vector.broadcast %12 : vector<1x96xf32> to vector<32x96xf32>
    %14 = arith.addf %10, %13 : vector<32x96xf32>
    %15 = vector.extract_strided_slice %14 {offsets = [0, 0], sizes = [16, 96], strides = [1, 1]} : vector<32x96xf32> to vector<16x96xf32>
    %16 = vector.extract_strided_slice %15 {offsets = [0, 0], sizes = [16, 8], strides = [1, 1]} : vector<16x96xf32> to vector<16x8xf32>
    %17 = vector.extract_strided_slice %15 {offsets = [0, 32], sizes = [16, 8], strides = [1, 1]} : vector<16x96xf32> to vector<16x8xf32>
    %18 = vector.extract_strided_slice %15 {offsets = [0, 64], sizes = [16, 8], strides = [1, 1]} : vector<16x96xf32> to vector<16x8xf32>
    %19 = tpu.transpose %17, [1, 0] : vector<16x8xf32> -> vector<8x16xf32>
    %cst_14 = arith.constant dense<0.000000e+00> : vector<16x16xf32>
    %20 = tpu.matmul %16, %19, %cst_14 {dimension_numbers = #tpu.dot_dimension_numbers<[1], [0], [0], [1], [0, 0, 1, 1], [], []>} : vector<16x8xf32>, vector<8x16xf32>, vector<16x16xf32> -> vector<16x16xf32>
    %cst_15 = arith.constant 0.353553385 : f32
    %21 = vector.broadcast %cst_15 : f32 to vector<16x16xf32>
    %22 = arith.mulf %20, %21 : vector<16x16xf32>
    %cst_16 = arith.constant dense<0xFF800000> : vector<16xf32>
    %23 = vector.multi_reduction <maximumf>, %22, %cst_16 [1] : vector<16x16xf32> to vector<16xf32>
    %24 = vector.shape_cast %23 : vector<16xf32> to vector<16x1xf32>
    %25 = vector.broadcast %24 : vector<16x1xf32> to vector<16x16xf32>
    %26 = arith.subf %22, %25 : vector<16x16xf32>
    %27 = math.exp %26 : vector<16x16xf32>
    %cst_17 = arith.constant dense<0.000000e+00> : vector<16xf32>
    %28 = vector.multi_reduction <add>, %27, %cst_17 [1] : vector<16x16xf32> to vector<16xf32>
    %29 = vector.shape_cast %28 : vector<16xf32> to vector<16x1xf32>
    %30 = tpu.reciprocal %29 {approx = true} : vector<16x1xf32> -> vector<16x1xf32>
    %31 = vector.broadcast %30 : vector<16x1xf32> to vector<16x16xf32>
    %32 = arith.mulf %27, %31 : vector<16x16xf32>
    %cst_18 = arith.constant dense<0.000000e+00> : vector<16x8xf32>
    %33 = tpu.matmul %32, %18, %cst_18 {dimension_numbers = #tpu.dot_dimension_numbers<[1], [0], [0], [1], [0, 0, 1, 1], [], []>} : vector<16x16xf32>, vector<16x8xf32>, vector<16x8xf32> -> vector<16x8xf32>
    %34 = vector.extract_strided_slice %15 {offsets = [0, 8], sizes = [16, 8], strides = [1, 1]} : vector<16x96xf32> to vector<16x8xf32>
    %35 = vector.extract_strided_slice %15 {offsets = [0, 40], sizes = [16, 8], strides = [1, 1]} : vector<16x96xf32> to vector<16x8xf32>
    %36 = vector.extract_strided_slice %15 {offsets = [0, 72], sizes = [16, 8], strides = [1, 1]} : vector<16x96xf32> to vector<16x8xf32>
    %37 = tpu.transpose %35, [1, 0] : vector<16x8xf32> -> vector<8x16xf32>
    %cst_19 = arith.constant dense<0.000000e+00> : vector<16x16xf32>
    %38 = tpu.matmul %34, %37, %cst_19 {dimension_numbers = #tpu.dot_dimension_numbers<[1], [0], [0], [1], [0, 0, 1, 1], [], []>} : vector<16x8xf32>, vector<8x16xf32>, vector<16x16xf32> -> vector<16x16xf32>
    %cst_20 = arith.constant 0.353553385 : f32
    %39 = vector.broadcast %cst_20 : f32 to vector<16x16xf32>
    %40 = arith.mulf %38, %39 : vector<16x16xf32>
    %cst_21 = arith.constant dense<0xFF800000> : vector<16xf32>
    %41 = vector.multi_reduction <maximumf>, %40, %cst_21 [1] : vector<16x16xf32> to vector<16xf32>
    %42 = vector.shape_cast %41 : vector<16xf32> to vector<16x1xf32>
    %43 = vector.broadcast %42 : vector<16x1xf32> to vector<16x16xf32>
    %44 = arith.subf %40, %43 : vector<16x16xf32>
    %45 = math.exp %44 : vector<16x16xf32>
    %cst_22 = arith.constant dense<0.000000e+00> : vector<16xf32>
    %46 = vector.multi_reduction <add>, %45, %cst_22 [1] : vector<16x16xf32> to vector<16xf32>
    %47 = vector.shape_cast %46 : vector<16xf32> to vector<16x1xf32>
    %48 = tpu.reciprocal %47 {approx = true} : vector<16x1xf32> -> vector<16x1xf32>
    %49 = vector.broadcast %48 : vector<16x1xf32> to vector<16x16xf32>
    %50 = arith.mulf %45, %49 : vector<16x16xf32>
    %cst_23 = arith.constant dense<0.000000e+00> : vector<16x8xf32>
    %51 = tpu.matmul %50, %36, %cst_23 {dimension_numbers = #tpu.dot_dimension_numbers<[1], [0], [0], [1], [0, 0, 1, 1], [], []>} : vector<16x16xf32>, vector<16x8xf32>, vector<16x8xf32> -> vector<16x8xf32>
    %52 = vector.extract_strided_slice %15 {offsets = [0, 16], sizes = [16, 8], strides = [1, 1]} : vector<16x96xf32> to vector<16x8xf32>
    %53 = vector.extract_strided_slice %15 {offsets = [0, 48], sizes = [16, 8], strides = [1, 1]} : vector<16x96xf32> to vector<16x8xf32>
    %54 = vector.extract_strided_slice %15 {offsets = [0, 80], sizes = [16, 8], strides = [1, 1]} : vector<16x96xf32> to vector<16x8xf32>
    %55 = tpu.transpose %53, [1, 0] : vector<16x8xf32> -> vector<8x16xf32>
    %cst_24 = arith.constant dense<0.000000e+00> : vector<16x16xf32>
    %56 = tpu.matmul %52, %55, %cst_24 {dimension_numbers = #tpu.dot_dimension_numbers<[1], [0], [0], [1], [0, 0, 1, 1], [], []>} : vector<16x8xf32>, vector<8x16xf32>, vector<16x16xf32> -> vector<16x16xf32>
    %cst_25 = arith.constant 0.353553385 : f32
    %57 = vector.broadcast %cst_25 : f32 to vector<16x16xf32>
    %58 = arith.mulf %56, %57 : vector<16x16xf32>
    %cst_26 = arith.constant dense<0xFF800000> : vector<16xf32>
    %59 = vector.multi_reduction <maximumf>, %58, %cst_26 [1] : vector<16x16xf32> to vector<16xf32>
    %60 = vector.shape_cast %59 : vector<16xf32> to vector<16x1xf32>
    %61 = vector.broadcast %60 : vector<16x1xf32> to vector<16x16xf32>
    %62 = arith.subf %58, %61 : vector<16x16xf32>
    %63 = math.exp %62 : vector<16x16xf32>
    %cst_27 = arith.constant dense<0.000000e+00> : vector<16xf32>
    %64 = vector.multi_reduction <add>, %63, %cst_27 [1] : vector<16x16xf32> to vector<16xf32>
    %65 = vector.shape_cast %64 : vector<16xf32> to vector<16x1xf32>
    %66 = tpu.reciprocal %65 {approx = true} : vector<16x1xf32> -> vector<16x1xf32>
    %67 = vector.broadcast %66 : vector<16x1xf32> to vector<16x16xf32>
    %68 = arith.mulf %63, %67 : vector<16x16xf32>
    %cst_28 = arith.constant dense<0.000000e+00> : vector<16x8xf32>
    %69 = tpu.matmul %68, %54, %cst_28 {dimension_numbers = #tpu.dot_dimension_numbers<[1], [0], [0], [1], [0, 0, 1, 1], [], []>} : vector<16x16xf32>, vector<16x8xf32>, vector<16x8xf32> -> vector<16x8xf32>
    %70 = vector.extract_strided_slice %15 {offsets = [0, 24], sizes = [16, 8], strides = [1, 1]} : vector<16x96xf32> to vector<16x8xf32>
    %71 = vector.extract_strided_slice %15 {offsets = [0, 56], sizes = [16, 8], strides = [1, 1]} : vector<16x96xf32> to vector<16x8xf32>
    %72 = vector.extract_strided_slice %15 {offsets = [0, 88], sizes = [16, 8], strides = [1, 1]} : vector<16x96xf32> to vector<16x8xf32>
    %73 = tpu.transpose %71, [1, 0] : vector<16x8xf32> -> vector<8x16xf32>
    %cst_29 = arith.constant dense<0.000000e+00> : vector<16x16xf32>
    %74 = tpu.matmul %70, %73, %cst_29 {dimension_numbers = #tpu.dot_dimension_numbers<[1], [0], [0], [1], [0, 0, 1, 1], [], []>} : vector<16x8xf32>, vector<8x16xf32>, vector<16x16xf32> -> vector<16x16xf32>
    %cst_30 = arith.constant 0.353553385 : f32
    %75 = vector.broadcast %cst_30 : f32 to vector<16x16xf32>
    %76 = arith.mulf %74, %75 : vector<16x16xf32>
    %cst_31 = arith.constant dense<0xFF800000> : vector<16xf32>
    %77 = vector.multi_reduction <maximumf>, %76, %cst_31 [1] : vector<16x16xf32> to vector<16xf32>
    %78 = vector.shape_cast %77 : vector<16xf32> to vector<16x1xf32>
    %79 = vector.broadcast %78 : vector<16x1xf32> to vector<16x16xf32>
    %80 = arith.subf %76, %79 : vector<16x16xf32>
    %81 = math.exp %80 : vector<16x16xf32>
    %cst_32 = arith.constant dense<0.000000e+00> : vector<16xf32>
    %82 = vector.multi_reduction <add>, %81, %cst_32 [1] : vector<16x16xf32> to vector<16xf32>
    %83 = vector.shape_cast %82 : vector<16xf32> to vector<16x1xf32>
    %84 = tpu.reciprocal %83 {approx = true} : vector<16x1xf32> -> vector<16x1xf32>
    %85 = vector.broadcast %84 : vector<16x1xf32> to vector<16x16xf32>
    %86 = arith.mulf %81, %85 : vector<16x16xf32>
    %cst_33 = arith.constant dense<0.000000e+00> : vector<16x8xf32>
    %87 = tpu.matmul %86, %72, %cst_33 {dimension_numbers = #tpu.dot_dimension_numbers<[1], [0], [0], [1], [0, 0, 1, 1], [], []>} : vector<16x16xf32>, vector<16x8xf32>, vector<16x8xf32> -> vector<16x8xf32>
    %88 = tpu.concatenate %33, %51, %69, %87 in 1 : vector<16x8xf32>, vector<16x8xf32>, vector<16x8xf32>, vector<16x8xf32> -> vector<16x32xf32>
    %89 = vector.extract_strided_slice %14 {offsets = [16, 0], sizes = [16, 96], strides = [1, 1]} : vector<32x96xf32> to vector<16x96xf32>
    %90 = vector.extract_strided_slice %89 {offsets = [0, 0], sizes = [16, 8], strides = [1, 1]} : vector<16x96xf32> to vector<16x8xf32>
    %91 = vector.extract_strided_slice %89 {offsets = [0, 32], sizes = [16, 8], strides = [1, 1]} : vector<16x96xf32> to vector<16x8xf32>
    %92 = vector.extract_strided_slice %89 {offsets = [0, 64], sizes = [16, 8], strides = [1, 1]} : vector<16x96xf32> to vector<16x8xf32>
    %93 = tpu.transpose %91, [1, 0] : vector<16x8xf32> -> vector<8x16xf32>
    %cst_34 = arith.constant dense<0.000000e+00> : vector<16x16xf32>
    %94 = tpu.matmul %90, %93, %cst_34 {dimension_numbers = #tpu.dot_dimension_numbers<[1], [0], [0], [1], [0, 0, 1, 1], [], []>} : vector<16x8xf32>, vector<8x16xf32>, vector<16x16xf32> -> vector<16x16xf32>
    %cst_35 = arith.constant 0.353553385 : f32
    %95 = vector.broadcast %cst_35 : f32 to vector<16x16xf32>
    %96 = arith.mulf %94, %95 : vector<16x16xf32>
    %cst_36 = arith.constant dense<0xFF800000> : vector<16xf32>
    %97 = vector.multi_reduction <maximumf>, %96, %cst_36 [1] : vector<16x16xf32> to vector<16xf32>
    %98 = vector.shape_cast %97 : vector<16xf32> to vector<16x1xf32>
    %99 = vector.broadcast %98 : vector<16x1xf32> to vector<16x16xf32>
    %100 = arith.subf %96, %99 : vector<16x16xf32>
    %101 = math.exp %100 : vector<16x16xf32>
    %cst_37 = arith.constant dense<0.000000e+00> : vector<16xf32>
    %102 = vector.multi_reduction <add>, %101, %cst_37 [1] : vector<16x16xf32> to vector<16xf32>
    %103 = vector.shape_cast %102 : vector<16xf32> to vector<16x1xf32>
    %104 = tpu.reciprocal %103 {approx = true} : vector<16x1xf32> -> vector<16x1xf32>
    %105 = vector.broadcast %104 : vector<16x1xf32> to vector<16x16xf32>
    %106 = arith.mulf %101, %105 : vector<16x16xf32>
    %cst_38 = arith.constant dense<0.000000e+00> : vector<16x8xf32>
    %107 = tpu.matmul %106, %92, %cst_38 {dimension_numbers = #tpu.dot_dimension_numbers<[1], [0], [0], [1], [0, 0, 1, 1], [], []>} : vector<16x16xf32>, vector<16x8xf32>, vector<16x8xf32> -> vector<16x8xf32>
    %108 = vector.extract_strided_slice %89 {offsets = [0, 8], sizes = [16, 8], strides = [1, 1]} : vector<16x96xf32> to vector<16x8xf32>
    %109 = vector.extract_strided_slice %89 {offsets = [0, 40], sizes = [16, 8], strides = [1, 1]} : vector<16x96xf32> to vector<16x8xf32>
    %110 = vector.extract_strided_slice %89 {offsets = [0, 72], sizes = [16, 8], strides = [1, 1]} : vector<16x96xf32> to vector<16x8xf32>
    %111 = tpu.transpose %109, [1, 0] : vector<16x8xf32> -> vector<8x16xf32>
    %cst_39 = arith.constant dense<0.000000e+00> : vector<16x16xf32>
    %112 = tpu.matmul %108, %111, %cst_39 {dimension_numbers = #tpu.dot_dimension_numbers<[1], [0], [0], [1], [0, 0, 1, 1], [], []>} : vector<16x8xf32>, vector<8x16xf32>, vector<16x16xf32> -> vector<16x16xf32>
    %cst_40 = arith.constant 0.353553385 : f32
    %113 = vector.broadcast %cst_40 : f32 to vector<16x16xf32>
    %114 = arith.mulf %112, %113 : vector<16x16xf32>
    %cst_41 = arith.constant dense<0xFF800000> : vector<16xf32>
    %115 = vector.multi_reduction <maximumf>, %114, %cst_41 [1] : vector<16x16xf32> to vector<16xf32>
    %116 = vector.shape_cast %115 : vector<16xf32> to vector<16x1xf32>
    %117 = vector.broadcast %116 : vector<16x1xf32> to vector<16x16xf32>
    %118 = arith.subf %114, %117 : vector<16x16xf32>
    %119 = math.exp %118 : vector<16x16xf32>
    %cst_42 = arith.constant dense<0.000000e+00> : vector<16xf32>
    %120 = vector.multi_reduction <add>, %119, %cst_42 [1] : vector<16x16xf32> to vector<16xf32>
    %121 = vector.shape_cast %120 : vector<16xf32> to vector<16x1xf32>
    %122 = tpu.reciprocal %121 {approx = true} : vector<16x1xf32> -> vector<16x1xf32>
    %123 = vector.broadcast %122 : vector<16x1xf32> to vector<16x16xf32>
    %124 = arith.mulf %119, %123 : vector<16x16xf32>
    %cst_43 = arith.constant dense<0.000000e+00> : vector<16x8xf32>
    %125 = tpu.matmul %124, %110, %cst_43 {dimension_numbers = #tpu.dot_dimension_numbers<[1], [0], [0], [1], [0, 0, 1, 1], [], []>} : vector<16x16xf32>, vector<16x8xf32>, vector<16x8xf32> -> vector<16x8xf32>
    %126 = vector.extract_strided_slice %89 {offsets = [0, 16], sizes = [16, 8], strides = [1, 1]} : vector<16x96xf32> to vector<16x8xf32>
    %127 = vector.extract_strided_slice %89 {offsets = [0, 48], sizes = [16, 8], strides = [1, 1]} : vector<16x96xf32> to vector<16x8xf32>
    %128 = vector.extract_strided_slice %89 {offsets = [0, 80], sizes = [16, 8], strides = [1, 1]} : vector<16x96xf32> to vector<16x8xf32>
    %129 = tpu.transpose %127, [1, 0] : vector<16x8xf32> -> vector<8x16xf32>
    %cst_44 = arith.constant dense<0.000000e+00> : vector<16x16xf32>
    %130 = tpu.matmul %126, %129, %cst_44 {dimension_numbers = #tpu.dot_dimension_numbers<[1], [0], [0], [1], [0, 0, 1, 1], [], []>} : vector<16x8xf32>, vector<8x16xf32>, vector<16x16xf32> -> vector<16x16xf32>
    %cst_45 = arith.constant 0.353553385 : f32
    %131 = vector.broadcast %cst_45 : f32 to vector<16x16xf32>
    %132 = arith.mulf %130, %131 : vector<16x16xf32>
    %cst_46 = arith.constant dense<0xFF800000> : vector<16xf32>
    %133 = vector.multi_reduction <maximumf>, %132, %cst_46 [1] : vector<16x16xf32> to vector<16xf32>
    %134 = vector.shape_cast %133 : vector<16xf32> to vector<16x1xf32>
    %135 = vector.broadcast %134 : vector<16x1xf32> to vector<16x16xf32>
    %136 = arith.subf %132, %135 : vector<16x16xf32>
    %137 = math.exp %136 : vector<16x16xf32>
    %cst_47 = arith.constant dense<0.000000e+00> : vector<16xf32>
    %138 = vector.multi_reduction <add>, %137, %cst_47 [1] : vector<16x16xf32> to vector<16xf32>
    %139 = vector.shape_cast %138 : vector<16xf32> to vector<16x1xf32>
    %140 = tpu.reciprocal %139 {approx = true} : vector<16x1xf32> -> vector<16x1xf32>
    %141 = vector.broadcast %140 : vector<16x1xf32> to vector<16x16xf32>
    %142 = arith.mulf %137, %141 : vector<16x16xf32>
    %cst_48 = arith.constant dense<0.000000e+00> : vector<16x8xf32>
    %143 = tpu.matmul %142, %128, %cst_48 {dimension_numbers = #tpu.dot_dimension_numbers<[1], [0], [0], [1], [0, 0, 1, 1], [], []>} : vector<16x16xf32>, vector<16x8xf32>, vector<16x8xf32> -> vector<16x8xf32>
    %144 = vector.extract_strided_slice %89 {offsets = [0, 24], sizes = [16, 8], strides = [1, 1]} : vector<16x96xf32> to vector<16x8xf32>
    %145 = vector.extract_strided_slice %89 {offsets = [0, 56], sizes = [16, 8], strides = [1, 1]} : vector<16x96xf32> to vector<16x8xf32>
    %146 = vector.extract_strided_slice %89 {offsets = [0, 88], sizes = [16, 8], strides = [1, 1]} : vector<16x96xf32> to vector<16x8xf32>
    %147 = tpu.transpose %145, [1, 0] : vector<16x8xf32> -> vector<8x16xf32>
    %cst_49 = arith.constant dense<0.000000e+00> : vector<16x16xf32>
    %148 = tpu.matmul %144, %147, %cst_49 {dimension_numbers = #tpu.dot_dimension_numbers<[1], [0], [0], [1], [0, 0, 1, 1], [], []>} : vector<16x8xf32>, vector<8x16xf32>, vector<16x16xf32> -> vector<16x16xf32>
    %cst_50 = arith.constant 0.353553385 : f32
    %149 = vector.broadcast %cst_50 : f32 to vector<16x16xf32>
    %150 = arith.mulf %148, %149 : vector<16x16xf32>
    %cst_51 = arith.constant dense<0xFF800000> : vector<16xf32>
    %151 = vector.multi_reduction <maximumf>, %150, %cst_51 [1] : vector<16x16xf32> to vector<16xf32>
    %152 = vector.shape_cast %151 : vector<16xf32> to vector<16x1xf32>
    %153 = vector.broadcast %152 : vector<16x1xf32> to vector<16x16xf32>
    %154 = arith.subf %150, %153 : vector<16x16xf32>
    %155 = math.exp %154 : vector<16x16xf32>
    %cst_52 = arith.constant dense<0.000000e+00> : vector<16xf32>
    %156 = vector.multi_reduction <add>, %155, %cst_52 [1] : vector<16x16xf32> to vector<16xf32>
    %157 = vector.shape_cast %156 : vector<16xf32> to vector<16x1xf32>
    %158 = tpu.reciprocal %157 {approx = true} : vector<16x1xf32> -> vector<16x1xf32>
    %159 = vector.broadcast %158 : vector<16x1xf32> to vector<16x16xf32>
    %160 = arith.mulf %155, %159 : vector<16x16xf32>
    %cst_53 = arith.constant dense<0.000000e+00> : vector<16x8xf32>
    %161 = tpu.matmul %160, %146, %cst_53 {dimension_numbers = #tpu.dot_dimension_numbers<[1], [0], [0], [1], [0, 0, 1, 1], [], []>} : vector<16x16xf32>, vector<16x8xf32>, vector<16x8xf32> -> vector<16x8xf32>
    %162 = tpu.concatenate %107, %125, %143, %161 in 1 : vector<16x8xf32>, vector<16x8xf32>, vector<16x8xf32>, vector<16x8xf32> -> vector<16x32xf32>
    %163 = tpu.concatenate %88, %162 in 0 : vector<16x32xf32>, vector<16x32xf32> -> vector<32x32xf32>
    %c0_54 = arith.constant 0 : index
    %c0_55 = arith.constant 0 : index
    %c0_56 = arith.constant 0 : index
    %164 = vector.load %arg7[%c0_54, %c0_55, %c0_56] : memref<2x32x32xf32, #tpu.memory_space<vmem>>, vector<1x32x32xf32>
    %165 = vector.shape_cast %164 : vector<1x32x32xf32> to vector<32x32xf32>
    %cst_57 = arith.constant dense<0.000000e+00> : vector<32x32xf32>
    %166 = tpu.matmul %163, %165, %cst_57 {dimension_numbers = #tpu.dot_dimension_numbers<[1], [0], [0], [1], [0, 0, 1, 1], [], []>} : vector<32x32xf32>, vector<32x32xf32>, vector<32x32xf32> -> vector<32x32xf32>
    %c0_58 = arith.constant 0 : index
    %c0_59 = arith.constant 0 : index
    %c0_60 = arith.constant 0 : index
    %167 = vector.load %arg8[%c0_58, %c0_59, %c0_60] : memref<2x1x32xf32, #tpu.memory_space<vmem>>, vector<1x1x32xf32>
    %168 = vector.shape_cast %167 : vector<1x1x32xf32> to vector<1x32xf32>
    %169 = vector.broadcast %168 : vector<1x32xf32> to vector<32x32xf32>
    %170 = arith.addf %166, %169 : vector<32x32xf32>
    %171 = arith.addf %7, %170 : vector<32x32xf32>
    %c0_61 = arith.constant 0 : index
    %c0_62 = arith.constant 0 : index
    %c0_63 = arith.constant 0 : index
    %172 = vector.load %arg9[%c0_61, %c0_62, %c0_63] : memref<2x1x32xf32, #tpu.memory_space<vmem>>, vector<1x1x32xf32>
    %173 = vector.shape_cast %172 : vector<1x1x32xf32> to vector<1x32xf32>
    %c0_64 = arith.constant 0 : index
    %c0_65 = arith.constant 0 : index
    %c0_66 = arith.constant 0 : index
    %174 = vector.load %arg10[%c0_64, %c0_65, %c0_66] : memref<2x1x32xf32, #tpu.memory_space<vmem>>, vector<1x1x32xf32>
    %175 = vector.shape_cast %174 : vector<1x1x32xf32> to vector<1x32xf32>
    %cst_67 = arith.constant dense<0.000000e+00> : vector<32xf32>
    %176 = vector.multi_reduction <add>, %171, %cst_67 [1] : vector<32x32xf32> to vector<32xf32>
    %177 = vector.shape_cast %176 : vector<32xf32> to vector<32x1xf32>
    %cst_68 = arith.constant 3.200000e+01 : f32
    %178 = vector.broadcast %cst_68 : f32 to vector<32x1xf32>
    %179 = arith.divf %177, %178 : vector<32x1xf32>
    %180 = vector.broadcast %179 : vector<32x1xf32> to vector<32x32xf32>
    %181 = arith.subf %171, %180 : vector<32x32xf32>
    %182 = arith.mulf %181, %181 : vector<32x32xf32>
    %cst_69 = arith.constant dense<0.000000e+00> : vector<32xf32>
    %183 = vector.multi_reduction <add>, %182, %cst_69 [1] : vector<32x32xf32> to vector<32xf32>
    %184 = vector.shape_cast %183 : vector<32xf32> to vector<32x1xf32>
    %cst_70 = arith.constant 3.200000e+01 : f32
    %185 = vector.broadcast %cst_70 : f32 to vector<32x1xf32>
    %186 = arith.divf %184, %185 : vector<32x1xf32>
    %187 = vector.broadcast %179 : vector<32x1xf32> to vector<32x32xf32>
    %188 = arith.subf %171, %187 : vector<32x32xf32>
    %cst_71 = arith.constant 9.99999974E-6 : f32
    %189 = vector.broadcast %cst_71 : f32 to vector<32x1xf32>
    %190 = arith.addf %186, %189 : vector<32x1xf32>
    %191 = math.rsqrt %190 : vector<32x1xf32>
    %192 = vector.broadcast %191 : vector<32x1xf32> to vector<32x32xf32>
    %193 = arith.mulf %188, %192 : vector<32x32xf32>
    %194 = vector.broadcast %173 : vector<1x32xf32> to vector<32x32xf32>
    %195 = arith.mulf %193, %194 : vector<32x32xf32>
    %196 = vector.broadcast %175 : vector<1x32xf32> to vector<32x32xf32>
    %197 = arith.addf %195, %196 : vector<32x32xf32>
    %c0_72 = arith.constant 0 : index
    %c0_73 = arith.constant 0 : index
    %c0_74 = arith.constant 0 : index
    %198 = vector.load %arg11[%c0_72, %c0_73, %c0_74] : memref<2x32x128xf32, #tpu.memory_space<vmem>>, vector<1x32x128xf32>
    %199 = vector.shape_cast %198 : vector<1x32x128xf32> to vector<32x128xf32>
    %cst_75 = arith.constant dense<0.000000e+00> : vector<32x128xf32>
    %200 = tpu.matmul %197, %199, %cst_75 {dimension_numbers = #tpu.dot_dimension_numbers<[1], [0], [0], [1], [0, 0, 1, 1], [], []>} : vector<32x32xf32>, vector<32x128xf32>, vector<32x128xf32> -> vector<32x128xf32>
    %c0_76 = arith.constant 0 : index
    %c0_77 = arith.constant 0 : index
    %c0_78 = arith.constant 0 : index
    %201 = vector.load %arg12[%c0_76, %c0_77, %c0_78] : memref<2x1x128xf32, #tpu.memory_space<vmem>>, vector<1x1x128xf32>
    %202 = vector.shape_cast %201 : vector<1x1x128xf32> to vector<1x128xf32>
    %203 = vector.broadcast %202 : vector<1x128xf32> to vector<32x128xf32>
    %204 = arith.addf %200, %203 : vector<32x128xf32>
    %cst_79 = arith.constant 0.000000e+00 : f32
    %205 = vector.broadcast %cst_79 : f32 to vector<32x128xf32>
    %206 = arith.maximumf %204, %205 : vector<32x128xf32>
    %c0_80 = arith.constant 0 : index
    %c0_81 = arith.constant 0 : index
    %c0_82 = arith.constant 0 : index
    %207 = vector.load %arg13[%c0_80, %c0_81, %c0_82] : memref<2x128x32xf32, #tpu.memory_space<vmem>>, vector<1x128x32xf32>
    %208 = vector.shape_cast %207 : vector<1x128x32xf32> to vector<128x32xf32>
    %cst_83 = arith.constant dense<0.000000e+00> : vector<32x32xf32>
    %209 = tpu.matmul %206, %208, %cst_83 {dimension_numbers = #tpu.dot_dimension_numbers<[1], [0], [0], [1], [0, 0, 1, 1], [], []>} : vector<32x128xf32>, vector<128x32xf32>, vector<32x32xf32> -> vector<32x32xf32>
    %c0_84 = arith.constant 0 : index
    %c0_85 = arith.constant 0 : index
    %c0_86 = arith.constant 0 : index
    %210 = vector.load %arg14[%c0_84, %c0_85, %c0_86] : memref<2x1x32xf32, #tpu.memory_space<vmem>>, vector<1x1x32xf32>
    %211 = vector.shape_cast %210 : vector<1x1x32xf32> to vector<1x32xf32>
    %212 = vector.broadcast %211 : vector<1x32xf32> to vector<32x32xf32>
    %213 = arith.addf %209, %212 : vector<32x32xf32>
    %214 = arith.addf %197, %213 : vector<32x32xf32>
    %c0_87 = arith.constant 0 : index
    %c0_88 = arith.constant 0 : index
    %c0_89 = arith.constant 0 : index
    %215 = vector.load %arg15[%c0_87, %c0_88, %c0_89] : memref<2x1x32xf32, #tpu.memory_space<vmem>>, vector<1x1x32xf32>
    %216 = vector.shape_cast %215 : vector<1x1x32xf32> to vector<1x32xf32>
    %c0_90 = arith.constant 0 : index
    %c0_91 = arith.constant 0 : index
    %c0_92 = arith.constant 0 : index
    %217 = vector.load %arg16[%c0_90, %c0_91, %c0_92] : memref<2x1x32xf32, #tpu.memory_space<vmem>>, vector<1x1x32xf32>
    %218 = vector.shape_cast %217 : vector<1x1x32xf32> to vector<1x32xf32>
    %cst_93 = arith.constant dense<0.000000e+00> : vector<32xf32>
    %219 = vector.multi_reduction <add>, %214, %cst_93 [1] : vector<32x32xf32> to vector<32xf32>
    %220 = vector.shape_cast %219 : vector<32xf32> to vector<32x1xf32>
    %cst_94 = arith.constant 3.200000e+01 : f32
    %221 = vector.broadcast %cst_94 : f32 to vector<32x1xf32>
    %222 = arith.divf %220, %221 : vector<32x1xf32>
    %223 = vector.broadcast %222 : vector<32x1xf32> to vector<32x32xf32>
    %224 = arith.subf %214, %223 : vector<32x32xf32>
    %225 = arith.mulf %224, %224 : vector<32x32xf32>
    %cst_95 = arith.constant dense<0.000000e+00> : vector<32xf32>
    %226 = vector.multi_reduction <add>, %225, %cst_95 [1] : vector<32x32xf32> to vector<32xf32>
    %227 = vector.shape_cast %226 : vector<32xf32> to vector<32x1xf32>
    %cst_96 = arith.constant 3.200000e+01 : f32
    %228 = vector.broadcast %cst_96 : f32 to vector<32x1xf32>
    %229 = arith.divf %227, %228 : vector<32x1xf32>
    %230 = vector.broadcast %222 : vector<32x1xf32> to vector<32x32xf32>
    %231 = arith.subf %214, %230 : vector<32x32xf32>
    %cst_97 = arith.constant 9.99999974E-6 : f32
    %232 = vector.broadcast %cst_97 : f32 to vector<32x1xf32>
    %233 = arith.addf %229, %232 : vector<32x1xf32>
    %234 = math.rsqrt %233 : vector<32x1xf32>
    %235 = vector.broadcast %234 : vector<32x1xf32> to vector<32x32xf32>
    %236 = arith.mulf %231, %235 : vector<32x32xf32>
    %237 = vector.broadcast %216 : vector<1x32xf32> to vector<32x32xf32>
    %238 = arith.mulf %236, %237 : vector<32x32xf32>
    %239 = vector.broadcast %218 : vector<1x32xf32> to vector<32x32xf32>
    %240 = arith.addf %238, %239 : vector<32x32xf32>
    %c1 = arith.constant 1 : index
    %c0_98 = arith.constant 0 : index
    %c0_99 = arith.constant 0 : index
    %241 = vector.load %arg5[%c1, %c0_98, %c0_99] : memref<2x32x96xf32, #tpu.memory_space<vmem>>, vector<1x32x96xf32>
    %242 = vector.shape_cast %241 : vector<1x32x96xf32> to vector<32x96xf32>
    %cst_100 = arith.constant dense<0.000000e+00> : vector<32x96xf32>
    %243 = tpu.matmul %240, %242, %cst_100 {dimension_numbers = #tpu.dot_dimension_numbers<[1], [0], [0], [1], [0, 0, 1, 1], [], []>} : vector<32x32xf32>, vector<32x96xf32>, vector<32x96xf32> -> vector<32x96xf32>
    %c1_101 = arith.constant 1 : index
    %c0_102 = arith.constant 0 : index
    %c0_103 = arith.constant 0 : index
    %244 = vector.load %arg6[%c1_101, %c0_102, %c0_103] : memref<2x1x96xf32, #tpu.memory_space<vmem>>, vector<1x1x96xf32>
    %245 = vector.shape_cast %244 : vector<1x1x96xf32> to vector<1x96xf32>
    %246 = vector.broadcast %245 : vector<1x96xf32> to vector<32x96xf32>
    %247 = arith.addf %243, %246 : vector<32x96xf32>
    %248 = vector.extract_strided_slice %247 {offsets = [0, 0], sizes = [16, 96], strides = [1, 1]} : vector<32x96xf32> to vector<16x96xf32>
    %249 = vector.extract_strided_slice %248 {offsets = [0, 0], sizes = [16, 8], strides = [1, 1]} : vector<16x96xf32> to vector<16x8xf32>
    %250 = vector.extract_strided_slice %248 {offsets = [0, 32], sizes = [16, 8], strides = [1, 1]} : vector<16x96xf32> to vector<16x8xf32>
    %251 = vector.extract_strided_slice %248 {offsets = [0, 64], sizes = [16, 8], strides = [1, 1]} : vector<16x96xf32> to vector<16x8xf32>
    %252 = tpu.transpose %250, [1, 0] : vector<16x8xf32> -> vector<8x16xf32>
    %cst_104 = arith.constant dense<0.000000e+00> : vector<16x16xf32>
    %253 = tpu.matmul %249, %252, %cst_104 {dimension_numbers = #tpu.dot_dimension_numbers<[1], [0], [0], [1], [0, 0, 1, 1], [], []>} : vector<16x8xf32>, vector<8x16xf32>, vector<16x16xf32> -> vector<16x16xf32>
    %cst_105 = arith.constant 0.353553385 : f32
    %254 = vector.broadcast %cst_105 : f32 to vector<16x16xf32>
    %255 = arith.mulf %253, %254 : vector<16x16xf32>
    %cst_106 = arith.constant dense<0xFF800000> : vector<16xf32>
    %256 = vector.multi_reduction <maximumf>, %255, %cst_106 [1] : vector<16x16xf32> to vector<16xf32>
    %257 = vector.shape_cast %256 : vector<16xf32> to vector<16x1xf32>
    %258 = vector.broadcast %257 : vector<16x1xf32> to vector<16x16xf32>
    %259 = arith.subf %255, %258 : vector<16x16xf32>
    %260 = math.exp %259 : vector<16x16xf32>
    %cst_107 = arith.constant dense<0.000000e+00> : vector<16xf32>
    %261 = vector.multi_reduction <add>, %260, %cst_107 [1] : vector<16x16xf32> to vector<16xf32>
    %262 = vector.shape_cast %261 : vector<16xf32> to vector<16x1xf32>
    %263 = tpu.reciprocal %262 {approx = true} : vector<16x1xf32> -> vector<16x1xf32>
    %264 = vector.broadcast %263 : vector<16x1xf32> to vector<16x16xf32>
    %265 = arith.mulf %260, %264 : vector<16x16xf32>
    %cst_108 = arith.constant dense<0.000000e+00> : vector<16x8xf32>
    %266 = tpu.matmul %265, %251, %cst_108 {dimension_numbers = #tpu.dot_dimension_numbers<[1], [0], [0], [1], [0, 0, 1, 1], [], []>} : vector<16x16xf32>, vector<16x8xf32>, vector<16x8xf32> -> vector<16x8xf32>
    %267 = vector.extract_strided_slice %248 {offsets = [0, 8], sizes = [16, 8], strides = [1, 1]} : vector<16x96xf32> to vector<16x8xf32>
    %268 = vector.extract_strided_slice %248 {offsets = [0, 40], sizes = [16, 8], strides = [1, 1]} : vector<16x96xf32> to vector<16x8xf32>
    %269 = vector.extract_strided_slice %248 {offsets = [0, 72], sizes = [16, 8], strides = [1, 1]} : vector<16x96xf32> to vector<16x8xf32>
    %270 = tpu.transpose %268, [1, 0] : vector<16x8xf32> -> vector<8x16xf32>
    %cst_109 = arith.constant dense<0.000000e+00> : vector<16x16xf32>
    %271 = tpu.matmul %267, %270, %cst_109 {dimension_numbers = #tpu.dot_dimension_numbers<[1], [0], [0], [1], [0, 0, 1, 1], [], []>} : vector<16x8xf32>, vector<8x16xf32>, vector<16x16xf32> -> vector<16x16xf32>
    %cst_110 = arith.constant 0.353553385 : f32
    %272 = vector.broadcast %cst_110 : f32 to vector<16x16xf32>
    %273 = arith.mulf %271, %272 : vector<16x16xf32>
    %cst_111 = arith.constant dense<0xFF800000> : vector<16xf32>
    %274 = vector.multi_reduction <maximumf>, %273, %cst_111 [1] : vector<16x16xf32> to vector<16xf32>
    %275 = vector.shape_cast %274 : vector<16xf32> to vector<16x1xf32>
    %276 = vector.broadcast %275 : vector<16x1xf32> to vector<16x16xf32>
    %277 = arith.subf %273, %276 : vector<16x16xf32>
    %278 = math.exp %277 : vector<16x16xf32>
    %cst_112 = arith.constant dense<0.000000e+00> : vector<16xf32>
    %279 = vector.multi_reduction <add>, %278, %cst_112 [1] : vector<16x16xf32> to vector<16xf32>
    %280 = vector.shape_cast %279 : vector<16xf32> to vector<16x1xf32>
    %281 = tpu.reciprocal %280 {approx = true} : vector<16x1xf32> -> vector<16x1xf32>
    %282 = vector.broadcast %281 : vector<16x1xf32> to vector<16x16xf32>
    %283 = arith.mulf %278, %282 : vector<16x16xf32>
    %cst_113 = arith.constant dense<0.000000e+00> : vector<16x8xf32>
    %284 = tpu.matmul %283, %269, %cst_113 {dimension_numbers = #tpu.dot_dimension_numbers<[1], [0], [0], [1], [0, 0, 1, 1], [], []>} : vector<16x16xf32>, vector<16x8xf32>, vector<16x8xf32> -> vector<16x8xf32>
    %285 = vector.extract_strided_slice %248 {offsets = [0, 16], sizes = [16, 8], strides = [1, 1]} : vector<16x96xf32> to vector<16x8xf32>
    %286 = vector.extract_strided_slice %248 {offsets = [0, 48], sizes = [16, 8], strides = [1, 1]} : vector<16x96xf32> to vector<16x8xf32>
    %287 = vector.extract_strided_slice %248 {offsets = [0, 80], sizes = [16, 8], strides = [1, 1]} : vector<16x96xf32> to vector<16x8xf32>
    %288 = tpu.transpose %286, [1, 0] : vector<16x8xf32> -> vector<8x16xf32>
    %cst_114 = arith.constant dense<0.000000e+00> : vector<16x16xf32>
    %289 = tpu.matmul %285, %288, %cst_114 {dimension_numbers = #tpu.dot_dimension_numbers<[1], [0], [0], [1], [0, 0, 1, 1], [], []>} : vector<16x8xf32>, vector<8x16xf32>, vector<16x16xf32> -> vector<16x16xf32>
    %cst_115 = arith.constant 0.353553385 : f32
    %290 = vector.broadcast %cst_115 : f32 to vector<16x16xf32>
    %291 = arith.mulf %289, %290 : vector<16x16xf32>
    %cst_116 = arith.constant dense<0xFF800000> : vector<16xf32>
    %292 = vector.multi_reduction <maximumf>, %291, %cst_116 [1] : vector<16x16xf32> to vector<16xf32>
    %293 = vector.shape_cast %292 : vector<16xf32> to vector<16x1xf32>
    %294 = vector.broadcast %293 : vector<16x1xf32> to vector<16x16xf32>
    %295 = arith.subf %291, %294 : vector<16x16xf32>
    %296 = math.exp %295 : vector<16x16xf32>
    %cst_117 = arith.constant dense<0.000000e+00> : vector<16xf32>
    %297 = vector.multi_reduction <add>, %296, %cst_117 [1] : vector<16x16xf32> to vector<16xf32>
    %298 = vector.shape_cast %297 : vector<16xf32> to vector<16x1xf32>
    %299 = tpu.reciprocal %298 {approx = true} : vector<16x1xf32> -> vector<16x1xf32>
    %300 = vector.broadcast %299 : vector<16x1xf32> to vector<16x16xf32>
    %301 = arith.mulf %296, %300 : vector<16x16xf32>
    %cst_118 = arith.constant dense<0.000000e+00> : vector<16x8xf32>
    %302 = tpu.matmul %301, %287, %cst_118 {dimension_numbers = #tpu.dot_dimension_numbers<[1], [0], [0], [1], [0, 0, 1, 1], [], []>} : vector<16x16xf32>, vector<16x8xf32>, vector<16x8xf32> -> vector<16x8xf32>
    %303 = vector.extract_strided_slice %248 {offsets = [0, 24], sizes = [16, 8], strides = [1, 1]} : vector<16x96xf32> to vector<16x8xf32>
    %304 = vector.extract_strided_slice %248 {offsets = [0, 56], sizes = [16, 8], strides = [1, 1]} : vector<16x96xf32> to vector<16x8xf32>
    %305 = vector.extract_strided_slice %248 {offsets = [0, 88], sizes = [16, 8], strides = [1, 1]} : vector<16x96xf32> to vector<16x8xf32>
    %306 = tpu.transpose %304, [1, 0] : vector<16x8xf32> -> vector<8x16xf32>
    %cst_119 = arith.constant dense<0.000000e+00> : vector<16x16xf32>
    %307 = tpu.matmul %303, %306, %cst_119 {dimension_numbers = #tpu.dot_dimension_numbers<[1], [0], [0], [1], [0, 0, 1, 1], [], []>} : vector<16x8xf32>, vector<8x16xf32>, vector<16x16xf32> -> vector<16x16xf32>
    %cst_120 = arith.constant 0.353553385 : f32
    %308 = vector.broadcast %cst_120 : f32 to vector<16x16xf32>
    %309 = arith.mulf %307, %308 : vector<16x16xf32>
    %cst_121 = arith.constant dense<0xFF800000> : vector<16xf32>
    %310 = vector.multi_reduction <maximumf>, %309, %cst_121 [1] : vector<16x16xf32> to vector<16xf32>
    %311 = vector.shape_cast %310 : vector<16xf32> to vector<16x1xf32>
    %312 = vector.broadcast %311 : vector<16x1xf32> to vector<16x16xf32>
    %313 = arith.subf %309, %312 : vector<16x16xf32>
    %314 = math.exp %313 : vector<16x16xf32>
    %cst_122 = arith.constant dense<0.000000e+00> : vector<16xf32>
    %315 = vector.multi_reduction <add>, %314, %cst_122 [1] : vector<16x16xf32> to vector<16xf32>
    %316 = vector.shape_cast %315 : vector<16xf32> to vector<16x1xf32>
    %317 = tpu.reciprocal %316 {approx = true} : vector<16x1xf32> -> vector<16x1xf32>
    %318 = vector.broadcast %317 : vector<16x1xf32> to vector<16x16xf32>
    %319 = arith.mulf %314, %318 : vector<16x16xf32>
    %cst_123 = arith.constant dense<0.000000e+00> : vector<16x8xf32>
    %320 = tpu.matmul %319, %305, %cst_123 {dimension_numbers = #tpu.dot_dimension_numbers<[1], [0], [0], [1], [0, 0, 1, 1], [], []>} : vector<16x16xf32>, vector<16x8xf32>, vector<16x8xf32> -> vector<16x8xf32>
    %321 = tpu.concatenate %266, %284, %302, %320 in 1 : vector<16x8xf32>, vector<16x8xf32>, vector<16x8xf32>, vector<16x8xf32> -> vector<16x32xf32>
    %322 = vector.extract_strided_slice %247 {offsets = [16, 0], sizes = [16, 96], strides = [1, 1]} : vector<32x96xf32> to vector<16x96xf32>
    %323 = vector.extract_strided_slice %322 {offsets = [0, 0], sizes = [16, 8], strides = [1, 1]} : vector<16x96xf32> to vector<16x8xf32>
    %324 = vector.extract_strided_slice %322 {offsets = [0, 32], sizes = [16, 8], strides = [1, 1]} : vector<16x96xf32> to vector<16x8xf32>
    %325 = vector.extract_strided_slice %322 {offsets = [0, 64], sizes = [16, 8], strides = [1, 1]} : vector<16x96xf32> to vector<16x8xf32>
    %326 = tpu.transpose %324, [1, 0] : vector<16x8xf32> -> vector<8x16xf32>
    %cst_124 = arith.constant dense<0.000000e+00> : vector<16x16xf32>
    %327 = tpu.matmul %323, %326, %cst_124 {dimension_numbers = #tpu.dot_dimension_numbers<[1], [0], [0], [1], [0, 0, 1, 1], [], []>} : vector<16x8xf32>, vector<8x16xf32>, vector<16x16xf32> -> vector<16x16xf32>
    %cst_125 = arith.constant 0.353553385 : f32
    %328 = vector.broadcast %cst_125 : f32 to vector<16x16xf32>
    %329 = arith.mulf %327, %328 : vector<16x16xf32>
    %cst_126 = arith.constant dense<0xFF800000> : vector<16xf32>
    %330 = vector.multi_reduction <maximumf>, %329, %cst_126 [1] : vector<16x16xf32> to vector<16xf32>
    %331 = vector.shape_cast %330 : vector<16xf32> to vector<16x1xf32>
    %332 = vector.broadcast %331 : vector<16x1xf32> to vector<16x16xf32>
    %333 = arith.subf %329, %332 : vector<16x16xf32>
    %334 = math.exp %333 : vector<16x16xf32>
    %cst_127 = arith.constant dense<0.000000e+00> : vector<16xf32>
    %335 = vector.multi_reduction <add>, %334, %cst_127 [1] : vector<16x16xf32> to vector<16xf32>
    %336 = vector.shape_cast %335 : vector<16xf32> to vector<16x1xf32>
    %337 = tpu.reciprocal %336 {approx = true} : vector<16x1xf32> -> vector<16x1xf32>
    %338 = vector.broadcast %337 : vector<16x1xf32> to vector<16x16xf32>
    %339 = arith.mulf %334, %338 : vector<16x16xf32>
    %cst_128 = arith.constant dense<0.000000e+00> : vector<16x8xf32>
    %340 = tpu.matmul %339, %325, %cst_128 {dimension_numbers = #tpu.dot_dimension_numbers<[1], [0], [0], [1], [0, 0, 1, 1], [], []>} : vector<16x16xf32>, vector<16x8xf32>, vector<16x8xf32> -> vector<16x8xf32>
    %341 = vector.extract_strided_slice %322 {offsets = [0, 8], sizes = [16, 8], strides = [1, 1]} : vector<16x96xf32> to vector<16x8xf32>
    %342 = vector.extract_strided_slice %322 {offsets = [0, 40], sizes = [16, 8], strides = [1, 1]} : vector<16x96xf32> to vector<16x8xf32>
    %343 = vector.extract_strided_slice %322 {offsets = [0, 72], sizes = [16, 8], strides = [1, 1]} : vector<16x96xf32> to vector<16x8xf32>
    %344 = tpu.transpose %342, [1, 0] : vector<16x8xf32> -> vector<8x16xf32>
    %cst_129 = arith.constant dense<0.000000e+00> : vector<16x16xf32>
    %345 = tpu.matmul %341, %344, %cst_129 {dimension_numbers = #tpu.dot_dimension_numbers<[1], [0], [0], [1], [0, 0, 1, 1], [], []>} : vector<16x8xf32>, vector<8x16xf32>, vector<16x16xf32> -> vector<16x16xf32>
    %cst_130 = arith.constant 0.353553385 : f32
    %346 = vector.broadcast %cst_130 : f32 to vector<16x16xf32>
    %347 = arith.mulf %345, %346 : vector<16x16xf32>
    %cst_131 = arith.constant dense<0xFF800000> : vector<16xf32>
    %348 = vector.multi_reduction <maximumf>, %347, %cst_131 [1] : vector<16x16xf32> to vector<16xf32>
    %349 = vector.shape_cast %348 : vector<16xf32> to vector<16x1xf32>
    %350 = vector.broadcast %349 : vector<16x1xf32> to vector<16x16xf32>
    %351 = arith.subf %347, %350 : vector<16x16xf32>
    %352 = math.exp %351 : vector<16x16xf32>
    %cst_132 = arith.constant dense<0.000000e+00> : vector<16xf32>
    %353 = vector.multi_reduction <add>, %352, %cst_132 [1] : vector<16x16xf32> to vector<16xf32>
    %354 = vector.shape_cast %353 : vector<16xf32> to vector<16x1xf32>
    %355 = tpu.reciprocal %354 {approx = true} : vector<16x1xf32> -> vector<16x1xf32>
    %356 = vector.broadcast %355 : vector<16x1xf32> to vector<16x16xf32>
    %357 = arith.mulf %352, %356 : vector<16x16xf32>
    %cst_133 = arith.constant dense<0.000000e+00> : vector<16x8xf32>
    %358 = tpu.matmul %357, %343, %cst_133 {dimension_numbers = #tpu.dot_dimension_numbers<[1], [0], [0], [1], [0, 0, 1, 1], [], []>} : vector<16x16xf32>, vector<16x8xf32>, vector<16x8xf32> -> vector<16x8xf32>
    %359 = vector.extract_strided_slice %322 {offsets = [0, 16], sizes = [16, 8], strides = [1, 1]} : vector<16x96xf32> to vector<16x8xf32>
    %360 = vector.extract_strided_slice %322 {offsets = [0, 48], sizes = [16, 8], strides = [1, 1]} : vector<16x96xf32> to vector<16x8xf32>
    %361 = vector.extract_strided_slice %322 {offsets = [0, 80], sizes = [16, 8], strides = [1, 1]} : vector<16x96xf32> to vector<16x8xf32>
    %362 = tpu.transpose %360, [1, 0] : vector<16x8xf32> -> vector<8x16xf32>
    %cst_134 = arith.constant dense<0.000000e+00> : vector<16x16xf32>
    %363 = tpu.matmul %359, %362, %cst_134 {dimension_numbers = #tpu.dot_dimension_numbers<[1], [0], [0], [1], [0, 0, 1, 1], [], []>} : vector<16x8xf32>, vector<8x16xf32>, vector<16x16xf32> -> vector<16x16xf32>
    %cst_135 = arith.constant 0.353553385 : f32
    %364 = vector.broadcast %cst_135 : f32 to vector<16x16xf32>
    %365 = arith.mulf %363, %364 : vector<16x16xf32>
    %cst_136 = arith.constant dense<0xFF800000> : vector<16xf32>
    %366 = vector.multi_reduction <maximumf>, %365, %cst_136 [1] : vector<16x16xf32> to vector<16xf32>
    %367 = vector.shape_cast %366 : vector<16xf32> to vector<16x1xf32>
    %368 = vector.broadcast %367 : vector<16x1xf32> to vector<16x16xf32>
    %369 = arith.subf %365, %368 : vector<16x16xf32>
    %370 = math.exp %369 : vector<16x16xf32>
    %cst_137 = arith.constant dense<0.000000e+00> : vector<16xf32>
    %371 = vector.multi_reduction <add>, %370, %cst_137 [1] : vector<16x16xf32> to vector<16xf32>
    %372 = vector.shape_cast %371 : vector<16xf32> to vector<16x1xf32>
    %373 = tpu.reciprocal %372 {approx = true} : vector<16x1xf32> -> vector<16x1xf32>
    %374 = vector.broadcast %373 : vector<16x1xf32> to vector<16x16xf32>
    %375 = arith.mulf %370, %374 : vector<16x16xf32>
    %cst_138 = arith.constant dense<0.000000e+00> : vector<16x8xf32>
    %376 = tpu.matmul %375, %361, %cst_138 {dimension_numbers = #tpu.dot_dimension_numbers<[1], [0], [0], [1], [0, 0, 1, 1], [], []>} : vector<16x16xf32>, vector<16x8xf32>, vector<16x8xf32> -> vector<16x8xf32>
    %377 = vector.extract_strided_slice %322 {offsets = [0, 24], sizes = [16, 8], strides = [1, 1]} : vector<16x96xf32> to vector<16x8xf32>
    %378 = vector.extract_strided_slice %322 {offsets = [0, 56], sizes = [16, 8], strides = [1, 1]} : vector<16x96xf32> to vector<16x8xf32>
    %379 = vector.extract_strided_slice %322 {offsets = [0, 88], sizes = [16, 8], strides = [1, 1]} : vector<16x96xf32> to vector<16x8xf32>
    %380 = tpu.transpose %378, [1, 0] : vector<16x8xf32> -> vector<8x16xf32>
    %cst_139 = arith.constant dense<0.000000e+00> : vector<16x16xf32>
    %381 = tpu.matmul %377, %380, %cst_139 {dimension_numbers = #tpu.dot_dimension_numbers<[1], [0], [0], [1], [0, 0, 1, 1], [], []>} : vector<16x8xf32>, vector<8x16xf32>, vector<16x16xf32> -> vector<16x16xf32>
    %cst_140 = arith.constant 0.353553385 : f32
    %382 = vector.broadcast %cst_140 : f32 to vector<16x16xf32>
    %383 = arith.mulf %381, %382 : vector<16x16xf32>
    %cst_141 = arith.constant dense<0xFF800000> : vector<16xf32>
    %384 = vector.multi_reduction <maximumf>, %383, %cst_141 [1] : vector<16x16xf32> to vector<16xf32>
    %385 = vector.shape_cast %384 : vector<16xf32> to vector<16x1xf32>
    %386 = vector.broadcast %385 : vector<16x1xf32> to vector<16x16xf32>
    %387 = arith.subf %383, %386 : vector<16x16xf32>
    %388 = math.exp %387 : vector<16x16xf32>
    %cst_142 = arith.constant dense<0.000000e+00> : vector<16xf32>
    %389 = vector.multi_reduction <add>, %388, %cst_142 [1] : vector<16x16xf32> to vector<16xf32>
    %390 = vector.shape_cast %389 : vector<16xf32> to vector<16x1xf32>
    %391 = tpu.reciprocal %390 {approx = true} : vector<16x1xf32> -> vector<16x1xf32>
    %392 = vector.broadcast %391 : vector<16x1xf32> to vector<16x16xf32>
    %393 = arith.mulf %388, %392 : vector<16x16xf32>
    %cst_143 = arith.constant dense<0.000000e+00> : vector<16x8xf32>
    %394 = tpu.matmul %393, %379, %cst_143 {dimension_numbers = #tpu.dot_dimension_numbers<[1], [0], [0], [1], [0, 0, 1, 1], [], []>} : vector<16x16xf32>, vector<16x8xf32>, vector<16x8xf32> -> vector<16x8xf32>
    %395 = tpu.concatenate %340, %358, %376, %394 in 1 : vector<16x8xf32>, vector<16x8xf32>, vector<16x8xf32>, vector<16x8xf32> -> vector<16x32xf32>
    %396 = tpu.concatenate %321, %395 in 0 : vector<16x32xf32>, vector<16x32xf32> -> vector<32x32xf32>
    %c1_144 = arith.constant 1 : index
    %c0_145 = arith.constant 0 : index
    %c0_146 = arith.constant 0 : index
    %397 = vector.load %arg7[%c1_144, %c0_145, %c0_146] : memref<2x32x32xf32, #tpu.memory_space<vmem>>, vector<1x32x32xf32>
    %398 = vector.shape_cast %397 : vector<1x32x32xf32> to vector<32x32xf32>
    %cst_147 = arith.constant dense<0.000000e+00> : vector<32x32xf32>
    %399 = tpu.matmul %396, %398, %cst_147 {dimension_numbers = #tpu.dot_dimension_numbers<[1], [0], [0], [1], [0, 0, 1, 1], [], []>} : vector<32x32xf32>, vector<32x32xf32>, vector<32x32xf32> -> vector<32x32xf32>
    %c1_148 = arith.constant 1 : index
    %c0_149 = arith.constant 0 : index
    %c0_150 = arith.constant 0 : index
    %400 = vector.load %arg8[%c1_148, %c0_149, %c0_150] : memref<2x1x32xf32, #tpu.memory_space<vmem>>, vector<1x1x32xf32>
    %401 = vector.shape_cast %400 : vector<1x1x32xf32> to vector<1x32xf32>
    %402 = vector.broadcast %401 : vector<1x32xf32> to vector<32x32xf32>
    %403 = arith.addf %399, %402 : vector<32x32xf32>
    %404 = arith.addf %240, %403 : vector<32x32xf32>
    %c1_151 = arith.constant 1 : index
    %c0_152 = arith.constant 0 : index
    %c0_153 = arith.constant 0 : index
    %405 = vector.load %arg9[%c1_151, %c0_152, %c0_153] : memref<2x1x32xf32, #tpu.memory_space<vmem>>, vector<1x1x32xf32>
    %406 = vector.shape_cast %405 : vector<1x1x32xf32> to vector<1x32xf32>
    %c1_154 = arith.constant 1 : index
    %c0_155 = arith.constant 0 : index
    %c0_156 = arith.constant 0 : index
    %407 = vector.load %arg10[%c1_154, %c0_155, %c0_156] : memref<2x1x32xf32, #tpu.memory_space<vmem>>, vector<1x1x32xf32>
    %408 = vector.shape_cast %407 : vector<1x1x32xf32> to vector<1x32xf32>
    %cst_157 = arith.constant dense<0.000000e+00> : vector<32xf32>
    %409 = vector.multi_reduction <add>, %404, %cst_157 [1] : vector<32x32xf32> to vector<32xf32>
    %410 = vector.shape_cast %409 : vector<32xf32> to vector<32x1xf32>
    %cst_158 = arith.constant 3.200000e+01 : f32
    %411 = vector.broadcast %cst_158 : f32 to vector<32x1xf32>
    %412 = arith.divf %410, %411 : vector<32x1xf32>
    %413 = vector.broadcast %412 : vector<32x1xf32> to vector<32x32xf32>
    %414 = arith.subf %404, %413 : vector<32x32xf32>
    %415 = arith.mulf %414, %414 : vector<32x32xf32>
    %cst_159 = arith.constant dense<0.000000e+00> : vector<32xf32>
    %416 = vector.multi_reduction <add>, %415, %cst_159 [1] : vector<32x32xf32> to vector<32xf32>
    %417 = vector.shape_cast %416 : vector<32xf32> to vector<32x1xf32>
    %cst_160 = arith.constant 3.200000e+01 : f32
    %418 = vector.broadcast %cst_160 : f32 to vector<32x1xf32>
    %419 = arith.divf %417, %418 : vector<32x1xf32>
    %420 = vector.broadcast %412 : vector<32x1xf32> to vector<32x32xf32>
    %421 = arith.subf %404, %420 : vector<32x32xf32>
    %cst_161 = arith.constant 9.99999974E-6 : f32
    %422 = vector.broadcast %cst_161 : f32 to vector<32x1xf32>
    %423 = arith.addf %419, %422 : vector<32x1xf32>
    %424 = math.rsqrt %423 : vector<32x1xf32>
    %425 = vector.broadcast %424 : vector<32x1xf32> to vector<32x32xf32>
    %426 = arith.mulf %421, %425 : vector<32x32xf32>
    %427 = vector.broadcast %406 : vector<1x32xf32> to vector<32x32xf32>
    %428 = arith.mulf %426, %427 : vector<32x32xf32>
    %429 = vector.broadcast %408 : vector<1x32xf32> to vector<32x32xf32>
    %430 = arith.addf %428, %429 : vector<32x32xf32>
    %c1_162 = arith.constant 1 : index
    %c0_163 = arith.constant 0 : index
    %c0_164 = arith.constant 0 : index
    %431 = vector.load %arg11[%c1_162, %c0_163, %c0_164] : memref<2x32x128xf32, #tpu.memory_space<vmem>>, vector<1x32x128xf32>
    %432 = vector.shape_cast %431 : vector<1x32x128xf32> to vector<32x128xf32>
    %cst_165 = arith.constant dense<0.000000e+00> : vector<32x128xf32>
    %433 = tpu.matmul %430, %432, %cst_165 {dimension_numbers = #tpu.dot_dimension_numbers<[1], [0], [0], [1], [0, 0, 1, 1], [], []>} : vector<32x32xf32>, vector<32x128xf32>, vector<32x128xf32> -> vector<32x128xf32>
    %c1_166 = arith.constant 1 : index
    %c0_167 = arith.constant 0 : index
    %c0_168 = arith.constant 0 : index
    %434 = vector.load %arg12[%c1_166, %c0_167, %c0_168] : memref<2x1x128xf32, #tpu.memory_space<vmem>>, vector<1x1x128xf32>
    %435 = vector.shape_cast %434 : vector<1x1x128xf32> to vector<1x128xf32>
    %436 = vector.broadcast %435 : vector<1x128xf32> to vector<32x128xf32>
    %437 = arith.addf %433, %436 : vector<32x128xf32>
    %cst_169 = arith.constant 0.000000e+00 : f32
    %438 = vector.broadcast %cst_169 : f32 to vector<32x128xf32>
    %439 = arith.maximumf %437, %438 : vector<32x128xf32>
    %c1_170 = arith.constant 1 : index
    %c0_171 = arith.constant 0 : index
    %c0_172 = arith.constant 0 : index
    %440 = vector.load %arg13[%c1_170, %c0_171, %c0_172] : memref<2x128x32xf32, #tpu.memory_space<vmem>>, vector<1x128x32xf32>
    %441 = vector.shape_cast %440 : vector<1x128x32xf32> to vector<128x32xf32>
    %cst_173 = arith.constant dense<0.000000e+00> : vector<32x32xf32>
    %442 = tpu.matmul %439, %441, %cst_173 {dimension_numbers = #tpu.dot_dimension_numbers<[1], [0], [0], [1], [0, 0, 1, 1], [], []>} : vector<32x128xf32>, vector<128x32xf32>, vector<32x32xf32> -> vector<32x32xf32>
    %c1_174 = arith.constant 1 : index
    %c0_175 = arith.constant 0 : index
    %c0_176 = arith.constant 0 : index
    %443 = vector.load %arg14[%c1_174, %c0_175, %c0_176] : memref<2x1x32xf32, #tpu.memory_space<vmem>>, vector<1x1x32xf32>
    %444 = vector.shape_cast %443 : vector<1x1x32xf32> to vector<1x32xf32>
    %445 = vector.broadcast %444 : vector<1x32xf32> to vector<32x32xf32>
    %446 = arith.addf %442, %445 : vector<32x32xf32>
    %447 = arith.addf %430, %446 : vector<32x32xf32>
    %c1_177 = arith.constant 1 : index
    %c0_178 = arith.constant 0 : index
    %c0_179 = arith.constant 0 : index
    %448 = vector.load %arg15[%c1_177, %c0_178, %c0_179] : memref<2x1x32xf32, #tpu.memory_space<vmem>>, vector<1x1x32xf32>
    %449 = vector.shape_cast %448 : vector<1x1x32xf32> to vector<1x32xf32>
    %c1_180 = arith.constant 1 : index
    %c0_181 = arith.constant 0 : index
    %c0_182 = arith.constant 0 : index
    %450 = vector.load %arg16[%c1_180, %c0_181, %c0_182] : memref<2x1x32xf32, #tpu.memory_space<vmem>>, vector<1x1x32xf32>
    %451 = vector.shape_cast %450 : vector<1x1x32xf32> to vector<1x32xf32>
    %cst_183 = arith.constant dense<0.000000e+00> : vector<32xf32>
    %452 = vector.multi_reduction <add>, %447, %cst_183 [1] : vector<32x32xf32> to vector<32xf32>
    %453 = vector.shape_cast %452 : vector<32xf32> to vector<32x1xf32>
    %cst_184 = arith.constant 3.200000e+01 : f32
    %454 = vector.broadcast %cst_184 : f32 to vector<32x1xf32>
    %455 = arith.divf %453, %454 : vector<32x1xf32>
    %456 = vector.broadcast %455 : vector<32x1xf32> to vector<32x32xf32>
    %457 = arith.subf %447, %456 : vector<32x32xf32>
    %458 = arith.mulf %457, %457 : vector<32x32xf32>
    %cst_185 = arith.constant dense<0.000000e+00> : vector<32xf32>
    %459 = vector.multi_reduction <add>, %458, %cst_185 [1] : vector<32x32xf32> to vector<32xf32>
    %460 = vector.shape_cast %459 : vector<32xf32> to vector<32x1xf32>
    %cst_186 = arith.constant 3.200000e+01 : f32
    %461 = vector.broadcast %cst_186 : f32 to vector<32x1xf32>
    %462 = arith.divf %460, %461 : vector<32x1xf32>
    %463 = vector.broadcast %455 : vector<32x1xf32> to vector<32x32xf32>
    %464 = arith.subf %447, %463 : vector<32x32xf32>
    %cst_187 = arith.constant 9.99999974E-6 : f32
    %465 = vector.broadcast %cst_187 : f32 to vector<32x1xf32>
    %466 = arith.addf %462, %465 : vector<32x1xf32>
    %467 = math.rsqrt %466 : vector<32x1xf32>
    %468 = vector.broadcast %467 : vector<32x1xf32> to vector<32x32xf32>
    %469 = arith.mulf %464, %468 : vector<32x32xf32>
    %470 = vector.broadcast %449 : vector<1x32xf32> to vector<32x32xf32>
    %471 = arith.mulf %469, %470 : vector<32x32xf32>
    %472 = vector.broadcast %451 : vector<1x32xf32> to vector<32x32xf32>
    %473 = arith.addf %471, %472 : vector<32x32xf32>
    %c0_188 = arith.constant 0 : index
    %c0_189 = arith.constant 0 : index
    %474 = vector.load %arg17[%c0_188, %c0_189] : memref<32x128xf32, #tpu.memory_space<vmem>>, vector<32x128xf32>
    %cst_190 = arith.constant dense<0.000000e+00> : vector<32x128xf32>
    %475 = tpu.matmul %473, %474, %cst_190 {dimension_numbers = #tpu.dot_dimension_numbers<[1], [0], [0], [1], [0, 0, 1, 1], [], []>} : vector<32x32xf32>, vector<32x128xf32>, vector<32x128xf32> -> vector<32x128xf32>
    %c0_191 = arith.constant 0 : index
    %c0_192 = arith.constant 0 : index
    %476 = vector.load %arg19[%c0_191, %c0_192] : memref<32x128xf32, #tpu.memory_space<vmem>>, vector<32x128xf32>
    %477 = arith.mulf %475, %476 : vector<32x128xf32>
    %c0_193 = arith.constant 0 : index
    %c0_194 = arith.constant 0 : index
    %478 = vector.load %arg20[%c0_193, %c0_194] : memref<2x32xf32, #tpu.memory_space<vmem>>, vector<2x32xf32>
    %cst_195 = arith.constant dense<0.000000e+00> : vector<2x128xf32>
    %479 = tpu.matmul %478, %477, %cst_195 {dimension_numbers = #tpu.dot_dimension_numbers<[1], [0], [0], [1], [0, 0, 1, 1], [], []>} : vector<2x32xf32>, vector<32x128xf32>, vector<2x128xf32> -> vector<2x128xf32>
    %c0_196 = arith.constant 0 : index
    %c0_197 = arith.constant 0 : index
    %480 = vector.load %arg21[%c0_196, %c0_197] : memref<128x8xf32, #tpu.memory_space<vmem>>, vector<128x8xf32>
    %cst_198 = arith.constant dense<0.000000e+00> : vector<2x8xf32>
    %481 = tpu.matmul %479, %480, %cst_198 {dimension_numbers = #tpu.dot_dimension_numbers<[1], [0], [0], [1], [0, 0, 1, 1], [], []>} : vector<2x128xf32>, vector<128x8xf32>, vector<2x8xf32> -> vector<2x8xf32>
    %c0_199 = arith.constant 0 : index
    %c0_200 = arith.constant 0 : index
    %482 = vector.load %arg18[%c0_199, %c0_200] : memref<1x8xf32, #tpu.memory_space<vmem>>, vector<1x8xf32>
    %483 = vector.broadcast %482 : vector<1x8xf32> to vector<2x8xf32>
    %484 = arith.addf %481, %483 : vector<2x8xf32>
    %c0_201 = arith.constant 0 : index
    %c0_202 = arith.constant 0 : index
    %485 = vector.load %arg22[%c0_201, %c0_202] : memref<2x8xf32, #tpu.memory_space<vmem>>, vector<2x8xf32>
    tpu.vector_store %arg22[%c0_201, %c0_202], %484 {strides = array<i32>} : memref<2x8xf32, #tpu.memory_space<vmem>>, vector<2x8xf32>,
    return
  }
  func.func @transform_0(%arg0: i32) -> (i32, i32) {
    %c0_i32 = arith.constant 0 : i32
    %c0_i32_0 = arith.constant 0 : i32
    %c0_i32_1 = arith.constant 0 : i32
    return %c0_i32, %c0_i32_0 : i32, i32
  }
  func.func @transform_1(%arg0: i32) -> (i32, i32) {
    %c0_i32 = arith.constant 0 : i32
    %c0_i32_0 = arith.constant 0 : i32
    %c0_i32_1 = arith.constant 0 : i32
    return %c0_i32, %c0_i32_0 : i32, i32
  }
  func.func @transform_2(%arg0: i32) -> (i32, i32) {
    %c0_i32 = arith.constant 0 : i32
    %c0_i32_0 = arith.constant 0 : i32
    %c0_i32_1 = arith.constant 0 : i32
    return %c0_i32, %c0_i32_0 : i32, i32
  }
  func.func @transform_3(%arg0: i32) -> (i32, i32) {
    %c0_i32 = arith.constant 0 : i32
    %c0_i32_0 = arith.constant 0 : i32
    %c0_i32_1 = arith.constant 0 : i32
    return %c0_i32, %c0_i32_0 : i32, i32
  }
  func.func @transform_4(%arg0: i32) -> (i32, i32, i32) {
    %c0_i32 = arith.constant 0 : i32
    %c0_i32_0 = arith.constant 0 : i32
    %c0_i32_1 = arith.constant 0 : i32
    %c0_i32_2 = arith.constant 0 : i32
    return %c0_i32, %c0_i32_0, %c0_i32_1 : i32, i32, i32
  }
  func.func @transform_5(%arg0: i32) -> (i32, i32, i32) {
    %c0_i32 = arith.constant 0 : i32
    %c0_i32_0 = arith.constant 0 : i32
    %c0_i32_1 = arith.constant 0 : i32
    %c0_i32_2 = arith.constant 0 : i32
    return %c0_i32, %c0_i32_0, %c0_i32_1 : i32, i32, i32
  }
  func.func @transform_6(%arg0: i32) -> (i32, i32, i32) {
    %c0_i32 = arith.constant 0 : i32
    %c0_i32_0 = arith.constant 0 : i32
    %c0_i32_1 = arith.constant 0 : i32
    %c0_i32_2 = arith.constant 0 : i32
    return %c0_i32, %c0_i32_0, %c0_i32_1 : i32, i32, i32
  }
  func.func @transform_7(%arg0: i32) -> (i32, i32, i32) {
    %c0_i32 = arith.constant 0 : i32
    %c0_i32_0 = arith.constant 0 : i32
    %c0_i32_1 = arith.constant 0 : i32
    %c0_i32_2 = arith.constant 0 : i32
    return %c0_i32, %c0_i32_0, %c0_i32_1 : i32, i32, i32
  }
  func.func @transform_8(%arg0: i32) -> (i32, i32, i32) {
    %c0_i32 = arith.constant 0 : i32
    %c0_i32_0 = arith.constant 0 : i32
    %c0_i32_1 = arith.constant 0 : i32
    %c0_i32_2 = arith.constant 0 : i32
    return %c0_i32, %c0_i32_0, %c0_i32_1 : i32, i32, i32
  }
  func.func @transform_9(%arg0: i32) -> (i32, i32, i32) {
    %c0_i32 = arith.constant 0 : i32
    %c0_i32_0 = arith.constant 0 : i32
    %c0_i32_1 = arith.constant 0 : i32
    %c0_i32_2 = arith.constant 0 : i32
    return %c0_i32, %c0_i32_0, %c0_i32_1 : i32, i32, i32
  }
  func.func @transform_10(%arg0: i32) -> (i32, i32, i32) {
    %c0_i32 = arith.constant 0 : i32
    %c0_i32_0 = arith.constant 0 : i32
    %c0_i32_1 = arith.constant 0 : i32
    %c0_i32_2 = arith.constant 0 : i32
    return %c0_i32, %c0_i32_0, %c0_i32_1 : i32, i32, i32
  }
  func.func @transform_11(%arg0: i32) -> (i32, i32, i32) {
    %c0_i32 = arith.constant 0 : i32
    %c0_i32_0 = arith.constant 0 : i32
    %c0_i32_1 = arith.constant 0 : i32
    %c0_i32_2 = arith.constant 0 : i32
    return %c0_i32, %c0_i32_0, %c0_i32_1 : i32, i32, i32
  }
  func.func @transform_12(%arg0: i32) -> (i32, i32, i32) {
    %c0_i32 = arith.constant 0 : i32
    %c0_i32_0 = arith.constant 0 : i32
    %c0_i32_1 = arith.constant 0 : i32
    %c0_i32_2 = arith.constant 0 : i32
    return %c0_i32, %c0_i32_0, %c0_i32_1 : i32, i32, i32
  }
  func.func @transform_13(%arg0: i32) -> (i32, i32, i32) {
    %c0_i32 = arith.constant 0 : i32
    %c0_i32_0 = arith.constant 0 : i32
    %c0_i32_1 = arith.constant 0 : i32
    %c0_i32_2 = arith.constant 0 : i32
    return %c0_i32, %c0_i32_0, %c0_i32_1 : i32, i32, i32
  }
  func.func @transform_14(%arg0: i32) -> (i32, i32, i32) {
    %c0_i32 = arith.constant 0 : i32
    %c0_i32_0 = arith.constant 0 : i32
    %c0_i32_1 = arith.constant 0 : i32
    %c0_i32_2 = arith.constant 0 : i32
    return %c0_i32, %c0_i32_0, %c0_i32_1 : i32, i32, i32
  }
  func.func @transform_15(%arg0: i32) -> (i32, i32, i32) {
    %c0_i32 = arith.constant 0 : i32
    %c0_i32_0 = arith.constant 0 : i32
    %c0_i32_1 = arith.constant 0 : i32
    %c0_i32_2 = arith.constant 0 : i32
    return %c0_i32, %c0_i32_0, %c0_i32_1 : i32, i32, i32
  }
  func.func @transform_16(%arg0: i32) -> (i32, i32) {
    %c0_i32 = arith.constant 0 : i32
    %c0_i32_0 = arith.constant 0 : i32
    %c0_i32_1 = arith.constant 0 : i32
    return %c0_i32, %c0_i32_0 : i32, i32
  }
  func.func @transform_17(%arg0: i32) -> (i32, i32) {
    %c0_i32 = arith.constant 0 : i32
    %c0_i32_0 = arith.constant 0 : i32
    %c0_i32_1 = arith.constant 0 : i32
    return %c0_i32, %c0_i32_0 : i32, i32
  }
  func.func @transform_18(%arg0: i32) -> (i32, i32) {
    %c0_i32 = arith.constant 0 : i32
    %c0_i32_0 = arith.constant 0 : i32
    %c0_i32_1 = arith.constant 0 : i32
    return %c0_i32, %c0_i32_0 : i32, i32
  }
  func.func @transform_19(%arg0: i32) -> (i32, i32) {
    %c0_i32 = arith.constant 0 : i32
    %c0_i32_0 = arith.constant 0 : i32
    %c0_i32_1 = arith.constant 0 : i32
    return %c0_i32, %c0_i32_0 : i32, i32
  }
  func.func @transform_20(%arg0: i32) -> (i32, i32) {
    %c0_i32 = arith.constant 0 : i32
    %c0_i32_0 = arith.constant 0 : i32
    %c0_i32_1 = arith.constant 0 : i32
    return %c0_i32, %c0_i32_0 : i32, i32
  }
  func.func @transform_21(%arg0: i32) -> (i32, i32) {
    %c0_i32 = arith.constant 0 : i32
    %c0_i32_0 = arith.constant 0 : i32
    %c0_i32_1 = arith.constant 0 : i32
    return %c0_i32, %c0_i32_0 : i32, i32
  }
}

</mosaic_0001>

<bundles_post_ra>
// kernel: vit_encoder_forward.1
= control target key start
LH: loop header
LB: loop body
LE: loop exit
PB: predicated region body
PF: predicated region fallthrough
CT: control target
= control target key end

     0   :  { %vm81_vm0 = vcmask 130048   ;;  %vm198_vm1 = vcmask 261120   ;;  %vm302_vm2 = vcmask 64512   ;;  %s6553_s22 = smov 120   ;;  %s7768_s24 = smov 112   ;;  %vm1131_vm4 = vcmask 195584   ;;  %s7723_s1 = inlined_call_operand.vmem [shape: f32[16,32], index: 1, kind: input, shape index: {}]   ;;  %s7724_s0 = inlined_call_operand.vmem [shape: f32[32,16], index: 0, kind: input, shape index: {}]   ;;  %s7725_s4 = inlined_call_operand.vmem [shape: f32[2,32,96], index: 4, kind: input, shape index: {}]   ;;  %s7726_s2 = inlined_call_operand.vmem [shape: f32[1,32], index: 2, kind: input, shape index: {}]   ;;  %s7727_s3 = inlined_call_operand.vmem [shape: f32[32,32], index: 3, kind: input, shape index: {}]   ;;  %s7728_s5 = inlined_call_operand.vmem [shape: f32[2,1,96], index: 5, kind: input, shape index: {}]   ;;  %s7729_s6 = inlined_call_operand.vmem [shape: f32[2,32,32], index: 6, kind: input, shape index: {}]   ;;  %s7730_s7 = inlined_call_operand.vmem [shape: f32[2,1,32], index: 7, kind: input, shape index: {}]   ;;  %s7731_s10 = inlined_call_operand.vmem [shape: f32[2,32,128], index: 10, kind: input, shape index: {}]   ;;  %s7732_s8 = inlined_call_operand.vmem [shape: f32[2,1,32], index: 8, kind: input, shape index: {}]   ;;  %s7733_s9 = inlined_call_operand.vmem [shape: f32[2,1,32], index: 9, kind: input, shape index: {}]   ;;  %s7734_s12 = inlined_call_operand.vmem [shape: f32[2,128,32], index: 12, kind: input, shape index: {}]   ;;  %s7735_s11 = inlined_call_operand.vmem [shape: f32[2,1,128], index: 11, kind: input, shape index: {}]   ;;  %s7736_s13 = inlined_call_operand.vmem [shape: f32[2,1,32], index: 13, kind: input, shape index: {}]   ;;  %s7737_s14 = inlined_call_operand.vmem [shape: f32[2,1,32], index: 14, kind: input, shape index: {}]   ;;  %s7738_s15 = inlined_call_operand.vmem [shape: f32[2,1,32], index: 15, kind: input, shape index: {}]   ;;  %s7739_s16 = inlined_call_operand.vmem [shape: f32[32,128], index: 16, kind: input, shape index: {}]   ;;  %s7740_s18 = inlined_call_operand.vmem [shape: f32[32,128], index: 18, kind: input, shape index: {}]   ;;  %s7741_s20 = inlined_call_operand.vmem [shape: f32[128,8], index: 20, kind: input, shape index: {}]   ;;  %s7742_s19 = inlined_call_operand.vmem [shape: f32[2,32], index: 19, kind: input, shape index: {}]   ;;  %s7743_s17 = inlined_call_operand.vmem [shape: f32[1,8], index: 17, kind: input, shape index: {}]   ;;  %s7744_s21 = inlined_call_operand.vmem [shape: f32[2,8], index: 21, kind: output, shape index: {}]  }
   0x1   :  { %7772 = sst [smem:[#allocation2_spill]] %s7723_s1  ;;  %s7752_s25 = smov 104   ;;  %vm6776_vm3 = vmpackc.low %vm302_vm2, %vm302_vm2  ;;  %vm6568_vm5 = vmmov 0   ;;  %vm5007_vm6 = vcmask 58368  }
   0x2   :  { %7773 = sst [smem:[#allocation3_spill]] %s7724_s0  ;;  %s7778_s26 = sld [smem:[#allocation2_spill]] }
   0x3   :  { %7774 = sst [smem:[#allocation4_spill]] %s7725_s4  ;;  %s7779_s1 = sld [smem:[#allocation3_spill]] }
   0x4   :  { %7775 = sst [smem:[#allocation5_spill]] %s7726_s2  ;;  %s7770_s0 = smov 80  }
   0x5   :  { %7776 = sst [smem:[#allocation6_spill]] %s7727_s3  ;;  %s7781_s23 = sld [smem:[#allocation5_spill]] }
   0x6   :  { %7777 = sst [smem:[#allocation7_spill]] %s7728_s5  ;;  %s7780_s5 = sld [smem:[#allocation4_spill]] }
   0x7   :  { %s7782_s4 = sld [smem:[#allocation6_spill]]  ;;  %s7783_s30 = sld [smem:[#allocation7_spill]] }
   0x8   :  { %v72_v0 = vld [vmem:[%s7778_s26] sm:$0xff]  ;;  %v73_v1 = vld [vmem:[%s7778_s26 + $0x8] sm:$0xff]  ;;  %s7750_s26 = smov 40   ;;  %s7766_s27 = smov 64  }
   0x9   :  { %v68_v2 = vld [vmem:[%s7779_s1] sm:$0xff]  ;;  %v5902_v3 = vpack.c.bf16 %v73_v1, %v72_v0  ;;  %v69_v7 = vld [vmem:[%s7779_s1 + $0x8] sm:$0xff]  ;;  %v70_v11 = vld [vmem:[%s7779_s1 + $0x10] sm:$0xff]  ;;  %s7758_s2 = smov 48   ;;  %s7756_s28 = smov 56  }
   0xa   :  { %5452 = vmatprep.mubr.msk.f32.mxu0 %vm81_vm0, %v68_v2  ;;  %v71_v12 = vld [vmem:[%s7779_s1 + $0x18] sm:$0xff]  ;;  %s6560_s1 = smov 96   ;;  %s7764_s29 = smov 8  }
   0xb   :  { %5903 = vmatprep.subr.bf16.mxu0 %v5902_v3  ;;  %v5013_v13 = vld [vmem:[%s7781_s23] ss:$0 sm:$0xff]  ;;  %s6554_s23 = smov 88   ;;  %s7762_s3 = smov 16  }
   0xc   :  { %v187_v4 = vld [vmem:[%s7780_s5] sm:$0xff]  ;;  %v188_v5 = vld [vmem:[%s7780_s5 + $0x8] sm:$0xff]  ;;  %5905 = vmatpush3.bf16.msra.mxu0 %v5902_v3  ;;  %v189_v8 = vld [vmem:[%s7780_s5 + $0x10] sm:$0xff] }
   0xd   :  { %v5906_v6 = vpack.c.bf16 %v188_v5, %v187_v4  ;;  %v190_v9 = vld [vmem:[%s7780_s5 + $0x18] sm:$0xff]  ;;  %v179_v17 = vld [vmem:[%s7782_s4] sm:$0xff]  ;;  %v180_v18 = vld [vmem:[%s7782_s4 + $0x8] sm:$0xff] }
   0xe   :  { %v5910_v10 = vpack.c.bf16 %v190_v9, %v189_v8  ;;  %v182_v23 = vld [vmem:[%s7782_s4 + $0x18] sm:$0xff]  ;;  %v181_v26 = vld [vmem:[%s7782_s4 + $0x10] sm:$0xff]  ;;  %v6748_v30 = vld [vmem:[%s7783_s30] ss:$0 sm:$0xff]  ;;  %s7754_s4 = smov 72  }
   0xf   :  { %5907 = vmatprep.subr.bf16.mxu1 %v5906_v6  ;;  %5453 = vmatmul.mubr.msk.f32.vlgmr.msra.gmra.mrb[0].mxu0 %vm81_vm0, %v69_v7 }
  0x10   :  { %5909 = vmatpush3.bf16.msra.mxu1 %v5906_v6  ;;  %5455 = vmatprep.mubr.msk.f32.mxu0 %vm81_vm0, %v70_v11 }
  0x11   :  { %5911 = vmatprep.subr.bf16.mxu1 %v5910_v10 }
  0x13   :  { %5456 = vmatmul.mubr.msk.f32.gmra.mrb[2].mxu0 %vm81_vm0, %v71_v12 }
  0x14   :  { %5913 = vmatpush3.bf16.msra.mxu1 %v5910_v10 }
  0xe2   :  { %v5454_v14 = vpop.f32.mrb[0].mxu0 }
  0xe3   :  { %v166_v15 = vadd.f32 %v5454_v14, %v5013_v13  ;;  %v160_v16 = vpop.f32.mrb[1].mxu0 }
  0xe4   :  { %v161_v19 = vadd.f32 %v5013_v13, %v160_v16 }
  0xe5   :  { %v6725_v21 = vadd.f32 %v180_v18, %v166_v15 }
  0xe6   :  { %v6723_v20 = vadd.f32 %v179_v17, %v161_v19  ;;  %v5457_v22 = vpop.f32.mrb[2].mxu0 }
  0xe7   :  { %v176_v24 = vadd.f32 %v5457_v22, %v5013_v13  ;;  %v170_v25 = vpop.f32.mrb[3].mxu0 }
  0xe8   :  { %5466 = vmatprep.mubr.msk.f32.mxu1 %vm198_vm1, %v6723_v20  ;;  %v171_v27 = vadd.f32 %v5013_v13, %v170_v25 }
  0xe9   :  { %5467 = vmatmul.mubr.msk.f32.vlgmr.msra.gmra.mrb[0].mxu1 %vm198_vm1, %v6725_v21  ;;  %v6737_v28 = vadd.f32 %v182_v23, %v176_v24 }
  0xea   :  { %v6739_v29 = vadd.f32 %v181_v26, %v171_v27 }
  0xec   :  { %5469 = vmatprep.mubr.msk.f32.mxu1 %vm198_vm1, %v6739_v29 }
  0xed   :  { %5470 = vmatmul.mubr.msk.f32.gmra.mrb[2].mxu1 %vm198_vm1, %v6737_v28 }
 0x1bc   :  { %v5468_v31 = vpop.f32.mrb[0].mxu1 }
 0x1bd   :  { %v6751_v32 = vadd.f32 %v5468_v31, %v6748_v30  ;;  %v277_v33 = vpop.f32.mrb[1].mxu1 }
 0x1be   :  { %v278_v34 = vadd.f32 %v6748_v30, %v277_v33 }
 0x1c0   :  { %497 = vrot.lane.b32.xlu1 %v278_v34, %s6553_s22  ;;  %5476 = vmatprep.mubr.msk.f32.mxu0 %vm302_vm2, %v278_v34  ;;  %v6757_v35 = vpack.i.bf16 %v6751_v32, %v278_v34  ;;  %v5471_v36 = vpop.f32.mrb[2].mxu1 }
 0x1c1   :  { %v287_v37 = vpop.f32.mrb[3].mxu1  ;;  %v6810_v13 = vadd.f32 %v5471_v36, %v6748_v30 }
 0x1c2   :  { %6234 = vrot.lane.b32.xlu0 %v6757_v35, %s6554_s23  ;;  %v6813_v14 = vadd.f32 %v6748_v30, %v287_v37 }
 0x1c4   :  { %499 = vrot.lane.b32.xlu1 %v6751_v32, %s6553_s22  ;;  %v6819_v15 = vpack.i.bf16 %v6810_v13, %v6813_v14 }
 0x1c6   :  { %6239 = vrot.lane.b32.xlu0 %v6757_v35, %s7770_s0 }
 0x1c8   :  { %699 = vrot.lane.b32.xlu1 %v278_v34, %s7768_s24 }
 0x1ca   :  { %6244 = vrot.lane.b32.xlu0 %v6757_v35, %s7754_s4 }
 0x1cc   :  { %901 = vrot.lane.b32.xlu1 %v278_v34, %s7752_s25 }
 0x1ce   :  { %701 = vrot.lane.b32.xlu0 %v6751_v32, %s7768_s24 }
 0x1d2   :  { %903 = vrot.lane.b32.xlu0 %v6751_v32, %s7752_s25 }
 0x232   :  { %v498_v38 = vpop.permute.xlu1 %497 }
 0x233   :  { %5490 = vmatprep.mubr.msk.f32.mxu1 %vm302_vm2, %v498_v38 }
 0x234   :  { %v6235_v39 = vpop.permute.xlu0 %6234 }
 0x235   :  { %v6237_v40 = vunpack.i.h.bf16 %v6235_v39  ;;  %v6236_v41 = vunpack.i.l.bf16 %v6235_v39 }
 0x236   :  { %v500_v47 = vpop.permute.xlu1 %499 }
 0x237   :  { %v5924_v43 = vpack.c.bf16 %v6237_v40, %v6236_v41 }
 0x238   :  { %v6240_v44 = vpop.permute.xlu0 %6239 }
 0x239   :  { %v6242_v45 = vunpack.i.h.bf16 %v6240_v44  ;;  %v6241_v46 = vunpack.i.l.bf16 %v6240_v44  ;;  %5926 = vmatprep.subr.msk.bf16.mxu1 %vm6776_vm3, %v5924_v43 }
 0x23a   :  { %5929 = vmatpush3.bf16.xpose.msk.msra.mxu1 %vm6776_vm3, %v5924_v43  ;;  %v700_v52 = vpop.permute.xlu1 %699 }
 0x23b   :  { %v5934_v48 = vpack.c.bf16 %v6242_v45, %v6241_v46 }
 0x23c   :  { %v6245_v49 = vpop.permute.xlu0 %6244 }
 0x23d   :  { %v6247_v50 = vunpack.i.h.bf16 %v6245_v49  ;;  %v6246_v51 = vunpack.i.l.bf16 %v6245_v49  ;;  %5936 = vmatprep.subr.msk.bf16.mxu1 %vm6776_vm3, %v5934_v48 }
 0x23e   :  { %v902_v55 = vpop.permute.xlu1 %901 }
 0x23f   :  { %v5944_v53 = vpack.c.bf16 %v6247_v50, %v6246_v51 }
 0x240   :  { %v702_v54 = vpop.permute.xlu0 %701 }
 0x241   :  { %5491 = vmatmul.mubr.msk.f32.vlgmr.msra.gmra.mrb[4].mxu1 %vm302_vm2, %v500_v47 }
 0x242   :  { %5939 = vmatpush3.bf16.xpose.msk.msra.mxu1 %vm6776_vm3, %v5934_v48  ;;  %5504 = vmatprep.mubr.msk.f32.mxu1 %vm302_vm2, %v700_v52 }
 0x243   :  { %5946 = vmatprep.subr.msk.bf16.mxu1 %vm6776_vm3, %v5944_v53 }
 0x244   :  { %v904_v56 = vpop.permute.xlu0 %903 }
 0x249   :  { %5505 = vmatmul.mubr.msk.f32.vlgmr.msra.gmra.mrb[6].mxu1 %vm302_vm2, %v702_v54 }
 0x24a   :  { %5949 = vmatpush3.bf16.xpose.msk.msra.mxu1 %vm6776_vm3, %v5944_v53  ;;  %5518 = vmatprep.mubr.msk.f32.mxu1 %vm302_vm2, %v902_v55 }
 0x251   :  { %5519 = vmatmul.mubr.msk.f32.vlgmr.msra.gmra.mrb[8].mxu1 %vm302_vm2, %v904_v56 }
 0x314   :  { %v6797_v57 = vpop.f32.mrb[4].mxu1 }
 0x315   :  { %v6799_v58 = vpop.f32.mrb[5].mxu1  ;;  %v589_v51 = vmul.f32 0.35355338, %v6797_v57 }
 0x31c   :  { %v6801_v59 = vpop.f32.mrb[6].mxu1 }
 0x31d   :  { %v6803_v60 = vpop.f32.mrb[7].mxu1  ;;  %v791_v56 = vmul.f32 0.35355338, %v6801_v59 }
 0x31e   :  { %v790_v47 = vmul.f32 0.35355338, %v6803_v60  ;;  %v593_v60 = vsel %vm81_vm0, %v589_v51, -inf }
 0x31f   :  { %v795_v57 = vsel %vm81_vm0, %v791_v56, -inf }
 0x320   :  { %v792_v50 = vsel %vm81_vm0, %v790_v47, -inf }
 0x324   :  { %v5520_v61 = vpop.f32.mrb[8].mxu1 }
 0x325   :  { %v993_v62 = vmul.f32 0.35355338, %v5520_v61  ;;  %v983_v63 = vpop.f32.mrb[9].mxu1 }
 0x326   :  { %v992_v0 = vmul.f32 0.35355338, %v983_v63 }
 0x327   :  { %v997_v1 = vsel %vm81_vm0, %v993_v62, -inf }
 0x328   :  { %998 = vmax.xlane.f32.xlu0 %v997_v1  ;;  %v994_v2 = vsel %vm81_vm0, %v992_v0, -inf }
 0x329   :  { %995 = vmax.xlane.f32.xlu1 %v994_v2 }
 0x3b5   :  { %v999_v3 = vpop.xlane.xlu0 %998 }
 0x3b6   :  { %v1001_v4 = vsub.f32 %v993_v62, %v999_v3  ;;  %v996_v5 = vpop.xlane.xlu1 %995 }
 0x3b7   :  { %v1000_v6 = vsub.f32 %v992_v0, %v996_v5 }
 0x3b8   :  { %v1004_v7 = vmul.f32 1.442695, %v1001_v4 }
 0x3b9   :  { %v1002_v8 = vmul.f32 1.442695, %v1000_v6 }
 0x3ba   :  { %6393 = vpow2.f32 %v1004_v7 }
 0x3bb   :  { %6395 = vpow2.f32 %v1002_v8 }
 0x3c4   :  { %v6394_v9 = vpop.eup %6393 }
 0x3c5   :  { %v6396_v10 = vpop.eup %6395  ;;  %v1009_v11 = vsel %vm81_vm0, %v6394_v9, 0.0 }
 0x3c6   :  { %1010 = vadd.xlane.f32.xlu1 %v1009_v11  ;;  %v1006_v12 = vsel %vm81_vm0, %v6396_v10, 0.0 }
 0x3c7   :  { %1007 = vadd.xlane.f32.xlu0 %v1006_v12 }
 0x3d7   :  { %6254 = vrot.lane.b32.xlu1 %v6757_v35, %s7750_s26 }
 0x3db   :  { %6259 = vrot.lane.b32.xlu1 %v6819_v15, %s6560_s1 }
 0x3dd   :  { %6249 = vrot.lane.b32.xlu0 %v6757_v35, %s6560_s1 }
 0x453   :  { %v1011_v16 = vpop.xlane.xlu1 %1010 }
 0x454   :  { %6397 = vrcp.f32 %v1011_v16  ;;  %v1008_v17 = vpop.xlane.xlu0 %1007 }
 0x455   :  { %6399 = vrcp.f32 %v1008_v17 }
 0x457   :  { %v6255_v18 = vpop.permute.xlu1 %6254 }
 0x458   :  { %v6257_v19 = vunpack.i.h.bf16 %v6255_v18  ;;  %v6256_v22 = vunpack.i.l.bf16 %v6255_v18  ;;  %v6250_v23 = vpop.permute.xlu0 %6249 }
 0x459   :  { %v6252_v24 = vunpack.i.h.bf16 %v6250_v23  ;;  %v6251_v25 = vunpack.i.l.bf16 %v6250_v23 }
 0x45a   :  { %v5950_v26 = vpack.c.bf16 %v6257_v19, %v6256_v22 }
 0x45b   :  { %v5914_v27 = vpack.c.bf16 %v6252_v24, %v6251_v25  ;;  %v6260_v30 = vpop.permute.xlu1 %6259 }
 0x45c   :  { %v6262_v31 = vunpack.i.h.bf16 %v6260_v30  ;;  %v6261_v33 = vunpack.i.l.bf16 %v6260_v30  ;;  %5951 = vmatprep.subr.bf16.mxu1 %v5950_v26 }
 0x45d   :  { %5916 = vmatprep.subr.msk.bf16.mxu0 %vm6776_vm3, %v5914_v27  ;;  %5953 = vmatpush3.bf16.msra.mxu1 %v5950_v26 }
 0x45e   :  { %v6398_v34 = vpop.eup %6397  ;;  %v5954_v36 = vpack.c.bf16 %v6262_v31, %v6261_v33  ;;  %5919 = vmatpush3.bf16.xpose.msk.msra.mxu0 %vm6776_vm3, %v5914_v27 }
 0x45f   :  { %v6400_v37 = vpop.eup %6399  ;;  %v1015_v39 = vmul.f32 %v6398_v34, %v6394_v9 }
 0x460   :  { %5956 = vmatprep.subr.msk.bf16.mxu1 %vm6776_vm3, %v5954_v36  ;;  %v1014_v38 = vmul.f32 %v6400_v37, %v6396_v10 }
 0x462   :  { %5525 = vmatprep.mubr.msk.f32.mxu1 %vm81_vm0, %v1014_v38 }
 0x463   :  { %5526 = vmatmul.mubr.msk.f32.vlgmr.msra.gmra.mrb[10].mxu1 %vm81_vm0, %v1015_v39 }
 0x464   :  { %5532 = vmatprep.mubr.msk.f32.mxu1 %vm302_vm2, %v6813_v14 }
 0x465   :  { %5477 = vmatmul.mubr.msk.f32.vlgmr.msra.gmra.mrb[4].mxu0 %vm302_vm2, %v6751_v32  ;;  %v588_v32 = vmul.f32 0.35355338, %v6799_v58 }
 0x466   :  { %5959 = vmatpush3.bf16.xpose.msk.msra.mxu1 %vm6776_vm3, %v5954_v36 }
 0x467   :  { %v590_v53 = vsel %vm81_vm0, %v588_v32, -inf }
 0x46d   :  { %5533 = vmatmul.mubr.msk.f32.vlgmr.msra.gmra.mrb[12].mxu1 %vm302_vm2, %v6810_v13 }
 0x536   :  { %v6841_v40 = vpop.f32.mrb[10].mxu1 }
 0x537   :  { %v6843_v41 = vpop.f32.mrb[11].mxu1 }
 0x538   :  { %v5478_v43 = vpop.f32.mrb[4].mxu0 }
 0x539   :  { %v387_v44 = vmul.f32 0.35355338, %v5478_v43  ;;  %v377_v45 = vpop.f32.mrb[5].mxu0 }
 0x53a   :  { %v386_v46 = vmul.f32 0.35355338, %v377_v45 }
 0x53b   :  { %v391_v48 = vsel %vm81_vm0, %v387_v44, -inf }
 0x53c   :  { %392 = vmax.xlane.f32.xlu1 %v391_v48  ;;  %v388_v49 = vsel %vm81_vm0, %v386_v46, -inf }
 0x53d   :  { %389 = vmax.xlane.f32.xlu0 %v388_v49 }
 0x540   :  { %v5534_v52 = vpop.f32.mrb[12].mxu1  ;;  %793 = vmax.xlane.f32.xlu1 %v792_v50 }
 0x541   :  { %v1214_v54 = vpop.f32.mrb[13].mxu1  ;;  %591 = vmax.xlane.f32.xlu0 %v590_v53  ;;  %v1224_v61 = vmul.f32 0.35355338, %v5534_v52 }
 0x542   :  { %v6852_v55 = vmul.f32 0.35355338, %v1214_v54 }
 0x543   :  { %v1228_v62 = vsel %vm81_vm0, %v1224_v61, -inf }
 0x544   :  { %v1225_v58 = vsel %vm81_vm0, %v6852_v55, -inf }
 0x545   :  { %1226 = vmax.xlane.f32.xlu1 %v1225_v58  ;;  %594 = vmax.xlane.f32.xlu0 %v593_v60 }
 0x549   :  { %796 = vmax.xlane.f32.xlu0 %v795_v57 }
 0x54d   :  { %1229 = vmax.xlane.f32.xlu0 %v1228_v62 }
 0x5c9   :  { %v393_v63 = vpop.xlane.xlu1 %392 }
 0x5ca   :  { %v395_v0 = vsub.f32 %v387_v44, %v393_v63  ;;  %v390_v1 = vpop.xlane.xlu0 %389 }
 0x5cb   :  { %v394_v2 = vsub.f32 %v386_v46, %v390_v1 }
 0x5cc   :  { %v398_v3 = vmul.f32 1.442695, %v395_v0 }
 0x5cd   :  { %v396_v59 = vmul.f32 1.442695, %v394_v2  ;;  %v794_v4 = vpop.xlane.xlu1 %793 }
 0x5ce   :  { %6401 = vpow2.f32 %v398_v3  ;;  %v798_v5 = vsub.f32 %v790_v47, %v794_v4  ;;  %v592_v6 = vpop.xlane.xlu0 %591 }
 0x5cf   :  { %6403 = vpow2.f32 %v396_v59  ;;  %v596_v7 = vsub.f32 %v588_v32, %v592_v6 }
 0x5d0   :  { %v800_v8 = vmul.f32 1.442695, %v798_v5 }
 0x5d1   :  { %v598_v9 = vmul.f32 1.442695, %v596_v7 }
 0x5d2   :  { %v595_v10 = vpop.xlane.xlu0 %594  ;;  %v1227_v38 = vpop.xlane.xlu1 %1226 }
 0x5d3   :  { %6405 = vpow2.f32 %v598_v9  ;;  %v597_v11 = vsub.f32 %v589_v51, %v595_v10  ;;  %v1231_v43 = vsub.f32 %v6852_v55, %v1227_v38 }
 0x5d4   :  { %6407 = vpow2.f32 %v800_v8 }
 0x5d5   :  { %v600_v12 = vmul.f32 1.442695, %v597_v11  ;;  %v1233_v45 = vmul.f32 1.442695, %v1231_v43 }
 0x5d6   :  { %v797_v16 = vpop.xlane.xlu0 %796 }
 0x5d7   :  { %v799_v17 = vsub.f32 %v791_v56, %v797_v16  ;;  %6409 = vpow2.f32 %v600_v12 }
 0x5d8   :  { %v6860_v18 = vpop.eup %6401 }
 0x5d9   :  { %v6404_v19 = vpop.eup %6403  ;;  %v802_v22 = vmul.f32 1.442695, %v799_v17  ;;  %v403_v23 = vsel %vm81_vm0, %v6860_v18, 0.0 }
 0x5da   :  { %404 = vadd.xlane.f32.xlu0 %v403_v23  ;;  %v400_v24 = vsel %vm81_vm0, %v6404_v19, 0.0  ;;  %v1230_v37 = vpop.xlane.xlu0 %1229 }
 0x5db   :  { %6411 = vpow2.f32 %v802_v22  ;;  %401 = vadd.xlane.f32.xlu1 %v400_v24  ;;  %v1232_v39 = vsub.f32 %v1224_v61, %v1230_v37 }
 0x5dd   :  { %v6865_v25 = vpop.eup %6405  ;;  %v1235_v44 = vmul.f32 1.442695, %v1232_v39 }
 0x5de   :  { %v602_v26 = vsel %vm81_vm0, %v6865_v25, 0.0  ;;  %v6869_v27 = vpop.eup %6407 }
 0x5df   :  { %603 = vadd.xlane.f32.xlu1 %v602_v26  ;;  %v804_v31 = vsel %vm81_vm0, %v6869_v27, 0.0  ;;  %6413 = vpow2.f32 %v1235_v44 }
 0x5e0   :  { %6415 = vpow2.f32 %v1233_v45 }
 0x5e1   :  { %v6871_v30 = vpop.eup %6409 }
 0x5e2   :  { %v605_v33 = vsel %vm81_vm0, %v6871_v30, 0.0 }
 0x5e3   :  { %805 = vadd.xlane.f32.xlu1 %v804_v31  ;;  %606 = vadd.xlane.f32.xlu0 %v605_v33 }
 0x5e5   :  { %v6877_v34 = vpop.eup %6411 }
 0x5e6   :  { %v807_v36 = vsel %vm81_vm0, %v6877_v34, 0.0 }
 0x5e7   :  { %808 = vadd.xlane.f32.xlu0 %v807_v36 }
 0x5e9   :  { %v6890_v46 = vpop.eup %6413 }
 0x5ea   :  { %v6892_v47 = vpop.eup %6415  ;;  %v1240_v48 = vsel %vm81_vm0, %v6890_v46, 0.0 }
 0x5f4   :  { %6264 = vrot.lane.b32.xlu1 %v6757_v35, %s7766_s27 }
 0x5f8   :  { %6274 = vrot.lane.b32.xlu1 %v6757_v35, %s7758_s2 }
 0x5fc   :  { %6279 = vrot.lane.b32.xlu1 %v6819_v15, %s7766_s27  ;;  %s7788_s27 = smov 64  }
 0x5fd   :  { %6269 = vrot.lane.b32.xlu0 %v6757_v35, %s7756_s28  ;;  %v1237_v35 = vsel %vm81_vm0, %v6892_v47, 0.0 }
 0x61c   :  { %1241 = vadd.xlane.f32.xlu0 %v1240_v48 }
 0x620   :  { %1238 = vadd.xlane.f32.xlu1 %v1237_v35 }
 0x631   :  { %1334 = vrot.lane.b32.xlu1 %v6813_v14, %s6553_s22 }
 0x632   :  { %6284 = vrot.lane.b32.xlu0 %v6819_v15, %s6554_s23 }
 0x636   :  { %1336 = vrot.lane.b32.xlu0 %v6810_v13, %s6553_s22 }
 0x667   :  { %v405_v49 = vpop.xlane.xlu0 %404 }
 0x668   :  { %v402_v32 = vpop.xlane.xlu1 %401 }
 0x669   :  { %6417 = vrcp.f32 %v402_v32 }
 0x66a   :  { %6419 = vrcp.f32 %v405_v49 }
 0x66c   :  { %v604_v50 = vpop.xlane.xlu1 %603 }
 0x66d   :  { %6421 = vrcp.f32 %v604_v50 }
 0x670   :  { %v806_v51 = vpop.xlane.xlu1 %805  ;;  %v607_v52 = vpop.xlane.xlu0 %606 }
 0x671   :  { %6423 = vrcp.f32 %v607_v52 }
 0x672   :  { %6425 = vrcp.f32 %v806_v51 }
 0x673   :  { %v6418_v53 = vpop.eup %6417 }
 0x674   :  { %v6265_v54 = vpop.permute.xlu1 %6264  ;;  %v408_v55 = vmul.f32 %v6418_v53, %v6404_v19  ;;  %v809_v60 = vpop.xlane.xlu0 %808 }
 0x675   :  { %v6267_v56 = vunpack.i.h.bf16 %v6265_v54  ;;  %v6266_v58 = vunpack.i.l.bf16 %v6265_v54  ;;  %6427 = vrcp.f32 %v809_v60  ;;  %v6420_v57 = vpop.eup %6419 }
 0x676   :  { %5483 = vmatprep.mubr.msk.f32.mxu0 %vm81_vm0, %v408_v55  ;;  %v409_v4 = vmul.f32 %v6420_v57, %v6860_v18 }
 0x677   :  { %v5920_v61 = vpack.c.bf16 %v6267_v56, %v6266_v58  ;;  %v6422_v63 = vpop.eup %6421 }
 0x678   :  { %v6275_v62 = vpop.permute.xlu1 %6274  ;;  %v6270_v0 = vpop.permute.xlu0 %6269  ;;  %v610_v7 = vmul.f32 %v6422_v63, %v6865_v25 }
 0x679   :  { %5921 = vmatprep.subr.bf16.mxu0 %v5920_v61  ;;  %v6277_v1 = vunpack.i.h.bf16 %v6275_v62  ;;  %v6276_v2 = vunpack.i.l.bf16 %v6275_v62  ;;  %v6272_v3 = vunpack.i.h.bf16 %v6270_v0  ;;  %v6271_v59 = vunpack.i.l.bf16 %v6270_v0 }
 0x67a   :  { %5923 = vmatpush3.bf16.msra.mxu0 %v5920_v61 }
 0x67b   :  { %v5930_v6 = vpack.c.bf16 %v6272_v3, %v6271_v59  ;;  %v6424_v8 = vpop.eup %6423  ;;  %v5940_v12 = vpack.c.bf16 %v6277_v1, %v6276_v2 }
 0x67c   :  { %v6280_v5 = vpop.permute.xlu1 %6279  ;;  %v6426_v9 = vpop.eup %6425  ;;  %v611_v16 = vmul.f32 %v6424_v8, %v6871_v30 }
 0x67d   :  { %5484 = vmatmul.mubr.msk.f32.vlgmr.msra.gmra.mrb[6].mxu0 %vm81_vm0, %v409_v4  ;;  %v6282_v10 = vunpack.i.h.bf16 %v6280_v5  ;;  %v6281_v11 = vunpack.i.l.bf16 %v6280_v5  ;;  %5931 = vmatprep.subr.bf16.mxu0 %v5930_v6  ;;  %v812_v18 = vmul.f32 %v6426_v9, %v6869_v27 }
 0x67e   :  { %5497 = vmatprep.mubr.msk.f32.mxu0 %vm81_vm0, %v610_v7  ;;  %5933 = vmatpush3.bf16.msra.mxu0 %v5930_v6 }
 0x67f   :  { %5941 = vmatprep.subr.bf16.mxu0 %v5940_v12  ;;  %v6428_v17 = vpop.eup %6427  ;;  %v5960_v19 = vpack.c.bf16 %v6282_v10, %v6281_v11 }
 0x680   :  { %v813_v22 = vmul.f32 %v6428_v17, %v6877_v34 }
 0x681   :  { %5498 = vmatmul.mubr.msk.f32.vlgmr.msra.gmra.mrb[8].mxu0 %vm81_vm0, %v611_v16 }
 0x682   :  { %5943 = vmatpush3.bf16.msra.mxu0 %v5940_v12  ;;  %5511 = vmatprep.mubr.msk.f32.mxu0 %vm81_vm0, %v812_v18 }
 0x683   :  { %5961 = vmatprep.subr.bf16.mxu0 %v5960_v19 }
 0x685   :  { %5512 = vmatmul.mubr.msk.f32.vlgmr.msra.gmra.mrb[10].mxu0 %vm81_vm0, %v813_v22 }
 0x686   :  { %5963 = vmatpush3.bf16.msra.mxu0 %v5960_v19 }
 0x6a9   :  { %v1242_v23 = vpop.xlane.xlu0 %1241 }
 0x6aa   :  { %6429 = vrcp.f32 %v1242_v23 }
 0x6ad   :  { %v1239_v24 = vpop.xlane.xlu1 %1238  ;;  %v6285_v25 = vpop.permute.xlu0 %6284 }
 0x6ae   :  { %6431 = vrcp.f32 %v1239_v24  ;;  %v6287_v26 = vunpack.i.h.bf16 %v6285_v25  ;;  %v6286_v30 = vunpack.i.l.bf16 %v6285_v25 }
 0x6b0   :  { %v5964_v27 = vpack.c.bf16 %v6287_v26, %v6286_v30 }
 0x6b1   :  { %v1335_v37 = vpop.permute.xlu1 %1334  ;;  %v1337_v38 = vpop.permute.xlu0 %1336 }
 0x6b2   :  { %5966 = vmatprep.subr.msk.bf16.mxu0 %vm6776_vm3, %v5964_v27 }
 0x6b4   :  { %v6430_v31 = vpop.eup %6429 }
 0x6b5   :  { %v1246_v34 = vmul.f32 %v6430_v31, %v6890_v46 }
 0x6b8   :  { %v6432_v33 = vpop.eup %6431 }
 0x6b9   :  { %v1245_v36 = vmul.f32 %v6432_v33, %v6892_v47 }
 0x6bb   :  { %5539 = vmatprep.mubr.msk.f32.mxu0 %vm81_vm0, %v1245_v36 }
 0x6bc   :  { %5540 = vmatmul.mubr.msk.f32.vlgmr.msra.gmra.mrb[12].mxu0 %vm81_vm0, %v1246_v34 }
 0x6bd   :  { %5969 = vmatpush3.bf16.xpose.msk.msra.mxu0 %vm6776_vm3, %v5964_v27  ;;  %5546 = vmatprep.mubr.msk.f32.mxu0 %vm302_vm2, %v1335_v37 }
 0x6c4   :  { %5547 = vmatmul.mubr.msk.f32.vlgmr.msra.gmra.mrb[14].mxu0 %vm302_vm2, %v1337_v38 }
 0x750   :  { %v6925_v39 = vpop.f32.mrb[6].mxu0 }
 0x751   :  { %v6927_v43 = vpop.f32.mrb[7].mxu0 }
 0x754   :  { %v6929_v44 = vpop.f32.mrb[8].mxu0 }
 0x755   :  { %v6931_v45 = vpop.f32.mrb[9].mxu0 }
 0x758   :  { %v6933_v46 = vpop.f32.mrb[10].mxu0 }
 0x759   :  { %v6935_v47 = vpop.f32.mrb[11].mxu0 }
 0x78f   :  { %v6937_v48 = vpop.f32.mrb[12].mxu0 }
 0x790   :  { %v6939_v35 = vpop.f32.mrb[13].mxu0 }
 0x797   :  { %v5548_v32 = vpop.f32.mrb[14].mxu0 }
 0x798   :  { %v1426_v49 = vmul.f32 0.35355338, %v5548_v32  ;;  %v1416_v50 = vpop.f32.mrb[15].mxu0 }
 0x799   :  { %v1425_v51 = vmul.f32 0.35355338, %v1416_v50 }
 0x79a   :  { %v1430_v52 = vsel %vm81_vm0, %v1426_v49, -inf }
 0x79b   :  { %1431 = vmax.xlane.f32.xlu0 %v1430_v52  ;;  %v1427_v53 = vsel %vm81_vm0, %v1425_v51, -inf }
 0x79c   :  { %1428 = vmax.xlane.f32.xlu1 %v1427_v53 }
 0x828   :  { %v1432_v54 = vpop.xlane.xlu0 %1431 }
 0x829   :  { %v1434_v55 = vsub.f32 %v1426_v49, %v1432_v54  ;;  %v1429_v56 = vpop.xlane.xlu1 %1428 }
 0x82a   :  { %v1433_v58 = vsub.f32 %v1425_v51, %v1429_v56 }
 0x82b   :  { %v1437_v60 = vmul.f32 1.442695, %v1434_v55 }
 0x82c   :  { %v1435_v61 = vmul.f32 1.442695, %v1433_v58 }
 0x82d   :  { %6433 = vpow2.f32 %v1437_v60 }
 0x82e   :  { %6435 = vpow2.f32 %v1435_v61 }
 0x837   :  { %v6434_v57 = vpop.eup %6433 }
 0x838   :  { %v6436_v62 = vpop.eup %6435  ;;  %v1442_v63 = vsel %vm81_vm0, %v6434_v57, 0.0 }
 0x839   :  { %1443 = vadd.xlane.f32.xlu1 %v1442_v63  ;;  %v1439_v0 = vsel %vm81_vm0, %v6436_v62, 0.0 }
 0x83a   :  { %1440 = vadd.xlane.f32.xlu0 %v1439_v0 }
 0x84a   :  { %6294 = vrot.lane.b32.xlu1 %v6819_v15, %s7770_s0 }
 0x84e   :  { %1536 = vrot.lane.b32.xlu1 %v6813_v14, %s7768_s24 }
 0x850   :  { %6289 = vrot.lane.b32.xlu0 %v6819_v15, %s7756_s28  ;;  %s7793_s28 = smov 40  }
 0x854   :  { %1538 = vrot.lane.b32.xlu0 %v6810_v13, %s7768_s24 }
 0x8c6   :  { %v1444_v1 = vpop.xlane.xlu1 %1443 }
 0x8c7   :  { %6437 = vrcp.f32 %v1444_v1  ;;  %v1441_v2 = vpop.xlane.xlu0 %1440 }
 0x8c8   :  { %6439 = vrcp.f32 %v1441_v2 }
 0x8ca   :  { %v6295_v3 = vpop.permute.xlu1 %6294 }
 0x8cb   :  { %v6290_v59 = vpop.permute.xlu0 %6289  ;;  %v6297_v4 = vunpack.i.h.bf16 %v6295_v3  ;;  %v6296_v5 = vunpack.i.l.bf16 %v6295_v3 }
 0x8cc   :  { %v6292_v6 = vunpack.i.h.bf16 %v6290_v59  ;;  %v6291_v7 = vunpack.i.l.bf16 %v6290_v59 }
 0x8cd   :  { %v5974_v9 = vpack.c.bf16 %v6297_v4, %v6296_v5 }
 0x8ce   :  { %v5970_v8 = vpack.c.bf16 %v6292_v6, %v6291_v7  ;;  %v1537_v17 = vpop.permute.xlu1 %1536 }
 0x8cf   :  { %v1539_v18 = vpop.permute.xlu0 %1538 }
 0x8d0   :  { %5971 = vmatprep.subr.bf16.mxu1 %v5970_v8 }
 0x8d1   :  { %v6438_v10 = vpop.eup %6437  ;;  %5973 = vmatpush3.bf16.msra.mxu1 %v5970_v8 }
 0x8d2   :  { %v6440_v11 = vpop.eup %6439  ;;  %5976 = vmatprep.subr.msk.bf16.mxu1 %vm6776_vm3, %v5974_v9  ;;  %v1448_v16 = vmul.f32 %v6438_v10, %v6434_v57 }
 0x8d3   :  { %v1447_v12 = vmul.f32 %v6440_v11, %v6436_v62 }
 0x8d5   :  { %5553 = vmatprep.mubr.msk.f32.mxu1 %vm81_vm0, %v1447_v12 }
 0x8d6   :  { %5554 = vmatmul.mubr.msk.f32.vlgmr.msra.gmra.mrb[14].mxu1 %vm81_vm0, %v1448_v16 }
 0x8d7   :  { %5560 = vmatprep.mubr.msk.f32.mxu1 %vm302_vm2, %v1537_v17 }
 0x8da   :  { %5979 = vmatpush3.bf16.xpose.msk.msra.mxu1 %vm6776_vm3, %v5974_v9 }
 0x8e1   :  { %5561 = vmatmul.mubr.msk.f32.vlgmr.msra.gmra.mrb[16].mxu1 %vm302_vm2, %v1539_v18 }
 0x9a9   :  { %v6961_v19 = vpop.f32.mrb[14].mxu1 }
 0x9aa   :  { %v6963_v22 = vpop.f32.mrb[15].mxu1 }
 0x9b4   :  { %v5562_v23 = vpop.f32.mrb[16].mxu1 }
 0x9b5   :  { %v1628_v24 = vmul.f32 0.35355338, %v5562_v23  ;;  %v1618_v25 = vpop.f32.mrb[17].mxu1 }
 0x9b6   :  { %v1627_v26 = vmul.f32 0.35355338, %v1618_v25 }
 0x9b7   :  { %v1632_v30 = vsel %vm81_vm0, %v1628_v24, -inf }
 0x9b8   :  { %1633 = vmax.xlane.f32.xlu0 %v1632_v30  ;;  %v1629_v27 = vsel %vm81_vm0, %v1627_v26, -inf }
 0x9b9   :  { %1630 = vmax.xlane.f32.xlu1 %v1629_v27  ;;  %v1970_v27 = vld [vmem:[%s7729_s6] sm:$0xff] }
 0xa45   :  { %v1634_v31 = vpop.xlane.xlu0 %1633 }
 0xa46   :  { %v1636_v33 = vsub.f32 %v1628_v24, %v1634_v31  ;;  %v1631_v36 = vpop.xlane.xlu1 %1630  ;;  %v1971_v31 = vld [vmem:[%s7729_s6 + $0x8] sm:$0xff] }
 0xa47   :  { %v1635_v34 = vsub.f32 %v1627_v26, %v1631_v36 }
 0xa48   :  { %v1639_v37 = vmul.f32 1.442695, %v1636_v33 }
 0xa49   :  { %v1637_v38 = vmul.f32 1.442695, %v1635_v34 }
 0xa4a   :  { %6441 = vpow2.f32 %v1639_v37 }
 0xa4b   :  { %6443 = vpow2.f32 %v1637_v38 }
 0xa54   :  { %v6442_v32 = vpop.eup %6441 }
 0xa55   :  { %v6444_v49 = vpop.eup %6443  ;;  %v1644_v50 = vsel %vm81_vm0, %v6442_v32, 0.0 }
 0xa56   :  { %1645 = vadd.xlane.f32.xlu1 %v1644_v50  ;;  %v1641_v51 = vsel %vm81_vm0, %v6444_v49, 0.0 }
 0xa57   :  { %1642 = vadd.xlane.f32.xlu0 %v1641_v51 }
 0xa67   :  { %6304 = vrot.lane.b32.xlu1 %v6819_v15, %s7754_s4  ;;  %s7790_s4 = smov 56  }
 0xa6b   :  { %1738 = vrot.lane.b32.xlu1 %v6813_v14, %s7752_s25 }
 0xa6d   :  { %6299 = vrot.lane.b32.xlu0 %v6819_v15, %s7758_s2  ;;  %s7792_s2 = smov 104  }
 0xa71   :  { %1740 = vrot.lane.b32.xlu0 %v6810_v13, %s7752_s25  ;;  %s7791_s25 = smov 72  }
 0xae3   :  { %v1646_v52 = vpop.xlane.xlu1 %1645 }
 0xae4   :  { %6445 = vrcp.f32 %v1646_v52  ;;  %v1643_v53 = vpop.xlane.xlu0 %1642 }
 0xae5   :  { %6447 = vrcp.f32 %v1643_v53 }
 0xae7   :  { %v6305_v54 = vpop.permute.xlu1 %6304 }
 0xae8   :  { %v6300_v55 = vpop.permute.xlu0 %6299  ;;  %v6307_v56 = vunpack.i.h.bf16 %v6305_v54  ;;  %v6306_v58 = vunpack.i.l.bf16 %v6305_v54 }
 0xae9   :  { %v6302_v60 = vunpack.i.h.bf16 %v6300_v55  ;;  %v6301_v61 = vunpack.i.l.bf16 %v6300_v55 }
 0xaea   :  { %v5984_v62 = vpack.c.bf16 %v6307_v56, %v6306_v58 }
 0xaeb   :  { %v5980_v57 = vpack.c.bf16 %v6302_v60, %v6301_v61  ;;  %v1739_v1 = vpop.permute.xlu1 %1738 }
 0xaec   :  { %v1741_v2 = vpop.permute.xlu0 %1740 }
 0xaed   :  { %5981 = vmatprep.subr.bf16.mxu0 %v5980_v57 }
 0xaee   :  { %v6446_v14 = vpop.eup %6445  ;;  %5983 = vmatpush3.bf16.msra.mxu0 %v5980_v57  ;;  %v7037_v57 = vld [vmem:[%s7730_s7] ss:$0 sm:$0xff] }
 0xaef   :  { %v6448_v63 = vpop.eup %6447  ;;  %5986 = vmatprep.subr.msk.bf16.mxu0 %vm6776_vm3, %v5984_v62  ;;  %v1650_v0 = vmul.f32 %v6446_v14, %v6442_v32 }
 0xaf0   :  { %v1649_v13 = vmul.f32 %v6448_v63, %v6444_v49 }
 0xaf2   :  { %5567 = vmatprep.mubr.msk.f32.mxu0 %vm81_vm0, %v1649_v13 }
 0xaf3   :  { %5568 = vmatmul.mubr.msk.f32.vlgmr.msra.gmra.mrb[16].mxu0 %vm81_vm0, %v1650_v0 }
 0xaf4   :  { %5574 = vmatprep.mubr.msk.f32.mxu0 %vm302_vm2, %v1739_v1 }
 0xaf7   :  { %5989 = vmatpush3.bf16.xpose.msk.msra.mxu0 %vm6776_vm3, %v5984_v62 }
 0xafe   :  { %5575 = vmatmul.mubr.msk.f32.vlgmr.msra.gmra.mrb[18].mxu0 %vm302_vm2, %v1741_v2 }
 0xbc6   :  { %v5569_v3 = vpop.f32.mrb[16].mxu0 }
 0xbc7   :  { %v1729_v59 = vpop.f32.mrb[17].mxu0 }
 0xbd1   :  { %v5576_v4 = vpop.f32.mrb[18].mxu0 }
 0xbd2   :  { %v1830_v5 = vmul.f32 0.35355338, %v5576_v4  ;;  %v1820_v6 = vpop.f32.mrb[19].mxu0 }
 0xbd3   :  { %v1829_v7 = vmul.f32 0.35355338, %v1820_v6 }
 0xbd4   :  { %v1834_v8 = vsel %vm81_vm0, %v1830_v5, -inf }
 0xbd5   :  { %1835 = vmax.xlane.f32.xlu0 %v1834_v8  ;;  %v1831_v9 = vsel %vm81_vm0, %v1829_v7, -inf }
 0xbd6   :  { %1832 = vmax.xlane.f32.xlu1 %v1831_v9 }
 0xbe7   :  { %1105 = vrot.lane.b32.xlu1 %v6931_v45, %s7764_s29 }
 0xbeb   :  { %6309 = vrot.lane.b32.xlu0 %v6819_v15, %s7750_s26  ;;  %1107 = vrot.lane.b32.xlu1 %v6929_v44, %s7764_s29  ;;  %s7760_s26 = smov 24  }
 0xc62   :  { %v1836_v10 = vpop.xlane.xlu0 %1835 }
 0xc63   :  { %v1838_v11 = vsub.f32 %v1830_v5, %v1836_v10  ;;  %v1833_v12 = vpop.xlane.xlu1 %1832 }
 0xc64   :  { %v1837_v16 = vsub.f32 %v1829_v7, %v1833_v12 }
 0xc65   :  { %v1841_v17 = vmul.f32 1.442695, %v1838_v11 }
 0xc66   :  { %v1839_v18 = vmul.f32 1.442695, %v1837_v16  ;;  %v6310_v23 = vpop.permute.xlu0 %6309 }
 0xc67   :  { %6449 = vpow2.f32 %v1841_v17  ;;  %v6312_v24 = vunpack.i.h.bf16 %v6310_v23  ;;  %v6311_v25 = vunpack.i.l.bf16 %v6310_v23 }
 0xc68   :  { %6451 = vpow2.f32 %v1839_v18 }
 0xc69   :  { %v5990_v26 = vpack.c.bf16 %v6312_v24, %v6311_v25 }
 0xc6b   :  { %5991 = vmatprep.subr.bf16.mxu1 %v5990_v26 }
 0xc6c   :  { %5993 = vmatpush3.bf16.msra.mxu1 %v5990_v26 }
 0xc71   :  { %v6450_v45 = vpop.eup %6449 }
 0xc72   :  { %v6452_v30 = vpop.eup %6451  ;;  %v1846_v15 = vsel %vm81_vm0, %v6450_v45, 0.0 }
 0xc73   :  { %1847 = vadd.xlane.f32.xlu1 %v1846_v15  ;;  %v1843_v44 = vsel %vm81_vm0, %v6452_v30, 0.0 }
 0xc74   :  { %1844 = vadd.xlane.f32.xlu0 %v1843_v44  ;;  %v2159_v44 = vld [vmem:[%s7731_s10 + $0x10] sm:$0xff] }
 0xc84   :  { %1115 = vrot.lane.b32.xlu1 %v6933_v46, %s7762_s3  ;;  %v5994_v46 = vpack.c.bf16 %v1971_v31, %v1970_v27  ;;  %v2160_v27 = vld [vmem:[%s7731_s10 + $0x18] sm:$0xff] }
 0xc85   :  { %v6006_v31 = vpack.c.bf16 %v2160_v27, %v2159_v44 }
 0xc86   :  { %5995 = vmatprep.subr.bf16.mxu1 %v5994_v46 }
 0xc88   :  { %1123 = vrot.lane.b32.xlu1 %v6841_v40, %s7760_s26  ;;  %v1106_v40 = vpop.permute.xlu1 %1105 }
 0xc89   :  { %v1127_v49 = vsel %vm302_vm2, %v6927_v43, %v1106_v40 }
 0xc8a   :  { %1113 = vrot.lane.b32.xlu0 %v6935_v47, %s7762_s3 }
 0xc8c   :  { %1944 = vrot.lane.b32.xlu1 %v6961_v19, %s7764_s29  ;;  %v1108_v47 = vpop.permute.xlu1 %1107 }
 0xc8d   :  { %v1128_v56 = vsel %vm302_vm2, %v6925_v39, %v1108_v47 }
 0xc8e   :  { %1121 = vrot.lane.b32.xlu0 %v6843_v41, %s7760_s26  ;;  %v1972_v41 = vld [vmem:[%s7729_s6 + $0x10] sm:$0xff] }
 0xc92   :  { %1942 = vrot.lane.b32.xlu0 %v6963_v22, %s7764_s29  ;;  %v1973_v22 = vld [vmem:[%s7729_s6 + $0x18] sm:$0xff]  ;;  %s7789_s29 = smov 48  }
 0xc93   :  { %v5998_v52 = vpack.c.bf16 %v1973_v22, %v1972_v41 }
 0xc96   :  { %1950 = vrot.lane.b32.xlu0 %v1729_v59, %s7762_s3 }
 0xc9a   :  { %1952 = vrot.lane.b32.xlu0 %v5569_v3, %s7762_s3  ;;  %s7787_s3 = smov 112  }
 0xd00   :  { %v1848_v19 = vpop.xlane.xlu1 %1847 }
 0xd01   :  { %6453 = vrcp.f32 %v1848_v19  ;;  %v1845_v33 = vpop.xlane.xlu0 %1844 }
 0xd02   :  { %6455 = vrcp.f32 %v1845_v33  ;;  %v7073_v33 = vld [vmem:[%s7732_s8] ss:$0 sm:$0xff] }
 0xd04   :  { %v1116_v50 = vpop.permute.xlu1 %1115 }
 0xd05   :  { %v1114_v36 = vpop.permute.xlu0 %1113  ;;  %v1130_v43 = vsel %vm81_vm0, %v1128_v56, %v1116_v50 }
 0xd06   :  { %v1129_v53 = vsel %vm81_vm0, %v1127_v49, %v1114_v36 }
 0xd08   :  { %v1124_v55 = vpop.permute.xlu1 %1123 }
 0xd09   :  { %v1122_v38 = vpop.permute.xlu0 %1121  ;;  %v1133_v58 = vsel %vm1131_vm4, %v1130_v43, %v1124_v55 }
 0xd0a   :  { %v1132_v54 = vsel %vm1131_vm4, %v1129_v53, %v1122_v38 }
 0xd0b   :  { %v6454_v34 = vpop.eup %6453 }
 0xd0c   :  { %v6456_v37 = vpop.eup %6455  ;;  %v1852_v51 = vmul.f32 %v6454_v34, %v6450_v45  ;;  %v1945_v8 = vpop.permute.xlu1 %1944  ;;  %v7078_v34 = vld [vmem:[%s7733_s9] ss:$0 sm:$0xff] }
 0xd0d   :  { %v1851_v32 = vmul.f32 %v6456_v37, %v6452_v30  ;;  %v1943_v3 = vpop.permute.xlu0 %1942  ;;  %v1965_v10 = vsel %vm302_vm2, %v6937_v48, %v1945_v8  ;;  %v2157_v48 = vld [vmem:[%s7731_s10] sm:$0xff]  ;;  %v2158_v30 = vld [vmem:[%s7731_s10 + $0x8] sm:$0xff] }
 0xd0e   :  { %v1964_v5 = vsel %vm302_vm2, %v6939_v35, %v1943_v3  ;;  %v6002_v15 = vpack.c.bf16 %v2158_v30, %v2157_v48  ;;  %v2281_v8 = vld [vmem:[%s7734_s12 + $0x60] sm:$0xff] }
 0xd0f   :  { %5581 = vmatprep.mubr.msk.f32.mxu1 %vm81_vm0, %v1851_v32  ;;  %v5078_v30 = vld [vmem:[%s7735_s11] ss:$0 sm:$0xff] }
 0xd10   :  { %5582 = vmatmul.mubr.msk.f32.vlgmr.msra.gmra.mrb[18].mxu1 %vm81_vm0, %v1852_v51  ;;  %6003 = vmatprep.subr.bf16.mxu0 %v6002_v15 }
 0xd11   :  { %5997 = vmatpush3.bf16.msra.mxu1 %v5994_v46  ;;  %5592 = vmatprep.mubr.msk.f32.mxu1 %vm198_vm1, %v1132_v54  ;;  %v1951_v59 = vpop.permute.xlu0 %1950 }
 0xd12   :  { %5999 = vmatprep.subr.bf16.mxu1 %v5998_v52  ;;  %6005 = vmatpush3.bf16.msra.mxu0 %v6002_v15 }
 0xd13   :  { %6007 = vmatprep.subr.bf16.mxu0 %v6006_v31 }
 0xd15   :  { %6001 = vmatpush3.bf16.msra.mxu1 %v5998_v52  ;;  %v1953_v4 = vpop.permute.xlu0 %1952 }
 0xd16   :  { %v1967_v12 = vsel %vm81_vm0, %v1965_v10, %v1953_v4  ;;  %6009 = vmatpush3.bf16.msra.mxu0 %v6006_v31  ;;  %v2278_v4 = vld [vmem:[%s7734_s12 + $0x48] sm:$0xff]  ;;  %v2283_v10 = vld [vmem:[%s7734_s12 + $0x70] sm:$0xff] }
 0xd18   :  { %5593 = vmatmul.mubr.msk.f32.vlgmr.msra.gmra.mrb[20].mxu1 %vm198_vm1, %v1133_v58 }
 0xde3   :  { %v5583_v60 = vpop.f32.mrb[18].mxu1 }
 0xde4   :  { %v1931_v61 = vpop.f32.mrb[19].mxu1 }
 0xde5   :  { %1958 = vrot.lane.b32.xlu0 %v1931_v61, %s7760_s26 }
 0xdeb   :  { %v5594_v62 = vpop.f32.mrb[20].mxu1 }
 0xdec   :  { %v2059_v14 = vpop.f32.mrb[21].mxu1  ;;  %v2065_v0 = vadd.f32 %v5594_v62, %v7037_v57  ;;  %v2269_v62 = vld [vmem:[%s7734_s12] sm:$0xff] }
 0xded   :  { %v2060_v39 = vadd.f32 %v7037_v57, %v2059_v14  ;;  %v2270_v14 = vld [vmem:[%s7734_s12 + $0x8] sm:$0xff] }
 0xdee   :  { %v2079_v1 = vadd.f32 %v2065_v0, %v6725_v21 }
 0xdef   :  { %v2078_v63 = vadd.f32 %v2060_v39, %v6723_v20  ;;  %v1966_v20 = vsel %vm81_vm0, %v1964_v5, %v1951_v59  ;;  %v6010_v39 = vpack.c.bf16 %v2270_v14, %v2269_v62  ;;  %v2277_v59 = vld [vmem:[%s7734_s12 + $0x40] sm:$0xff] }
 0xdf0   :  { %v2087_v2 = vsel %vm198_vm1, %v2079_v1, 0.0  ;;  %v6026_v5 = vpack.c.bf16 %v2278_v4, %v2277_v59 }
 0xdf1   :  { %v2084_v13 = vsel %vm198_vm1, %v2078_v63, 0.0  ;;  %6011 = vmatprep.subr.bf16.mxu1 %v6010_v39 }
 0xdf2   :  { %2085 = vadd.xlane.f32.xlu1 %v2084_v13  ;;  %6013 = vmatpush3.bf16.msra.mxu1 %v6010_v39  ;;  %v2274_v13 = vld [vmem:[%s7734_s12 + $0x28] sm:$0xff] }
 0xe03   :  { %1960 = vrot.lane.b32.xlu1 %v5583_v60, %s7760_s26 }
 0xe04   :  { %2088 = vadd.xlane.f32.xlu0 %v2087_v2  ;;  %v2276_v2 = vld [vmem:[%s7734_s12 + $0x38] sm:$0xff] }
 0xe57   :  { %v1959_v6 = vpop.permute.xlu0 %1958 }
 0xe58   :  { %v1968_v7 = vsel %vm1131_vm4, %v1966_v20, %v1959_v6  ;;  %v2279_v20 = vld [vmem:[%s7734_s12 + $0x50] sm:$0xff]  ;;  %v2280_v6 = vld [vmem:[%s7734_s12 + $0x58] sm:$0xff] }
 0xe59   :  { %5595 = vmatprep.mubr.msk.f32.mxu1 %vm198_vm1, %v1968_v7  ;;  %v6030_v7 = vpack.c.bf16 %v2280_v6, %v2279_v20 }
 0xe7f   :  { %v2086_v21 = vpop.xlane.xlu1 %2085 }
 0xe80   :  { %v2097_v9 = vmul.f32 0.03125, %v2086_v21  ;;  %v2282_v21 = vld [vmem:[%s7734_s12 + $0x68] sm:$0xff] }
 0xe82   :  { %v2101_v11 = vsub.f32 %v2078_v63, %v2097_v9  ;;  %v6034_v9 = vpack.c.bf16 %v2282_v21, %v2281_v8  ;;  %v5087_v8 = vld [vmem:[%s7780_s5 + $0x28] sm:$0xff] }
 0xe83   :  { %v1961_v16 = vpop.permute.xlu1 %1960 }
 0xe84   :  { %v1969_v17 = vsel %vm1131_vm4, %v1967_v12, %v1961_v16  ;;  %v2105_v35 = vmul.f32 %v2101_v11, %v2101_v11 }
 0xe85   :  { %5596 = vmatmul.mubr.msk.f32.gmra.mrb[22].mxu1 %vm198_vm1, %v1969_v17 }
 0xe86   :  { %v2109_v18 = vsel %vm198_vm1, %v2105_v35, 0.0 }
 0xe87   :  { %2110 = vadd.xlane.f32.xlu0 %v2109_v18 }
 0xe91   :  { %v2089_v23 = vpop.xlane.xlu0 %2088 }
 0xe92   :  { %v2098_v24 = vmul.f32 0.03125, %v2089_v23 }
 0xe94   :  { %v2102_v25 = vsub.f32 %v2079_v1, %v2098_v24  ;;  %v2275_v1 = vld [vmem:[%s7734_s12 + $0x30] sm:$0xff] }
 0xe95   :  { %v6022_v3 = vpack.c.bf16 %v2276_v2, %v2275_v1 }
 0xe96   :  { %v2106_v26 = vmul.f32 %v2102_v25, %v2102_v25 }
 0xe98   :  { %v2112_v45 = vsel %vm198_vm1, %v2106_v26, 0.0 }
 0xe99   :  { %2113 = vadd.xlane.f32.xlu0 %v2112_v45 }
 0xf14   :  { %v2111_v46 = vpop.xlane.xlu0 %2110 }
 0xf15   :  { %v2121_v40 = vmul.f32 0.03125, %v2111_v46 }
 0xf17   :  { %v2125_v47 = vadd.f32 1e-05, %v2121_v40 }
 0xf19   :  { %6457 = vrsqrt.f32 %v2125_v47 }
 0xf23   :  { %v6458_v19 = vpop.eup %6457 }
 0xf24   :  { %v2133_v36 = vmul.f32 %v6458_v19, %v2101_v11  ;;  %v2284_v11 = vld [vmem:[%s7734_s12 + $0x78] sm:$0xff] }
 0xf25   :  { %v6038_v12 = vpack.c.bf16 %v2284_v11, %v2283_v10  ;;  %v5089_v10 = vld [vmem:[%s7780_s5 + $0x38] sm:$0xff] }
 0xf26   :  { %v2114_v41 = vpop.xlane.xlu0 %2113  ;;  %v2143_v22 = vmul.f32 %v7073_v33, %v2133_v36 }
 0xf27   :  { %v2122_v37 = vmul.f32 0.03125, %v2114_v41 }
 0xf28   :  { %v7082_v38 = vadd.f32 %v7078_v34, %v2143_v22 }
 0xf29   :  { %v2126_v32 = vadd.f32 1e-05, %v2122_v37 }
 0xf2a   :  { %5606 = vmatprep.mubr.msk.f32.mxu0 %vm198_vm1, %v7082_v38 }
 0xf2b   :  { %6459 = vrsqrt.f32 %v2126_v32 }
 0xf35   :  { %v6460_v49 = vpop.eup %6459 }
 0xf36   :  { %v2134_v50 = vmul.f32 %v6460_v49, %v2102_v25 }
 0xf38   :  { %v2144_v51 = vmul.f32 %v7073_v33, %v2134_v50 }
 0xf3a   :  { %v7088_v52 = vadd.f32 %v7078_v34, %v2144_v51 }
 0xf3c   :  { %5607 = vmatmul.mubr.msk.f32.vlgmr.msra.gmra.mrb[20].mxu0 %vm198_vm1, %v7088_v52 }
 0xf58   :  { %v5597_v53 = vpop.f32.mrb[22].mxu1 }
 0xf59   :  { %v2075_v54 = vadd.f32 %v5597_v53, %v7037_v57  ;;  %v2069_v55 = vpop.f32.mrb[23].mxu1 }
 0xf5a   :  { %v2070_v56 = vadd.f32 %v7037_v57, %v2069_v55  ;;  %v2273_v57 = vld [vmem:[%s7734_s12 + $0x20] sm:$0xff] }
 0xf5b   :  { %v2081_v43 = vadd.f32 %v2075_v54, %v6737_v28  ;;  %v2271_v28 = vld [vmem:[%s7734_s12 + $0x10] sm:$0xff]  ;;  %v6018_v0 = vpack.c.bf16 %v2274_v13, %v2273_v57 }
 0xf5c   :  { %v2080_v58 = vadd.f32 %v2070_v56, %v6739_v29  ;;  %v2272_v29 = vld [vmem:[%s7734_s12 + $0x18] sm:$0xff] }
 0xf5d   :  { %v2093_v60 = vsel %vm198_vm1, %v2081_v43, 0.0  ;;  %v6014_v63 = vpack.c.bf16 %v2272_v29, %v2271_v28 }
 0xf5e   :  { %2094 = vadd.xlane.f32.xlu1 %v2093_v60  ;;  %v2090_v61 = vsel %vm198_vm1, %v2080_v58, 0.0 }
 0xf5f   :  { %2091 = vadd.xlane.f32.xlu0 %v2090_v61  ;;  %6015 = vmatprep.subr.bf16.mxu1 %v6014_v63 }
 0xf60   :  { %6017 = vmatpush3.bf16.msra.mxu1 %v6014_v63 }
 0xf61   :  { %6019 = vmatprep.subr.bf16.mxu1 %v6018_v0 }
 0xf64   :  { %6021 = vmatpush3.bf16.msra.mxu1 %v6018_v0 }
 0xf65   :  { %6023 = vmatprep.subr.bf16.mxu1 %v6022_v3 }
 0xf68   :  { %6025 = vmatpush3.bf16.msra.mxu1 %v6022_v3 }
 0xf69   :  { %6027 = vmatprep.subr.bf16.mxu1 %v6026_v5 }
 0xf6c   :  { %6029 = vmatpush3.bf16.msra.mxu1 %v6026_v5 }
 0xf6d   :  { %6031 = vmatprep.subr.bf16.mxu1 %v6030_v7 }
 0xf70   :  { %6033 = vmatpush3.bf16.msra.mxu1 %v6030_v7  ;;  %v5086_v7 = vld [vmem:[%s7780_s5 + $0x20] sm:$0xff] }
 0xf71   :  { %6035 = vmatprep.subr.bf16.mxu1 %v6034_v9  ;;  %v6042_v21 = vpack.c.bf16 %v5087_v8, %v5086_v7 }
 0xf73   :  { %6043 = vmatprep.subr.bf16.mxu0 %v6042_v21 }
 0xf74   :  { %6037 = vmatpush3.bf16.msra.mxu1 %v6034_v9  ;;  %6045 = vmatpush3.bf16.msra.mxu0 %v6042_v21  ;;  %v5088_v9 = vld [vmem:[%s7780_s5 + $0x30] sm:$0xff] }
 0xf75   :  { %6039 = vmatprep.subr.bf16.mxu1 %v6038_v12  ;;  %v6046_v11 = vpack.c.bf16 %v5089_v10, %v5088_v9 }
 0xf77   :  { %6047 = vmatprep.subr.bf16.mxu0 %v6046_v11 }
 0xf78   :  { %6041 = vmatpush3.bf16.msra.mxu1 %v6038_v12  ;;  %6049 = vmatpush3.bf16.msra.mxu0 %v6046_v11 }
 0xfeb   :  { %v2095_v16 = vpop.xlane.xlu1 %2094 }
 0xfec   :  { %v2100_v17 = vmul.f32 0.03125, %v2095_v16  ;;  %v2092_v35 = vpop.xlane.xlu0 %2091 }
 0xfed   :  { %v2099_v18 = vmul.f32 0.03125, %v2092_v35 }
 0xfee   :  { %v2104_v23 = vsub.f32 %v2081_v43, %v2100_v17  ;;  %v7166_v43 = vld [vmem:[%s7736_s13] ss:$0 sm:$0xff] }
 0xfef   :  { %v2103_v24 = vsub.f32 %v2080_v58, %v2099_v18 }
 0xff0   :  { %v2108_v45 = vmul.f32 %v2104_v23, %v2104_v23 }
 0xff1   :  { %v2107_v25 = vmul.f32 %v2103_v24, %v2103_v24 }
 0xff2   :  { %v2118_v48 = vsel %vm198_vm1, %v2108_v45, 0.0  ;;  %v7196_v45 = vld [vmem:[%s7738_s15] ss:$0 sm:$0xff] }
 0xff3   :  { %v2115_v26 = vsel %vm198_vm1, %v2107_v25, 0.0  ;;  %v7191_v25 = vld [vmem:[%s7737_s14] ss:$0 sm:$0xff] }
 0xff4   :  { %2116 = vadd.xlane.f32.xlu0 %v2115_v26 }
 0xff8   :  { %2119 = vadd.xlane.f32.xlu0 %v2118_v48 }
0x100f   :  { %v5608_v15 = vpop.f32.mrb[20].mxu0 }
0x1010   :  { %v2252_v44 = vadd.f32 %v5608_v15, %v5078_v30  ;;  %v2246_v27 = vpop.f32.mrb[21].mxu0 }
0x1011   :  { %v2247_v31 = vadd.f32 %v5078_v30, %v2246_v27 }
0x1012   :  { %v2266_v40 = vmax.f32 %v2252_v44, 0.0 }
0x1013   :  { %v2265_v46 = vmax.f32 %v2247_v31, 0.0 }
0x1015   :  { %5644 = vmatprep.mubr.f32.mxu1 %v2265_v46 }
0x1016   :  { %5645 = vmatmul.mubr.f32.vlgmr.msra.gmra.mrb[24].mxu1 %v2266_v40 }
0x1081   :  { %v2117_v47 = vpop.xlane.xlu0 %2116 }
0x1082   :  { %v2123_v19 = vmul.f32 0.03125, %v2117_v47 }
0x1084   :  { %v2127_v36 = vadd.f32 1e-05, %v2123_v19 }
0x1085   :  { %v2120_v41 = vpop.xlane.xlu0 %2119 }
0x1086   :  { %6461 = vrsqrt.f32 %v2127_v36  ;;  %v2124_v22 = vmul.f32 0.03125, %v2120_v41 }
0x1088   :  { %v2128_v37 = vadd.f32 1e-05, %v2124_v22 }
0x108a   :  { %6463 = vrsqrt.f32 %v2128_v37 }
0x1090   :  { %v6462_v32 = vpop.eup %6461 }
0x1091   :  { %v2135_v49 = vmul.f32 %v6462_v32, %v2103_v24 }
0x1093   :  { %v2145_v50 = vmul.f32 %v7073_v33, %v2135_v49 }
0x1094   :  { %v6464_v51 = vpop.eup %6463 }
0x1095   :  { %v7153_v53 = vadd.f32 %v7078_v34, %v2145_v50  ;;  %v2136_v54 = vmul.f32 %v6464_v51, %v2104_v23 }
0x1097   :  { %5609 = vmatprep.mubr.msk.f32.mxu0 %vm198_vm1, %v7153_v53  ;;  %v2146_v55 = vmul.f32 %v7073_v33, %v2136_v54 }
0x1099   :  { %v7159_v56 = vadd.f32 %v7078_v34, %v2146_v55 }
0x109b   :  { %5610 = vmatmul.mubr.msk.f32.gmra.mrb[22].mxu0 %vm198_vm1, %v7159_v56 }
0x10e9   :  { %v5646_v58 = vpop.f32.mrb[24].mxu1 }
0x10ea   :  { %v2358_v60 = vpop.f32.mrb[25].mxu1  ;;  %v2364_v61 = vadd.f32 %v5646_v58, %v7166_v43 }
0x10eb   :  { %v2359_v62 = vadd.f32 %v7166_v43, %v2358_v60 }
0x10ec   :  { %v2378_v34 = vadd.f32 %v2364_v61, %v7088_v52 }
0x10ed   :  { %v2377_v14 = vadd.f32 %v2359_v62, %v7082_v38 }
0x10ee   :  { %v2386_v39 = vsel %vm198_vm1, %v2378_v34, 0.0 }
0x10ef   :  { %v2383_v33 = vsel %vm198_vm1, %v2377_v14, 0.0 }
0x10f0   :  { %2384 = vadd.xlane.f32.xlu0 %v2383_v33 }
0x10f4   :  { %2387 = vadd.xlane.f32.xlu0 %v2386_v39 }
0x116e   :  { %v5611_v28 = vpop.f32.mrb[22].mxu0 }
0x116f   :  { %v2262_v29 = vadd.f32 %v5611_v28, %v5078_v30  ;;  %v2256_v57 = vpop.f32.mrb[23].mxu0 }
0x1170   :  { %v2257_v63 = vadd.f32 %v5078_v30, %v2256_v57 }
0x1171   :  { %v2268_v0 = vmax.f32 %v2262_v29, 0.0 }
0x1172   :  { %v2267_v13 = vmax.f32 %v2257_v63, 0.0 }
0x1174   :  { %5647 = vmatprep.mubr.f32.mxu1 %v2267_v13 }
0x1175   :  { %5648 = vmatmul.mubr.f32.gmra.mrb[26].mxu1 %v2268_v0 }
0x117d   :  { %v2385_v1 = vpop.xlane.xlu0 %2384 }
0x117e   :  { %v2395_v2 = vmul.f32 0.03125, %v2385_v1 }
0x1180   :  { %v2399_v3 = vsub.f32 %v2377_v14, %v2395_v2 }
0x1181   :  { %v2388_v38 = vpop.xlane.xlu0 %2387 }
0x1182   :  { %v2396_v59 = vmul.f32 0.03125, %v2388_v38  ;;  %v2403_v4 = vmul.f32 %v2399_v3, %v2399_v3 }
0x1184   :  { %v2400_v5 = vsub.f32 %v2378_v34, %v2396_v59  ;;  %v2407_v52 = vsel %vm198_vm1, %v2403_v4, 0.0 }
0x1185   :  { %2408 = vadd.xlane.f32.xlu0 %v2407_v52 }
0x1186   :  { %v2404_v20 = vmul.f32 %v2400_v5, %v2400_v5 }
0x1188   :  { %v2410_v6 = vsel %vm198_vm1, %v2404_v20, 0.0 }
0x1189   :  { %2411 = vadd.xlane.f32.xlu0 %v2410_v6 }
0x1212   :  { %v2409_v12 = vpop.xlane.xlu0 %2408 }
0x1213   :  { %v2419_v16 = vmul.f32 0.03125, %v2409_v12 }
0x1215   :  { %v2423_v17 = vadd.f32 1e-05, %v2419_v16 }
0x1216   :  { %v2412_v35 = vpop.xlane.xlu0 %2411 }
0x1217   :  { %6465 = vrsqrt.f32 %v2423_v17  ;;  %v2420_v18 = vmul.f32 0.03125, %v2412_v35 }
0x1219   :  { %v2424_v23 = vadd.f32 1e-05, %v2420_v18 }
0x121b   :  { %6467 = vrsqrt.f32 %v2424_v23 }
0x1221   :  { %v6466_v24 = vpop.eup %6465 }
0x1222   :  { %v2431_v26 = vmul.f32 %v6466_v24, %v2399_v3 }
0x1224   :  { %v2441_v48 = vmul.f32 %v7191_v25, %v2431_v26 }
0x1225   :  { %v6468_v30 = vpop.eup %6467 }
0x1226   :  { %v2432_v15 = vmul.f32 %v6468_v30, %v2400_v5  ;;  %v7200_v44 = vadd.f32 %v7196_v45, %v2441_v48 }
0x1228   :  { %v2442_v27 = vmul.f32 %v7191_v25, %v2432_v15  ;;  %5658 = vmatprep.mubr.msk.f32.mxu0 %vm198_vm1, %v7200_v44 }
0x122a   :  { %v7206_v31 = vadd.f32 %v7196_v45, %v2442_v27 }
0x122c   :  { %5659 = vmatmul.mubr.msk.f32.vlgmr.msra.gmra.mrb[24].mxu0 %vm198_vm1, %v7206_v31 }
0x1248   :  { %v5649_v46 = vpop.f32.mrb[26].mxu1 }
0x1249   :  { %v2368_v40 = vpop.f32.mrb[27].mxu1  ;;  %v2374_v47 = vadd.f32 %v5649_v46, %v7166_v43 }
0x124a   :  { %v2369_v19 = vadd.f32 %v7166_v43, %v2368_v40 }
0x124b   :  { %v2380_v22 = vadd.f32 %v2374_v47, %v7159_v56  ;;  %v7221_v56 = vld [vmem:[%s7783_s30 + $0x1] ss:$0 sm:$0xff]  ;;  %s7786_s30 = smov 80  }
0x124c   :  { %v2379_v36 = vadd.f32 %v2369_v19, %v7153_v53 }
0x124d   :  { %v2392_v37 = vsel %vm198_vm1, %v2380_v22, 0.0 }
0x124e   :  { %v2389_v41 = vsel %vm198_vm1, %v2379_v36, 0.0 }
0x124f   :  { %2390 = vadd.xlane.f32.xlu0 %v2389_v41 }
0x1253   :  { %2393 = vadd.xlane.f32.xlu0 %v2392_v37 }
0x12dc   :  { %v2391_v32 = vpop.xlane.xlu0 %2390 }
0x12dd   :  { %v2397_v49 = vmul.f32 0.03125, %v2391_v32 }
0x12df   :  { %v2401_v50 = vsub.f32 %v2379_v36, %v2397_v49 }
0x12e0   :  { %v2394_v51 = vpop.xlane.xlu0 %2393 }
0x12e1   :  { %v2398_v54 = vmul.f32 0.03125, %v2394_v51  ;;  %v2405_v55 = vmul.f32 %v2401_v50, %v2401_v50 }
0x12e3   :  { %v2402_v58 = vsub.f32 %v2380_v22, %v2398_v54  ;;  %v2413_v60 = vsel %vm198_vm1, %v2405_v55, 0.0 }
0x12e4   :  { %2414 = vadd.xlane.f32.xlu0 %v2413_v60 }
0x12e5   :  { %v2406_v43 = vmul.f32 %v2402_v58, %v2402_v58 }
0x12e7   :  { %v2416_v53 = vsel %vm198_vm1, %v2406_v43, 0.0 }
0x12e8   :  { %2417 = vadd.xlane.f32.xlu1 %v2416_v53 }
0x12ff   :  { %v5660_v61 = vpop.f32.mrb[24].mxu0 }
0x1300   :  { %v7224_v62 = vadd.f32 %v5660_v61, %v7221_v56  ;;  %v2546_v14 = vpop.f32.mrb[25].mxu0 }
0x1301   :  { %v7227_v33 = vadd.f32 %v7221_v56, %v2546_v14 }
0x1303   :  { %v7231_v34 = vpack.i.bf16 %v7224_v62, %v7227_v33 }
0x1305   :  { %6314 = vrot.lane.b32.xlu0 %v7231_v34, %s6560_s1 }
0x1309   :  { %6324 = vrot.lane.b32.xlu0 %v7231_v34, %s6554_s23 }
0x130d   :  { %2765 = vrot.lane.b32.xlu0 %v7227_v33, %s6553_s22 }
0x1311   :  { %6329 = vrot.lane.b32.xlu0 %v7231_v34, %s7786_s30 }
0x1315   :  { %2767 = vrot.lane.b32.xlu0 %v7224_v62, %s6553_s22 }
0x1319   :  { %2969 = vrot.lane.b32.xlu0 %v7224_v62, %s7787_s3 }
0x1371   :  { %v2415_v39 = vpop.xlane.xlu0 %2414 }
0x1372   :  { %v2421_v28 = vmul.f32 0.03125, %v2415_v39 }
0x1374   :  { %v2425_v29 = vadd.f32 1e-05, %v2421_v28 }
0x1375   :  { %v2418_v57 = vpop.xlane.xlu1 %2417 }
0x1376   :  { %6469 = vrsqrt.f32 %v2425_v29  ;;  %v2422_v63 = vmul.f32 0.03125, %v2418_v57 }
0x1377   :  { %v6315_v13 = vpop.permute.xlu0 %6314 }
0x1378   :  { %v2426_v0 = vadd.f32 1e-05, %v2422_v63  ;;  %v6317_v1 = vunpack.i.h.bf16 %v6315_v13  ;;  %v6316_v2 = vunpack.i.l.bf16 %v6315_v13 }
0x137a   :  { %6471 = vrsqrt.f32 %v2426_v0  ;;  %v6050_v3 = vpack.c.bf16 %v6317_v1, %v6316_v2 }
0x137b   :  { %v6325_v38 = vpop.permute.xlu0 %6324 }
0x137c   :  { %6052 = vmatprep.subr.msk.bf16.mxu0 %vm6776_vm3, %v6050_v3  ;;  %v6327_v49 = vunpack.i.h.bf16 %v6325_v38 }
0x137d   :  { %6055 = vmatpush3.bf16.xpose.msk.msra.mxu0 %vm6776_vm3, %v6050_v3 }
0x137f   :  { %v7249_v59 = vpop.permute.xlu0 %2765 }
0x1380   :  { %v6470_v4 = vpop.eup %6469 }
0x1381   :  { %v2433_v5 = vmul.f32 %v6470_v4, %v2401_v50  ;;  %v6326_v50 = vunpack.i.l.bf16 %v6325_v38 }
0x1383   :  { %v6330_v52 = vpop.permute.xlu0 %6329  ;;  %v2443_v20 = vmul.f32 %v7191_v25, %v2433_v5  ;;  %v6060_v60 = vpack.c.bf16 %v6327_v49, %v6326_v50 }
0x1384   :  { %v6472_v6 = vpop.eup %6471  ;;  %v6332_v7 = vunpack.i.h.bf16 %v6330_v52  ;;  %v6331_v8 = vunpack.i.l.bf16 %v6330_v52 }
0x1385   :  { %v7253_v21 = vadd.f32 %v7196_v45, %v2443_v20  ;;  %v2434_v9 = vmul.f32 %v6472_v6, %v2402_v58 }
0x1386   :  { %v6070_v10 = vpack.c.bf16 %v6332_v7, %v6331_v8 }
0x1387   :  { %5661 = vmatprep.mubr.msk.f32.mxu0 %vm198_vm1, %v7253_v21  ;;  %v2444_v11 = vmul.f32 %v7191_v25, %v2434_v9  ;;  %v2768_v37 = vpop.permute.xlu0 %2767 }
0x1388   :  { %6072 = vmatprep.subr.msk.bf16.mxu1 %vm6776_vm3, %v6070_v10 }
0x1389   :  { %6075 = vmatpush3.bf16.xpose.msk.msra.mxu1 %vm6776_vm3, %v6070_v10  ;;  %v7263_v12 = vadd.f32 %v7196_v45, %v2444_v11 }
0x138b   :  { %5662 = vmatmul.mubr.msk.f32.gmra.mrb[26].mxu0 %vm198_vm1, %v7263_v12  ;;  %v2970_v43 = vpop.permute.xlu0 %2969 }
0x138c   :  { %5668 = vmatprep.mubr.msk.f32.mxu0 %vm302_vm2, %v7227_v33 }
0x138f   :  { %5669 = vmatmul.mubr.msk.f32.vlgmr.msra.gmra.mrb[28].mxu0 %vm302_vm2, %v7224_v62 }
0x145e   :  { %v7271_v16 = vpop.f32.mrb[26].mxu0 }
0x145f   :  { %v7273_v17 = vpop.f32.mrb[27].mxu0 }
0x1462   :  { %v5670_v35 = vpop.f32.mrb[28].mxu0 }
0x1463   :  { %v2645_v18 = vpop.f32.mrb[29].mxu0  ;;  %v2655_v24 = vmul.f32 0.35355338, %v5670_v35 }
0x1464   :  { %v2654_v23 = vmul.f32 0.35355338, %v2645_v18 }
0x1465   :  { %v2659_v26 = vsel %vm81_vm0, %v2655_v24, -inf }
0x1466   :  { %v2656_v25 = vsel %vm81_vm0, %v2654_v23, -inf }
0x1467   :  { %2657 = vmax.xlane.f32.xlu1 %v2656_v25 }
0x146b   :  { %2660 = vmax.xlane.f32.xlu1 %v2659_v26 }
0x14f4   :  { %v2658_v45 = vpop.xlane.xlu1 %2657 }
0x14f5   :  { %v2662_v48 = vsub.f32 %v2654_v23, %v2658_v45 }
0x14f7   :  { %v2664_v27 = vmul.f32 1.442695, %v2662_v48 }
0x14f8   :  { %v2661_v30 = vpop.xlane.xlu1 %2660 }
0x14f9   :  { %v2663_v15 = vsub.f32 %v2655_v24, %v2661_v30 }
0x14fb   :  { %v2666_v46 = vmul.f32 1.442695, %v2663_v15 }
0x14fd   :  { %6473 = vpow2.f32 %v2666_v46 }
0x14fe   :  { %6475 = vpow2.f32 %v2664_v27 }
0x1507   :  { %v6474_v40 = vpop.eup %6473 }
0x1508   :  { %v2671_v47 = vsel %vm81_vm0, %v6474_v40, 0.0  ;;  %v6476_v19 = vpop.eup %6475 }
0x1509   :  { %2672 = vadd.xlane.f32.xlu1 %v2671_v47  ;;  %v2668_v36 = vsel %vm81_vm0, %v6476_v19, 0.0 }
0x150d   :  { %2669 = vadd.xlane.f32.xlu1 %v2668_v36 }
0x151e   :  { %6319 = vrot.lane.b32.xlu1 %v7231_v34, %s7788_s27 }
0x1522   :  { %2967 = vrot.lane.b32.xlu1 %v7227_v33, %s7787_s3 }
0x1596   :  { %v2673_v41 = vpop.xlane.xlu1 %2672 }
0x1597   :  { %6477 = vrcp.f32 %v2673_v41 }
0x159a   :  { %v2670_v22 = vpop.xlane.xlu1 %2669 }
0x159b   :  { %6479 = vrcp.f32 %v2670_v22 }
0x159e   :  { %v6320_v32 = vpop.permute.xlu1 %6319 }
0x159f   :  { %v6322_v51 = vunpack.i.h.bf16 %v6320_v32  ;;  %v6321_v54 = vunpack.i.l.bf16 %v6320_v32 }
0x15a1   :  { %v6056_v55 = vpack.c.bf16 %v6322_v51, %v6321_v54  ;;  %v6478_v53 = vpop.eup %6477 }
0x15a2   :  { %v2968_v58 = vpop.permute.xlu1 %2967  ;;  %v2677_v39 = vmul.f32 %v6478_v53, %v6474_v40 }
0x15a3   :  { %6057 = vmatprep.subr.bf16.mxu0 %v6056_v55  ;;  %5696 = vmatprep.mubr.msk.f32.mxu1 %vm302_vm2, %v2968_v58 }
0x15a4   :  { %6059 = vmatpush3.bf16.msra.mxu0 %v6056_v55  ;;  %5697 = vmatmul.mubr.msk.f32.vlgmr.msra.gmra.mrb[28].mxu1 %vm302_vm2, %v2970_v43 }
0x15a5   :  { %v6480_v61 = vpop.eup %6479  ;;  %6062 = vmatprep.subr.msk.bf16.mxu0 %vm6776_vm3, %v6060_v60 }
0x15a6   :  { %v2676_v14 = vmul.f32 %v6480_v61, %v6476_v19 }
0x15a8   :  { %5675 = vmatprep.mubr.msk.f32.mxu0 %vm81_vm0, %v2676_v14 }
0x15a9   :  { %5676 = vmatmul.mubr.msk.f32.vlgmr.msra.gmra.mrb[30].mxu0 %vm81_vm0, %v2677_v39 }
0x15aa   :  { %5682 = vmatprep.mubr.msk.f32.mxu0 %vm302_vm2, %v7249_v59 }
0x15ad   :  { %6065 = vmatpush3.bf16.xpose.msk.msra.mxu0 %vm6776_vm3, %v6060_v60 }
0x15b4   :  { %5683 = vmatmul.mubr.msk.f32.vlgmr.msra.gmra.mrb[32].mxu0 %vm302_vm2, %v2768_v37 }
0x1677   :  { %v5698_v28 = vpop.f32.mrb[28].mxu1 }
0x1678   :  { %v3049_v29 = vpop.f32.mrb[29].mxu1  ;;  %v3059_v4 = vmul.f32 0.35355338, %v5698_v28 }
0x1679   :  { %v3058_v3 = vmul.f32 0.35355338, %v3049_v29 }
0x167a   :  { %v3063_v52 = vsel %vm81_vm0, %v3059_v4, -inf }
0x167b   :  { %v3060_v5 = vsel %vm81_vm0, %v3058_v3, -inf }
0x167c   :  { %v7294_v57 = vpop.f32.mrb[30].mxu0 }
0x167d   :  { %v7296_v63 = vpop.f32.mrb[31].mxu0 }
0x1687   :  { %v5684_v13 = vpop.f32.mrb[32].mxu0 }
0x1688   :  { %v2857_v0 = vmul.f32 0.35355338, %v5684_v13  ;;  %v2847_v1 = vpop.f32.mrb[33].mxu0 }
0x1689   :  { %v2856_v2 = vmul.f32 0.35355338, %v2847_v1 }
0x168a   :  { %v2861_v38 = vsel %vm81_vm0, %v2857_v0, -inf }
0x168b   :  { %2862 = vmax.xlane.f32.xlu0 %v2861_v38  ;;  %v2858_v59 = vsel %vm81_vm0, %v2856_v2, -inf }
0x168c   :  { %2859 = vmax.xlane.f32.xlu1 %v2858_v59 }
0x168f   :  { %3061 = vmax.xlane.f32.xlu0 %v3060_v5 }
0x1690   :  { %3064 = vmax.xlane.f32.xlu1 %v3063_v52 }
0x1718   :  { %v2863_v20 = vpop.xlane.xlu0 %2862 }
0x1719   :  { %v2860_v6 = vpop.xlane.xlu1 %2859  ;;  %v2865_v8 = vsub.f32 %v2857_v0, %v2863_v20 }
0x171a   :  { %v2864_v7 = vsub.f32 %v2856_v2, %v2860_v6 }
0x171b   :  { %v2868_v24 = vmul.f32 1.442695, %v2865_v8 }
0x171c   :  { %v3062_v9 = vpop.xlane.xlu0 %3061  ;;  %v2866_v18 = vmul.f32 1.442695, %v2864_v7 }
0x171d   :  { %v3066_v10 = vsub.f32 %v3058_v3, %v3062_v9  ;;  %v3065_v11 = vpop.xlane.xlu1 %3064 }
0x171e   :  { %v3067_v35 = vsub.f32 %v3059_v4, %v3065_v11 }
0x171f   :  { %v3068_v23 = vmul.f32 1.442695, %v3066_v10 }
0x1720   :  { %v3070_v25 = vmul.f32 1.442695, %v3067_v35 }
0x1721   :  { %6481 = vpow2.f32 %v3068_v23 }
0x1722   :  { %6483 = vpow2.f32 %v3070_v25 }
0x1723   :  { %6485 = vpow2.f32 %v2866_v18 }
0x1724   :  { %6487 = vpow2.f32 %v2868_v24 }
0x172b   :  { %v6482_v26 = vpop.eup %6481 }
0x172c   :  { %v6484_v45 = vpop.eup %6483  ;;  %v3072_v48 = vsel %vm81_vm0, %v6482_v26, 0.0 }
0x172d   :  { %v6486_v30 = vpop.eup %6485  ;;  %3073 = vadd.xlane.f32.xlu0 %v3072_v48  ;;  %v3075_v15 = vsel %vm81_vm0, %v6484_v45, 0.0 }
0x172e   :  { %v6488_v27 = vpop.eup %6487  ;;  %3076 = vadd.xlane.f32.xlu1 %v3075_v15  ;;  %v2870_v46 = vsel %vm81_vm0, %v6486_v30, 0.0  ;;  %v7342_v15 = vadd.f32 %v7271_v16, %v7221_v56 }
0x172f   :  { %v2873_v40 = vsel %vm81_vm0, %v6488_v27, 0.0 }
0x1731   :  { %2871 = vadd.xlane.f32.xlu0 %v2870_v46 }
0x1732   :  { %2874 = vadd.xlane.f32.xlu1 %v2873_v40 }
0x1743   :  { %6339 = vrot.lane.b32.xlu1 %v7231_v34, %s7789_s29 }
0x1747   :  { %6334 = vrot.lane.b32.xlu0 %v7231_v34, %s7790_s4  ;;  %6344 = vrot.lane.b32.xlu1 %v7231_v34, %s7791_s25 }
0x174b   :  { %3169 = vrot.lane.b32.xlu0 %v7227_v33, %s7792_s2  ;;  %3171 = vrot.lane.b32.xlu1 %v7224_v62, %s7792_s2 }
0x17ba   :  { %v3074_v47 = vpop.xlane.xlu0 %3073 }
0x17bb   :  { %v3077_v19 = vpop.xlane.xlu1 %3076  ;;  %6489 = vrcp.f32 %v3074_v47 }
0x17be   :  { %v2872_v36 = vpop.xlane.xlu0 %2871 }
0x17bf   :  { %6491 = vrcp.f32 %v2872_v36  ;;  %v2875_v41 = vpop.xlane.xlu1 %2874 }
0x17c0   :  { %6493 = vrcp.f32 %v2875_v41 }
0x17c1   :  { %6495 = vrcp.f32 %v3077_v19 }
0x17c2   :  { %v6335_v22 = vpop.permute.xlu0 %6334 }
0x17c3   :  { %v6337_v37 = vunpack.i.h.bf16 %v6335_v22  ;;  %v6336_v32 = vunpack.i.l.bf16 %v6335_v22  ;;  %v6340_v49 = vpop.permute.xlu1 %6339 }
0x17c4   :  { %v6342_v50 = vunpack.i.h.bf16 %v6340_v49  ;;  %v6341_v51 = vunpack.i.l.bf16 %v6340_v49 }
0x17c5   :  { %v6066_v54 = vpack.c.bf16 %v6337_v37, %v6336_v32  ;;  %v6490_v58 = vpop.eup %6489 }
0x17c6   :  { %v6076_v55 = vpack.c.bf16 %v6342_v50, %v6341_v51  ;;  %v3080_v28 = vmul.f32 %v6490_v58, %v6482_v26  ;;  %v3170_v0 = vpop.permute.xlu0 %3169 }
0x17c7   :  { %6067 = vmatprep.subr.bf16.mxu0 %v6066_v54  ;;  %v6345_v33 = vpop.permute.xlu1 %6344 }
0x17c8   :  { %6069 = vmatpush3.bf16.msra.mxu0 %v6066_v54  ;;  %v6347_v60 = vunpack.i.h.bf16 %v6345_v33  ;;  %v6346_v43 = vunpack.i.l.bf16 %v6345_v33 }
0x17c9   :  { %v6492_v62 = vpop.eup %6491  ;;  %6077 = vmatprep.subr.bf16.mxu0 %v6076_v55 }
0x17ca   :  { %v6494_v53 = vpop.eup %6493  ;;  %v2878_v61 = vmul.f32 %v6492_v62, %v6486_v30  ;;  %v6080_v29 = vpack.c.bf16 %v6347_v60, %v6346_v43 }
0x17cb   :  { %v2879_v14 = vmul.f32 %v6494_v53, %v6488_v27  ;;  %v6496_v39 = vpop.eup %6495  ;;  %v3172_v1 = vpop.permute.xlu1 %3171  ;;  %v7346_v27 = vadd.f32 %v7221_v56, %v7273_v17 }
0x17cc   :  { %5689 = vmatprep.mubr.msk.f32.mxu0 %vm81_vm0, %v2878_v61  ;;  %v3081_v13 = vmul.f32 %v6496_v39, %v6484_v45 }
0x17cd   :  { %5690 = vmatmul.mubr.msk.f32.vlgmr.msra.gmra.mrb[34].mxu0 %vm81_vm0, %v2879_v14  ;;  %v7350_v46 = vpack.i.bf16 %v7342_v15, %v7346_v27 }
0x17ce   :  { %6079 = vmatpush3.bf16.msra.mxu0 %v6076_v55  ;;  %5703 = vmatprep.mubr.msk.f32.mxu0 %vm81_vm0, %v3080_v28 }
0x17cf   :  { %6082 = vmatprep.subr.msk.bf16.mxu0 %vm6776_vm3, %v6080_v29 }
0x17d1   :  { %5704 = vmatmul.mubr.msk.f32.vlgmr.msra.gmra.mrb[36].mxu0 %vm81_vm0, %v3081_v13 }
0x17d2   :  { %5710 = vmatprep.mubr.msk.f32.mxu0 %vm302_vm2, %v3170_v0 }
0x17d7   :  { %6085 = vmatpush3.bf16.xpose.msk.msra.mxu0 %vm6776_vm3, %v6080_v29 }
0x17de   :  { %5711 = vmatmul.mubr.msk.f32.vlgmr.msra.gmra.mrb[38].mxu0 %vm302_vm2, %v3172_v1 }
0x18a0   :  { %v7326_v2 = vpop.f32.mrb[34].mxu0 }
0x18a1   :  { %v7328_v3 = vpop.f32.mrb[35].mxu0 }
0x18a4   :  { %v7330_v38 = vpop.f32.mrb[36].mxu0 }
0x18a5   :  { %v7332_v4 = vpop.f32.mrb[37].mxu0 }
0x18b1   :  { %v5712_v59 = vpop.f32.mrb[38].mxu0 }
0x18b2   :  { %v3261_v5 = vmul.f32 0.35355338, %v5712_v59  ;;  %v3251_v52 = vpop.f32.mrb[39].mxu0 }
0x18b3   :  { %v3260_v20 = vmul.f32 0.35355338, %v3251_v52 }
0x18b4   :  { %v3265_v6 = vsel %vm81_vm0, %v3261_v5, -inf }
0x18b5   :  { %3266 = vmax.xlane.f32.xlu1 %v3265_v6  ;;  %v3262_v7 = vsel %vm81_vm0, %v3260_v20, -inf }
0x18b6   :  { %3263 = vmax.xlane.f32.xlu0 %v3262_v7 }
0x18c6   :  { %6349 = vrot.lane.b32.xlu1 %v7231_v34, %s7793_s28 }
0x1942   :  { %v3267_v8 = vpop.xlane.xlu1 %3266 }
0x1943   :  { %v3269_v9 = vsub.f32 %v3261_v5, %v3267_v8  ;;  %v3264_v10 = vpop.xlane.xlu0 %3263 }
0x1944   :  { %v3268_v11 = vsub.f32 %v3260_v20, %v3264_v10 }
0x1945   :  { %v3272_v35 = vmul.f32 1.442695, %v3269_v9 }
0x1946   :  { %v3270_v18 = vmul.f32 1.442695, %v3268_v11  ;;  %v6350_v23 = vpop.permute.xlu1 %6349 }
0x1947   :  { %6497 = vpow2.f32 %v3272_v35  ;;  %v6352_v24 = vunpack.i.h.bf16 %v6350_v23  ;;  %v6351_v25 = vunpack.i.l.bf16 %v6350_v23 }
0x1948   :  { %6499 = vpow2.f32 %v3270_v18 }
0x1949   :  { %v6086_v26 = vpack.c.bf16 %v6352_v24, %v6351_v25 }
0x194b   :  { %6087 = vmatprep.subr.bf16.mxu1 %v6086_v26 }
0x194c   :  { %6089 = vmatpush3.bf16.msra.mxu1 %v6086_v26 }
0x1951   :  { %v6498_v45 = vpop.eup %6497 }
0x1952   :  { %v3277_v48 = vsel %vm81_vm0, %v6498_v45, 0.0  ;;  %v6500_v30 = vpop.eup %6499 }
0x1953   :  { %3278 = vadd.xlane.f32.xlu0 %v3277_v48  ;;  %v3274_v34 = vsel %vm81_vm0, %v6500_v30, 0.0 }
0x1957   :  { %3275 = vadd.xlane.f32.xlu0 %v3274_v34 }
0x196d   :  { %6354 = vrot.lane.b32.xlu0 %v7350_v46, %s6560_s1  ;;  %s7796_s1 = smov 24  }
0x19e0   :  { %v3279_v40 = vpop.xlane.xlu0 %3278 }
0x19e1   :  { %6501 = vrcp.f32 %v3279_v40 }
0x19e4   :  { %v3276_v47 = vpop.xlane.xlu0 %3275 }
0x19e5   :  { %6503 = vrcp.f32 %v3276_v47 }
0x19e8   :  { %v6355_v19 = vpop.permute.xlu0 %6354 }
0x19e9   :  { %v6357_v36 = vunpack.i.h.bf16 %v6355_v19  ;;  %v6356_v41 = vunpack.i.l.bf16 %v6355_v19 }
0x19eb   :  { %v6090_v16 = vpack.c.bf16 %v6357_v36, %v6356_v41  ;;  %v6502_v56 = vpop.eup %6501 }
0x19ec   :  { %v3283_v37 = vmul.f32 %v6502_v56, %v6498_v45 }
0x19ed   :  { %6092 = vmatprep.subr.msk.bf16.mxu1 %vm6776_vm3, %v6090_v16 }
0x19ef   :  { %v6504_v17 = vpop.eup %6503 }
0x19f0   :  { %v3282_v22 = vmul.f32 %v6504_v17, %v6500_v30 }
0x19f2   :  { %5717 = vmatprep.mubr.msk.f32.mxu1 %vm81_vm0, %v3282_v22 }
0x19f3   :  { %5718 = vmatmul.mubr.msk.f32.vlgmr.msra.gmra.mrb[30].mxu1 %vm81_vm0, %v3283_v37 }
0x19f4   :  { %6095 = vmatpush3.bf16.xpose.msk.msra.mxu1 %vm6776_vm3, %v6090_v16  ;;  %5724 = vmatprep.mubr.msk.f32.mxu1 %vm302_vm2, %v7346_v27 }
0x19fb   :  { %5725 = vmatmul.mubr.msk.f32.vlgmr.msra.gmra.mrb[32].mxu1 %vm302_vm2, %v7342_v15 }
0x1ac6   :  { %v7364_v32 = vpop.f32.mrb[30].mxu1 }
0x1ac7   :  { %v7366_v49 = vpop.f32.mrb[31].mxu1 }
0x1ace   :  { %v5726_v50 = vpop.f32.mrb[32].mxu1 }
0x1acf   :  { %v3491_v51 = vmul.f32 0.35355338, %v5726_v50  ;;  %v3481_v54 = vpop.f32.mrb[33].mxu1 }
0x1ad0   :  { %v3490_v55 = vmul.f32 0.35355338, %v3481_v54 }
0x1ad1   :  { %v3495_v33 = vsel %vm81_vm0, %v3491_v51, -inf }
0x1ad2   :  { %3496 = vmax.xlane.f32.xlu0 %v3495_v33  ;;  %v3492_v58 = vsel %vm81_vm0, %v3490_v55, -inf }
0x1ad3   :  { %3493 = vmax.xlane.f32.xlu1 %v3492_v58 }
0x1ae4   :  { %6359 = vrot.lane.b32.xlu1 %v7350_v46, %s7788_s27 }
0x1ae8   :  { %3601 = vrot.lane.b32.xlu1 %v7346_v27, %s6553_s22 }
0x1b5f   :  { %v3497_v62 = vpop.xlane.xlu0 %3496 }
0x1b60   :  { %v3499_v60 = vsub.f32 %v3491_v51, %v3497_v62  ;;  %v3494_v43 = vpop.xlane.xlu1 %3493 }
0x1b61   :  { %v3498_v53 = vsub.f32 %v3490_v55, %v3494_v43 }
0x1b62   :  { %v3502_v61 = vmul.f32 1.442695, %v3499_v60 }
0x1b63   :  { %v3500_v14 = vmul.f32 1.442695, %v3498_v53 }
0x1b64   :  { %6505 = vpow2.f32 %v3502_v61  ;;  %v6360_v39 = vpop.permute.xlu1 %6359 }
0x1b65   :  { %6507 = vpow2.f32 %v3500_v14  ;;  %v6362_v28 = vunpack.i.h.bf16 %v6360_v39  ;;  %v6361_v29 = vunpack.i.l.bf16 %v6360_v39 }
0x1b67   :  { %v6096_v13 = vpack.c.bf16 %v6362_v28, %v6361_v29 }
0x1b68   :  { %v3602_v52 = vpop.permute.xlu1 %3601 }
0x1b69   :  { %6097 = vmatprep.subr.bf16.mxu0 %v6096_v13 }
0x1b6a   :  { %6099 = vmatpush3.bf16.msra.mxu0 %v6096_v13 }
0x1b6e   :  { %v6506_v0 = vpop.eup %6505 }
0x1b6f   :  { %v6508_v1 = vpop.eup %6507  ;;  %v3507_v59 = vsel %vm81_vm0, %v6506_v0, 0.0 }
0x1b70   :  { %3508 = vadd.xlane.f32.xlu0 %v3507_v59  ;;  %v3504_v5 = vsel %vm81_vm0, %v6508_v1, 0.0 }
0x1b71   :  { %3505 = vadd.xlane.f32.xlu1 %v3504_v5 }
0x1b82   :  { %3603 = vrot.lane.b32.xlu1 %v7342_v15, %s6553_s22  ;;  %s7794_s22 = smov 8  }
0x1b86   :  { %6364 = vrot.lane.b32.xlu0 %v7350_v46, %s6554_s23  ;;  %s7795_s23 = smov 16  }
0x1bfd   :  { %v3509_v20 = vpop.xlane.xlu0 %3508 }
0x1bfe   :  { %6509 = vrcp.f32 %v3509_v20  ;;  %v3506_v6 = vpop.xlane.xlu1 %3505 }
0x1bff   :  { %6511 = vrcp.f32 %v3506_v6 }
0x1c01   :  { %v6365_v7 = vpop.permute.xlu0 %6364 }
0x1c02   :  { %v6367_v8 = vunpack.i.h.bf16 %v6365_v7  ;;  %v6366_v9 = vunpack.i.l.bf16 %v6365_v7  ;;  %v3604_v24 = vpop.permute.xlu1 %3603 }
0x1c04   :  { %v6100_v10 = vpack.c.bf16 %v6367_v8, %v6366_v9 }
0x1c06   :  { %6102 = vmatprep.subr.msk.bf16.mxu0 %vm6776_vm3, %v6100_v10 }
0x1c08   :  { %v6510_v11 = vpop.eup %6509 }
0x1c09   :  { %v6512_v35 = vpop.eup %6511  ;;  %v3513_v23 = vmul.f32 %v6510_v11, %v6506_v0 }
0x1c0a   :  { %v3512_v18 = vmul.f32 %v6512_v35, %v6508_v1 }
0x1c0c   :  { %5731 = vmatprep.mubr.msk.f32.mxu0 %vm81_vm0, %v3512_v18 }
0x1c0d   :  { %5732 = vmatmul.mubr.msk.f32.vlgmr.msra.gmra.mrb[40].mxu0 %vm81_vm0, %v3513_v23 }
0x1c0e   :  { %6105 = vmatpush3.bf16.xpose.msk.msra.mxu0 %vm6776_vm3, %v6100_v10  ;;  %5738 = vmatprep.mubr.msk.f32.mxu0 %vm302_vm2, %v3602_v52 }
0x1c15   :  { %5739 = vmatmul.mubr.msk.f32.vlgmr.msra.gmra.mrb[42].mxu0 %vm302_vm2, %v3604_v24 }
0x1ce0   :  { %v7388_v25 = vpop.f32.mrb[40].mxu0 }
0x1ce1   :  { %v7390_v26 = vpop.f32.mrb[41].mxu0 }
0x1ce8   :  { %v5740_v45 = vpop.f32.mrb[42].mxu0 }
0x1ce9   :  { %v3693_v48 = vmul.f32 0.35355338, %v5740_v45  ;;  %v3683_v30 = vpop.f32.mrb[43].mxu0 }
0x1cea   :  { %v3692_v34 = vmul.f32 0.35355338, %v3683_v30 }
0x1ceb   :  { %v3697_v40 = vsel %vm81_vm0, %v3693_v48, -inf }
0x1cec   :  { %3698 = vmax.xlane.f32.xlu1 %v3697_v40  ;;  %v3694_v47 = vsel %vm81_vm0, %v3692_v34, -inf }
0x1ced   :  { %3695 = vmax.xlane.f32.xlu0 %v3694_v47 }
0x1cfd   :  { %6369 = vrot.lane.b32.xlu1 %v7350_v46, %s7790_s4 }
0x1d01   :  { %3803 = vrot.lane.b32.xlu1 %v7346_v27, %s7787_s3 }
0x1d05   :  { %3805 = vrot.lane.b32.xlu1 %v7342_v15, %s7787_s3 }
0x1d79   :  { %v3699_v19 = vpop.xlane.xlu1 %3698 }
0x1d7a   :  { %v3701_v36 = vsub.f32 %v3693_v48, %v3699_v19  ;;  %v3696_v41 = vpop.xlane.xlu0 %3695 }
0x1d7b   :  { %v3700_v16 = vsub.f32 %v3692_v34, %v3696_v41 }
0x1d7c   :  { %v3704_v56 = vmul.f32 1.442695, %v3701_v36 }
0x1d7d   :  { %v3702_v17 = vmul.f32 1.442695, %v3700_v16  ;;  %v6370_v22 = vpop.permute.xlu1 %6369 }
0x1d7e   :  { %6513 = vpow2.f32 %v3704_v56  ;;  %v6372_v37 = vunpack.i.h.bf16 %v6370_v22  ;;  %v6371_v50 = vunpack.i.l.bf16 %v6370_v22 }
0x1d7f   :  { %6515 = vpow2.f32 %v3702_v17 }
0x1d80   :  { %v6106_v51 = vpack.c.bf16 %v6372_v37, %v6371_v50 }
0x1d81   :  { %v3804_v0 = vpop.permute.xlu1 %3803 }
0x1d82   :  { %6107 = vmatprep.subr.bf16.mxu1 %v6106_v51 }
0x1d83   :  { %6109 = vmatpush3.bf16.msra.mxu1 %v6106_v51 }
0x1d85   :  { %v3806_v1 = vpop.permute.xlu1 %3805 }
0x1d88   :  { %v6514_v54 = vpop.eup %6513 }
0x1d89   :  { %v3709_v55 = vsel %vm81_vm0, %v6514_v54, 0.0  ;;  %v6516_v33 = vpop.eup %6515 }
0x1d8a   :  { %3710 = vadd.xlane.f32.xlu0 %v3709_v55  ;;  %v3706_v58 = vsel %vm81_vm0, %v6516_v33, 0.0 }
0x1d8e   :  { %3707 = vadd.xlane.f32.xlu0 %v3706_v58 }
0x1da4   :  { %6374 = vrot.lane.b32.xlu0 %v7350_v46, %s7786_s30 }
0x1e17   :  { %v3711_v62 = vpop.xlane.xlu0 %3710 }
0x1e18   :  { %6517 = vrcp.f32 %v3711_v62 }
0x1e1b   :  { %v3708_v60 = vpop.xlane.xlu0 %3707 }
0x1e1c   :  { %6519 = vrcp.f32 %v3708_v60 }
0x1e1f   :  { %v6375_v43 = vpop.permute.xlu0 %6374 }
0x1e20   :  { %v6377_v53 = vunpack.i.h.bf16 %v6375_v43  ;;  %v6376_v61 = vunpack.i.l.bf16 %v6375_v43 }
0x1e22   :  { %v6110_v14 = vpack.c.bf16 %v6377_v53, %v6376_v61  ;;  %v6518_v39 = vpop.eup %6517 }
0x1e23   :  { %v3715_v13 = vmul.f32 %v6518_v39, %v6514_v54 }
0x1e24   :  { %6112 = vmatprep.subr.msk.bf16.mxu1 %vm6776_vm3, %v6110_v14 }
0x1e26   :  { %v6520_v28 = vpop.eup %6519 }
0x1e27   :  { %v3714_v29 = vmul.f32 %v6520_v28, %v6516_v33 }
0x1e29   :  { %5745 = vmatprep.mubr.msk.f32.mxu1 %vm81_vm0, %v3714_v29 }
0x1e2a   :  { %5746 = vmatmul.mubr.msk.f32.vlgmr.msra.gmra.mrb[34].mxu1 %vm81_vm0, %v3715_v13 }
0x1e2b   :  { %6115 = vmatpush3.bf16.xpose.msk.msra.mxu1 %vm6776_vm3, %v6110_v14  ;;  %5752 = vmatprep.mubr.msk.f32.mxu1 %vm302_vm2, %v3804_v0 }
0x1e32   :  { %5753 = vmatmul.mubr.msk.f32.vlgmr.msra.gmra.mrb[36].mxu1 %vm302_vm2, %v3806_v1 }
0x1efd   :  { %v7412_v59 = vpop.f32.mrb[34].mxu1 }
0x1efe   :  { %v7414_v5 = vpop.f32.mrb[35].mxu1 }
0x1f05   :  { %v5754_v52 = vpop.f32.mrb[36].mxu1 }
0x1f06   :  { %v3895_v20 = vmul.f32 0.35355338, %v5754_v52  ;;  %v3885_v6 = vpop.f32.mrb[37].mxu1 }
0x1f07   :  { %v3894_v7 = vmul.f32 0.35355338, %v3885_v6  ;;  %v5144_v6 = vld [vmem:[%s7729_s6 + $0x20] sm:$0xff] }
0x1f08   :  { %v3899_v8 = vsel %vm81_vm0, %v3895_v20, -inf }
0x1f09   :  { %3900 = vmax.xlane.f32.xlu1 %v3899_v8  ;;  %v3896_v9 = vsel %vm81_vm0, %v3894_v7, -inf }
0x1f0a   :  { %3897 = vmax.xlane.f32.xlu0 %v3896_v9 }
0x1f1a   :  { %6379 = vrot.lane.b32.xlu1 %v7350_v46, %s7789_s29 }
0x1f1e   :  { %4005 = vrot.lane.b32.xlu1 %v7346_v27, %s7792_s2 }
0x1f22   :  { %4007 = vrot.lane.b32.xlu1 %v7342_v15, %s7792_s2 }
0x1f96   :  { %v3901_v10 = vpop.xlane.xlu1 %3900 }
0x1f97   :  { %v3903_v11 = vsub.f32 %v3895_v20, %v3901_v10  ;;  %v3898_v35 = vpop.xlane.xlu0 %3897 }
0x1f98   :  { %v3902_v18 = vsub.f32 %v3894_v7, %v3898_v35  ;;  %v5145_v7 = vld [vmem:[%s7729_s6 + $0x28] sm:$0xff] }
0x1f99   :  { %v3906_v23 = vmul.f32 1.442695, %v3903_v11  ;;  %v6130_v8 = vpack.c.bf16 %v5145_v7, %v5144_v6 }
0x1f9a   :  { %v3904_v24 = vmul.f32 1.442695, %v3902_v18  ;;  %v6380_v45 = vpop.permute.xlu1 %6379 }
0x1f9b   :  { %6521 = vpow2.f32 %v3906_v23  ;;  %v6382_v48 = vunpack.i.h.bf16 %v6380_v45  ;;  %v6381_v30 = vunpack.i.l.bf16 %v6380_v45 }
0x1f9c   :  { %6523 = vpow2.f32 %v3904_v24 }
0x1f9d   :  { %v6116_v34 = vpack.c.bf16 %v6382_v48, %v6381_v30 }
0x1f9e   :  { %v4006_v54 = vpop.permute.xlu1 %4005 }
0x1f9f   :  { %6117 = vmatprep.subr.bf16.mxu0 %v6116_v34 }
0x1fa0   :  { %6119 = vmatpush3.bf16.msra.mxu0 %v6116_v34 }
0x1fa2   :  { %v4008_v55 = vpop.permute.xlu1 %4007 }
0x1fa5   :  { %v6522_v40 = vpop.eup %6521 }
0x1fa6   :  { %v3911_v27 = vsel %vm81_vm0, %v6522_v40, 0.0  ;;  %v6524_v47 = vpop.eup %6523 }
0x1fa7   :  { %3912 = vadd.xlane.f32.xlu0 %v3911_v27  ;;  %v3908_v15 = vsel %vm81_vm0, %v6524_v47, 0.0 }
0x1fab   :  { %3909 = vadd.xlane.f32.xlu0 %v3908_v15 }
0x1fc1   :  { %6384 = vrot.lane.b32.xlu0 %v7350_v46, %s7791_s25 }
0x2034   :  { %v3913_v19 = vpop.xlane.xlu0 %3912 }
0x2035   :  { %6525 = vrcp.f32 %v3913_v19 }
0x2038   :  { %v3910_v36 = vpop.xlane.xlu0 %3909 }
0x2039   :  { %6527 = vrcp.f32 %v3910_v36 }
0x203c   :  { %v6385_v41 = vpop.permute.xlu0 %6384 }
0x203d   :  { %v6387_v16 = vunpack.i.h.bf16 %v6385_v41  ;;  %v6386_v56 = vunpack.i.l.bf16 %v6385_v41 }
0x203f   :  { %v6120_v17 = vpack.c.bf16 %v6387_v16, %v6386_v56  ;;  %v6526_v22 = vpop.eup %6525 }
0x2040   :  { %v3917_v51 = vmul.f32 %v6526_v22, %v6522_v40 }
0x2041   :  { %6122 = vmatprep.subr.msk.bf16.mxu0 %vm6776_vm3, %v6120_v17 }
0x2043   :  { %v6528_v37 = vpop.eup %6527 }
0x2044   :  { %v3916_v50 = vmul.f32 %v6528_v37, %v6524_v47 }
0x2046   :  { %5759 = vmatprep.mubr.msk.f32.mxu0 %vm81_vm0, %v3916_v50 }
0x2047   :  { %5760 = vmatmul.mubr.msk.f32.vlgmr.msra.gmra.mrb[44].mxu0 %vm81_vm0, %v3917_v51 }
0x2048   :  { %6125 = vmatpush3.bf16.xpose.msk.msra.mxu0 %vm6776_vm3, %v6120_v17  ;;  %5766 = vmatprep.mubr.msk.f32.mxu0 %vm302_vm2, %v4006_v54  ;;  %v5149_v17 = vld [vmem:[%s7730_s7 + $0x1] ss:$0 sm:$0xff] }
0x204f   :  { %5767 = vmatmul.mubr.msk.f32.vlgmr.msra.gmra.mrb[46].mxu0 %vm302_vm2, %v4008_v55 }
0x211a   :  { %v5761_v33 = vpop.f32.mrb[44].mxu0 }
0x211b   :  { %v3996_v58 = vpop.f32.mrb[45].mxu0 }
0x2122   :  { %v5768_v62 = vpop.f32.mrb[46].mxu0 }
0x2123   :  { %v4097_v60 = vmul.f32 0.35355338, %v5768_v62  ;;  %v4087_v43 = vpop.f32.mrb[47].mxu0 }
0x2124   :  { %v4096_v53 = vmul.f32 0.35355338, %v4087_v43 }
0x2125   :  { %v4101_v61 = vsel %vm81_vm0, %v4097_v60, -inf }
0x2126   :  { %4102 = vmax.xlane.f32.xlu1 %v4101_v61  ;;  %v4098_v14 = vsel %vm81_vm0, %v4096_v53, -inf }
0x2127   :  { %4099 = vmax.xlane.f32.xlu0 %v4098_v14 }
0x2137   :  { %6389 = vrot.lane.b32.xlu1 %v7350_v46, %s7793_s28 }
0x213b   :  { %3375 = vrot.lane.b32.xlu1 %v7326_v2, %s7794_s22 }
0x213f   :  { %3381 = vrot.lane.b32.xlu1 %v7332_v4, %s7795_s23 }
0x2143   :  { %3389 = vrot.lane.b32.xlu1 %v7366_v49, %s7796_s1 }
0x2147   :  { %4209 = vrot.lane.b32.xlu1 %v7414_v5, %s7794_s22 }
0x214b   :  { %4217 = vrot.lane.b32.xlu1 %v3996_v58, %s7795_s23 }
0x21b3   :  { %v4103_v42 = vpop.xlane.xlu1 %4102 }
0x21b4   :  { %v4105_v39 = vsub.f32 %v4097_v60, %v4103_v42  ;;  %v4100_v28 = vpop.xlane.xlu0 %4099 }
0x21b5   :  { %v4104_v29 = vsub.f32 %v4096_v53, %v4100_v28 }
0x21b6   :  { %v4108_v13 = vmul.f32 1.442695, %v4105_v39 }
0x21b7   :  { %v4106_v46 = vmul.f32 1.442695, %v4104_v29  ;;  %v6390_v0 = vpop.permute.xlu1 %6389 }
0x21b8   :  { %v6392_v1 = vunpack.i.h.bf16 %v6390_v0  ;;  %v6391_v2 = vunpack.i.l.bf16 %v6390_v0 }
0x21b9   :  { %6529 = vpow2.f32 %v4106_v46 }
0x21ba   :  { %v6126_v52 = vpack.c.bf16 %v6392_v1, %v6391_v2  ;;  %6531 = vpow2.f32 %v4108_v13 }
0x21bb   :  { %v3376_v10 = vpop.permute.xlu1 %3375 }
0x21bc   :  { %6127 = vmatprep.subr.bf16.mxu1 %v6126_v52  ;;  %v3396_v47 = vsel %vm302_vm2, %v7294_v57, %v3376_v10  ;;  %v5161_v10 = vld [vmem:[%s7731_s10 + $0x38] sm:$0xff] }
0x21bd   :  { %6129 = vmatpush3.bf16.msra.mxu1 %v6126_v52 }
0x21be   :  { %6131 = vmatprep.subr.bf16.mxu1 %v6130_v8 }
0x21bf   :  { %v3382_v18 = vpop.permute.xlu1 %3381 }
0x21c3   :  { %v6530_v4 = vpop.eup %6529  ;;  %v3390_v40 = vpop.permute.xlu1 %3389 }
0x21c4   :  { %v4110_v49 = vsel %vm81_vm0, %v6530_v4, 0.0  ;;  %v6532_v5 = vpop.eup %6531 }
0x21c5   :  { %4111 = vadd.xlane.f32.xlu0 %v4110_v49  ;;  %v4113_v20 = vsel %vm81_vm0, %v6532_v5, 0.0 }
0x21c9   :  { %4114 = vadd.xlane.f32.xlu0 %v4113_v20 }
0x21df   :  { %3373 = vrot.lane.b32.xlu0 %v7328_v3, %s7794_s22 }
0x21e3   :  { %3383 = vrot.lane.b32.xlu0 %v7330_v38, %s7795_s23 }
0x21e7   :  { %3391 = vrot.lane.b32.xlu0 %v7364_v32, %s7796_s1  ;;  %v5146_v32 = vld [vmem:[%s7729_s6 + $0x30] sm:$0xff] }
0x21eb   :  { %4211 = vrot.lane.b32.xlu0 %v7412_v59, %s7794_s22  ;;  %v5147_v59 = vld [vmem:[%s7729_s6 + $0x38] sm:$0xff] }
0x21ec   :  { %v6134_v34 = vpack.c.bf16 %v5147_v59, %v5146_v32 }
0x21ef   :  { %4219 = vrot.lane.b32.xlu0 %v5761_v33, %s7795_s23  ;;  %v4210_v33 = vpop.permute.xlu1 %4209 }
0x21f0   :  { %v4231_v60 = vsel %vm302_vm2, %v7390_v26, %v4210_v33 }
0x21f3   :  { %v4218_v62 = vpop.permute.xlu1 %4217 }
0x21f4   :  { %v4233_v53 = vsel %vm81_vm0, %v4231_v60, %v4218_v62  ;;  %v5172_v60 = vld [vmem:[%s7734_s12 + $0xa0] sm:$0xff] }
0x2252   :  { %v4112_v3 = vpop.xlane.xlu0 %4111 }
0x2253   :  { %6533 = vrcp.f32 %v4112_v3 }
0x2256   :  { %v4115_v9 = vpop.xlane.xlu0 %4114 }
0x2257   :  { %6535 = vrcp.f32 %v4115_v9  ;;  %v5160_v9 = vld [vmem:[%s7731_s10 + $0x30] sm:$0xff] }
0x225a   :  { %v3374_v11 = vpop.permute.xlu0 %3373 }
0x225b   :  { %v3395_v38 = vsel %vm302_vm2, %v7296_v63, %v3374_v11  ;;  %v6142_v11 = vpack.c.bf16 %v5161_v10, %v5160_v9 }
0x225c   :  { %v3397_v45 = vsel %vm81_vm0, %v3395_v38, %v3382_v18 }
0x225d   :  { %v6534_v35 = vpop.eup %6533  ;;  %v3399_v63 = vsel %vm1131_vm4, %v3397_v45, %v3390_v40 }
0x225e   :  { %v4118_v23 = vmul.f32 %v6534_v35, %v6530_v4  ;;  %v3384_v30 = vpop.permute.xlu0 %3383 }
0x225f   :  { %v3398_v15 = vsel %vm81_vm0, %v3396_v47, %v3384_v30 }
0x2260   :  { %5773 = vmatprep.mubr.msk.f32.mxu1 %vm81_vm0, %v4118_v23 }
0x2261   :  { %v6536_v24 = vpop.eup %6535 }
0x2262   :  { %v4119_v48 = vmul.f32 %v6536_v24, %v6532_v5  ;;  %v3392_v27 = vpop.permute.xlu0 %3391 }
0x2263   :  { %v3400_v19 = vsel %vm1131_vm4, %v3398_v15, %v3392_v27 }
0x2264   :  { %5774 = vmatmul.mubr.msk.f32.vlgmr.msra.gmra.mrb[38].mxu1 %vm81_vm0, %v4119_v48 }
0x2265   :  { %6133 = vmatpush3.bf16.msra.mxu1 %v6130_v8  ;;  %5784 = vmatprep.mubr.msk.f32.mxu1 %vm198_vm1, %v3399_v63 }
0x2266   :  { %6135 = vmatprep.subr.bf16.mxu1 %v6134_v34  ;;  %v4212_v55 = vpop.permute.xlu0 %4211 }
0x2269   :  { %6137 = vmatpush3.bf16.msra.mxu1 %v6134_v34 }
0x226a   :  { %v4220_v58 = vpop.permute.xlu0 %4219 }
0x226c   :  { %5785 = vmatmul.mubr.msk.f32.vlgmr.msra.gmra.mrb[40].mxu1 %vm198_vm1, %v3400_v19 }
0x2337   :  { %v5775_v36 = vpop.f32.mrb[38].mxu1 }
0x2338   :  { %4227 = vrot.lane.b32.xlu0 %v5775_v36, %s7796_s1  ;;  %v4198_v41 = vpop.f32.mrb[39].mxu1  ;;  %v7534_v36 = vld [vmem:[%s7732_s8 + $0x1] ss:$0 sm:$0xff] }
0x2339   :  { %4225 = vrot.lane.b32.xlu1 %v4198_v41, %s7796_s1 }
0x233f   :  { %v5786_v16 = vpop.f32.mrb[40].mxu1 }
0x2340   :  { %v4328_v56 = vpop.f32.mrb[41].mxu1  ;;  %v4334_v57 = vadd.f32 %v5786_v16, %v5149_v17 }
0x2341   :  { %v4329_v37 = vadd.f32 %v5149_v17, %v4328_v56 }
0x2342   :  { %v4348_v22 = vadd.f32 %v4334_v57, %v7206_v31  ;;  %v4232_v31 = vsel %vm302_vm2, %v7388_v25, %v4212_v55  ;;  %v5170_v55 = vld [vmem:[%s7734_s12 + $0x90] sm:$0xff] }
0x2343   :  { %v4347_v51 = vadd.f32 %v4329_v37, %v7200_v44  ;;  %v4234_v14 = vsel %vm81_vm0, %v4232_v31, %v4220_v58  ;;  %v5171_v58 = vld [vmem:[%s7734_s12 + $0x98] sm:$0xff]  ;;  %v5174_v31 = vld [vmem:[%s7734_s12 + $0xb0] sm:$0xff] }
0x2344   :  { %v4358_v50 = vsel %vm198_vm1, %v4348_v22, 0.0  ;;  %v6150_v62 = vpack.c.bf16 %v5171_v58, %v5170_v55 }
0x2345   :  { %v4355_v54 = vsel %vm198_vm1, %v4347_v51, 0.0 }
0x2357   :  { %4359 = vadd.xlane.f32.xlu0 %v4358_v50 }
0x235d   :  { %4356 = vadd.xlane.f32.xlu1 %v4355_v54  ;;  %v5169_v54 = vld [vmem:[%s7734_s12 + $0x88] sm:$0xff] }
0x23aa   :  { %v4228_v43 = vpop.permute.xlu0 %4227 }
0x23ab   :  { %v4226_v61 = vpop.permute.xlu1 %4225  ;;  %v4236_v42 = vsel %vm1131_vm4, %v4234_v14, %v4228_v43  ;;  %v5173_v43 = vld [vmem:[%s7734_s12 + $0xa8] sm:$0xff] }
0x23ac   :  { %v4235_v44 = vsel %vm1131_vm4, %v4233_v53, %v4226_v61  ;;  %v6154_v53 = vpack.c.bf16 %v5173_v43, %v5172_v60  ;;  %v5175_v61 = vld [vmem:[%s7734_s12 + $0xb8] sm:$0xff] }
0x23ad   :  { %5787 = vmatprep.mubr.msk.f32.mxu1 %vm198_vm1, %v4235_v44  ;;  %v6158_v14 = vpack.c.bf16 %v5175_v61, %v5174_v31  ;;  %v5176_v44 = vld [vmem:[%s7734_s12 + $0xc0] sm:$0xff] }
0x23ae   :  { %5788 = vmatmul.mubr.msk.f32.gmra.mrb[42].mxu1 %vm198_vm1, %v4236_v42  ;;  %v5177_v42 = vld [vmem:[%s7734_s12 + $0xc8] sm:$0xff] }
0x23e4   :  { %v4360_v39 = vpop.xlane.xlu0 %4359 }
0x23e5   :  { %v4368_v26 = vmul.f32 0.03125, %v4360_v39  ;;  %v6162_v39 = vpack.c.bf16 %v5177_v42, %v5176_v44 }
0x23e7   :  { %v4372_v46 = vsub.f32 %v4348_v22, %v4368_v26  ;;  %v5179_v26 = vld [vmem:[%s7734_s12 + $0xd8] sm:$0xff] }
0x23e9   :  { %v4376_v5 = vmul.f32 %v4372_v46, %v4372_v46 }
0x23ea   :  { %v4357_v28 = vpop.xlane.xlu1 %4356 }
0x23eb   :  { %v4367_v29 = vmul.f32 0.03125, %v4357_v28  ;;  %v4382_v7 = vsel %vm198_vm1, %v4376_v5, 0.0  ;;  %v5178_v28 = vld [vmem:[%s7734_s12 + $0xd0] sm:$0xff] }
0x23ed   :  { %v4371_v25 = vsub.f32 %v4347_v51, %v4367_v29  ;;  %v5168_v51 = vld [vmem:[%s7734_s12 + $0x80] sm:$0xff]  ;;  %v6166_v29 = vpack.c.bf16 %v5179_v26, %v5178_v28  ;;  %v4732_v28 = vld [vmem:[%s7739_s16 + $0x8] sm:$0xff] }
0x23ee   :  { %v6146_v33 = vpack.c.bf16 %v5169_v54, %v5168_v51 }
0x23ef   :  { %v4375_v6 = vmul.f32 %v4371_v25, %v4371_v25 }
0x23f0   :  { %6147 = vmatprep.subr.bf16.mxu1 %v6146_v33 }
0x23f1   :  { %v4379_v8 = vsel %vm198_vm1, %v4375_v6, 0.0  ;;  %6149 = vmatpush3.bf16.msra.mxu1 %v6146_v33 }
0x23f2   :  { %6151 = vmatprep.subr.bf16.mxu1 %v6150_v62 }
0x23f5   :  { %6153 = vmatpush3.bf16.msra.mxu1 %v6150_v62 }
0x23f6   :  { %6155 = vmatprep.subr.bf16.mxu1 %v6154_v53 }
0x23f9   :  { %6157 = vmatpush3.bf16.msra.mxu1 %v6154_v53 }
0x23fa   :  { %6159 = vmatprep.subr.bf16.mxu1 %v6158_v14 }
0x23fd   :  { %6161 = vmatpush3.bf16.msra.mxu1 %v6158_v14 }
0x23fe   :  { %6163 = vmatprep.subr.bf16.mxu1 %v6162_v39 }
0x2401   :  { %6165 = vmatpush3.bf16.msra.mxu1 %v6162_v39  ;;  %v4731_v39 = vld [vmem:[%s7739_s16] sm:$0xff] }
0x2402   :  { %6167 = vmatprep.subr.bf16.mxu1 %v6166_v29  ;;  %v6178_v26 = vpack.c.bf16 %v4732_v28, %v4731_v39  ;;  %v4840_v39 = vld [vmem:[%s7742_s19] sm:$0x3] }
0x2405   :  { %6169 = vmatpush3.bf16.msra.mxu1 %v6166_v29  ;;  %v4733_v29 = vld [vmem:[%s7739_s16 + $0x10] sm:$0xff] }
0x2481   :  { %v5789_v13 = vpop.f32.mrb[42].mxu1 }
0x2482   :  { %v4344_v0 = vadd.f32 %v5789_v13, %v5149_v17  ;;  %v4338_v1 = vpop.f32.mrb[43].mxu1  ;;  %v5180_v13 = vld [vmem:[%s7734_s12 + $0xe0] sm:$0xff] }
0x2483   :  { %v4339_v2 = vadd.f32 %v5149_v17, %v4338_v1  ;;  %v5157_v17 = vld [vmem:[%s7733_s9 + $0x1] ss:$0 sm:$0xff]  ;;  %v5182_v1 = vld [vmem:[%s7734_s12 + $0xf0] sm:$0xff] }
0x2484   :  { %v4350_v52 = vadd.f32 %v4344_v0, %v7263_v12  ;;  %v5158_v12 = vld [vmem:[%s7731_s10 + $0x20] sm:$0xff] }
0x2485   :  { %v4349_v4 = vadd.f32 %v4339_v2, %v7253_v21  ;;  %v5159_v21 = vld [vmem:[%s7731_s10 + $0x28] sm:$0xff] }
0x2486   :  { %v4364_v49 = vsel %vm198_vm1, %v4350_v52, 0.0  ;;  %v6138_v3 = vpack.c.bf16 %v5159_v21, %v5158_v12 }
0x2487   :  { %4365 = vadd.xlane.f32.xlu1 %v4364_v49  ;;  %v4361_v20 = vsel %vm198_vm1, %v4349_v4, 0.0 }
0x2488   :  { %4362 = vadd.xlane.f32.xlu0 %v4361_v20  ;;  %6139 = vmatprep.subr.bf16.mxu0 %v6138_v3 }
0x2489   :  { %6141 = vmatpush3.bf16.msra.mxu0 %v6138_v3 }
0x248a   :  { %6143 = vmatprep.subr.bf16.mxu0 %v6142_v11 }
0x248b   :  { %4383 = vadd.xlane.f32.xlu1 %v4382_v7 }
0x248c   :  { %4380 = vadd.xlane.f32.xlu0 %v4379_v8 }
0x248d   :  { %6145 = vmatpush3.bf16.msra.mxu0 %v6142_v11 }
0x248e   :  { %6179 = vmatprep.subr.bf16.mxu0 %v6178_v26 }
0x2514   :  { %v4366_v35 = vpop.xlane.xlu1 %4365 }
0x2515   :  { %v4370_v18 = vmul.f32 0.03125, %v4366_v35  ;;  %v4363_v38 = vpop.xlane.xlu0 %4362  ;;  %v5163_v35 = vld [vmem:[%s7735_s11 + $0x1] ss:$0 sm:$0xff] }
0x2516   :  { %v4369_v23 = vmul.f32 0.03125, %v4363_v38 }
0x2517   :  { %v7521_v32 = vsub.f32 %v4350_v52, %v4370_v18 }
0x2518   :  { %v7523_v59 = vsub.f32 %v4349_v4, %v4369_v23  ;;  %v4384_v24 = vpop.xlane.xlu1 %4383 }
0x2519   :  { %v4392_v45 = vmul.f32 0.03125, %v4384_v24  ;;  %v4381_v48 = vpop.xlane.xlu0 %4380  ;;  %v4378_v30 = vmul.f32 %v7521_v32, %v7521_v32 }
0x251a   :  { %v4391_v34 = vmul.f32 0.03125, %v4381_v48  ;;  %v4377_v40 = vmul.f32 %v7523_v59, %v7523_v59 }
0x251b   :  { %v4396_v63 = vadd.f32 1e-05, %v4392_v45  ;;  %v4388_v27 = vsel %vm198_vm1, %v4378_v30, 0.0 }
0x251c   :  { %v4395_v47 = vadd.f32 1e-05, %v4391_v34  ;;  %4389 = vadd.xlane.f32.xlu1 %v4388_v27  ;;  %v4385_v15 = vsel %vm198_vm1, %v4377_v40, 0.0  ;;  %v5185_v27 = vld [vmem:[%s7736_s13 + $0x1] ss:$0 sm:$0xff] }
0x251d   :  { %6537 = vrsqrt.f32 %v4396_v63  ;;  %4386 = vadd.xlane.f32.xlu0 %v4385_v15 }
0x251e   :  { %6539 = vrsqrt.f32 %v4395_v47 }
0x2527   :  { %v6538_v19 = vpop.eup %6537 }
0x2528   :  { %v6540_v41 = vpop.eup %6539  ;;  %v4404_v16 = vmul.f32 %v6538_v19, %v4372_v46  ;;  %v5181_v46 = vld [vmem:[%s7734_s12 + $0xe8] sm:$0xff] }
0x2529   :  { %v4403_v56 = vmul.f32 %v6540_v41, %v4371_v25  ;;  %v6170_v0 = vpack.c.bf16 %v5181_v46, %v5180_v13  ;;  %v5183_v25 = vld [vmem:[%s7734_s12 + $0xf8] sm:$0xff] }
0x252a   :  { %v4414_v57 = vmul.f32 %v7534_v36, %v4404_v16  ;;  %v6174_v2 = vpack.c.bf16 %v5183_v25, %v5182_v1  ;;  %v4734_v13 = vld [vmem:[%s7739_s16 + $0x18] sm:$0xff] }
0x252b   :  { %v4413_v22 = vmul.f32 %v7534_v36, %v4403_v56  ;;  %6171 = vmatprep.subr.bf16.mxu1 %v6170_v0  ;;  %v6182_v46 = vpack.c.bf16 %v4734_v13, %v4733_v29  ;;  %v4917_v29 = vld [vmem:[%s7741_s20 + $0x18] sm:$0xff] }
0x252c   :  { %v7543_v50 = vadd.f32 %v5157_v17, %v4414_v57  ;;  %6173 = vmatpush3.bf16.msra.mxu1 %v6170_v0 }
0x252d   :  { %v7541_v37 = vadd.f32 %v5157_v17, %v4413_v22  ;;  %6175 = vmatprep.subr.bf16.mxu1 %v6174_v2 }
0x252f   :  { %5798 = vmatprep.mubr.msk.f32.mxu0 %vm198_vm1, %v7541_v37 }
0x2530   :  { %5799 = vmatmul.mubr.msk.f32.vlgmr.msra.gmra.mrb[48].mxu0 %vm198_vm1, %v7543_v50  ;;  %6177 = vmatpush3.bf16.msra.mxu1 %v6174_v2 }
0x2531   :  { %6181 = vmatpush3.bf16.msra.mxu0 %v6178_v26  ;;  %v4916_v26 = vld [vmem:[%s7741_s20 + $0x10] sm:$0xff] }
0x2532   :  { %6183 = vmatprep.subr.bf16.mxu0 %v6182_v46  ;;  %v6196_v13 = vpack.c.bf16 %v4917_v29, %v4916_v26 }
0x2535   :  { %6185 = vmatpush3.bf16.msra.mxu0 %v6182_v46  ;;  %v4918_v46 = vld [vmem:[%s7741_s20 + $0x20] sm:$0xff] }
0x25a9   :  { %v4390_v52 = vpop.xlane.xlu1 %4389 }
0x25aa   :  { %v4394_v4 = vmul.f32 0.03125, %v4390_v52  ;;  %v4387_v49 = vpop.xlane.xlu0 %4386 }
0x25ab   :  { %v4393_v5 = vmul.f32 0.03125, %v4387_v49 }
0x25ac   :  { %v4398_v20 = vadd.f32 1e-05, %v4394_v4 }
0x25ad   :  { %v4397_v6 = vadd.f32 1e-05, %v4393_v5 }
0x25ae   :  { %6541 = vrsqrt.f32 %v4398_v20 }
0x25af   :  { %6543 = vrsqrt.f32 %v4397_v6 }
0x25b8   :  { %v6542_v7 = vpop.eup %6541 }
0x25b9   :  { %v6544_v8 = vpop.eup %6543  ;;  %v4406_v12 = vmul.f32 %v6542_v7, %v7521_v32 }
0x25ba   :  { %v4405_v21 = vmul.f32 %v6544_v8, %v7523_v59 }
0x25bb   :  { %v4416_v3 = vmul.f32 %v7534_v36, %v4406_v12 }
0x25bc   :  { %v4415_v9 = vmul.f32 %v7534_v36, %v4405_v21 }
0x25bd   :  { %v4426_v11 = vadd.f32 %v5157_v17, %v4416_v3 }
0x25be   :  { %v4425_v10 = vadd.f32 %v5157_v17, %v4415_v9 }
0x25c0   :  { %5801 = vmatprep.mubr.msk.f32.mxu0 %vm198_vm1, %v4425_v10 }
0x25c1   :  { %5802 = vmatmul.mubr.msk.f32.gmra.mrb[50].mxu0 %vm198_vm1, %v4426_v11 }
0x2603   :  { %v5800_v18 = vpop.f32.mrb[48].mxu0 }
0x2604   :  { %v4524_v38 = vadd.f32 %v5800_v18, %v5163_v35  ;;  %v4518_v23 = vpop.f32.mrb[49].mxu0 }
0x2605   :  { %v4519_v32 = vadd.f32 %v5163_v35, %v4518_v23  ;;  %v5189_v23 = vld [vmem:[%s7738_s15 + $0x1] ss:$0 sm:$0xff] }
0x2606   :  { %v4538_v59 = vmax.f32 %v4524_v38, 0.0 }
0x2607   :  { %v4537_v24 = vmax.f32 %v4519_v32, 0.0 }
0x2609   :  { %5836 = vmatprep.mubr.f32.mxu1 %v4537_v24 }
0x260a   :  { %5837 = vmatmul.mubr.f32.vlgmr.msra.gmra.mrb[44].mxu1 %v4538_v59 }
0x2694   :  { %v5803_v45 = vpop.f32.mrb[50].mxu0 }
0x2695   :  { %v4534_v48 = vadd.f32 %v5803_v45, %v5163_v35  ;;  %v4528_v30 = vpop.f32.mrb[51].mxu0 }
0x2696   :  { %v4529_v34 = vadd.f32 %v5163_v35, %v4528_v30 }
0x2697   :  { %v4540_v63 = vmax.f32 %v4534_v48, 0.0  ;;  %v6567_v48 = vmov 0.0|0.0  }
0x2698   :  { %v4539_v40 = vmax.f32 %v4529_v34, 0.0  ;;  %6186 = vmatprep.subr.bf16.mxu0 %v6567_v48 }
0x269a   :  { %5839 = vmatprep.mubr.f32.mxu1 %v4539_v40 }
0x269b   :  { %5840 = vmatmul.mubr.f32.gmra.mrb[46].mxu1 %v4540_v63 }
0x26dd   :  { %v5838_v47 = vpop.f32.mrb[44].mxu1 }
0x26de   :  { %v4638_v15 = vadd.f32 %v5838_v47, %v5185_v27  ;;  %v4632_v19 = vpop.f32.mrb[45].mxu1 }
0x26df   :  { %v4633_v36 = vadd.f32 %v5185_v27, %v4632_v19 }
0x26e0   :  { %v4652_v41 = vadd.f32 %v4638_v15, %v7543_v50 }
0x26e1   :  { %v4651_v16 = vadd.f32 %v4633_v36, %v7541_v37 }
0x26e2   :  { %v4662_v56 = vsel %vm198_vm1, %v4652_v41, 0.0 }
0x26e3   :  { %4663 = vadd.xlane.f32.xlu1 %v4662_v56  ;;  %v4659_v17 = vsel %vm198_vm1, %v4651_v16, 0.0 }
0x26e4   :  { %4660 = vadd.xlane.f32.xlu0 %v4659_v17 }
0x276e   :  { %v5841_v57 = vpop.f32.mrb[46].mxu1 }
0x276f   :  { %v4648_v22 = vadd.f32 %v5841_v57, %v5185_v27  ;;  %v4642_v51 = vpop.f32.mrb[47].mxu1 }
0x2770   :  { %v4643_v54 = vadd.f32 %v5185_v27, %v4642_v51  ;;  %v4664_v55 = vpop.xlane.xlu1 %4663  ;;  %v4832_v51 = vld [vmem:[%s7740_s18] sm:$0xff] }
0x2771   :  { %v4654_v33 = vadd.f32 %v4648_v22, %v4426_v11  ;;  %v4672_v58 = vmul.f32 0.03125, %v4664_v55  ;;  %v4661_v62 = vpop.xlane.xlu0 %4660  ;;  %v5188_v11 = vld [vmem:[%s7737_s14 + $0x1] ss:$0 sm:$0xff]  ;;  %v4833_v22 = vld [vmem:[%s7740_s18 + $0x8] sm:$0xff] }
0x2772   :  { %v4653_v60 = vadd.f32 %v4643_v54, %v4425_v10  ;;  %v4671_v43 = vmul.f32 0.03125, %v4661_v62 }
0x2773   :  { %v4676_v53 = vsub.f32 %v4652_v41, %v4672_v58  ;;  %v4668_v50 = vsel %vm198_vm1, %v4654_v33, 0.0 }
0x2774   :  { %v4675_v37 = vsub.f32 %v4651_v16, %v4671_v43  ;;  %4669 = vadd.xlane.f32.xlu1 %v4668_v50  ;;  %v4665_v31 = vsel %vm198_vm1, %v4653_v60, 0.0  ;;  %v4835_v43 = vld [vmem:[%s7740_s18 + $0x18] sm:$0xff] }
0x2775   :  { %4666 = vadd.xlane.f32.xlu0 %v4665_v31  ;;  %v4680_v61 = vmul.f32 %v4676_v53, %v4676_v53 }
0x2776   :  { %v4679_v14 = vmul.f32 %v4675_v37, %v4675_v37 }
0x2777   :  { %v4686_v44 = vsel %vm198_vm1, %v4680_v61, 0.0 }
0x2778   :  { %4687 = vadd.xlane.f32.xlu1 %v4686_v44  ;;  %v4683_v42 = vsel %vm198_vm1, %v4679_v14, 0.0  ;;  %v4914_v14 = vld [vmem:[%s7741_s20] sm:$0xff]  ;;  %v4915_v44 = vld [vmem:[%s7741_s20 + $0x8] sm:$0xff] }
0x2779   :  { %4684 = vadd.xlane.f32.xlu0 %v4683_v42  ;;  %v6193_v28 = vpack.c.bf16 %v4915_v44, %v4914_v14 }
0x2801   :  { %v4670_v0 = vpop.xlane.xlu1 %4669 }
0x2802   :  { %v4674_v1 = vmul.f32 0.03125, %v4670_v0  ;;  %v4667_v25 = vpop.xlane.xlu0 %4666  ;;  %v4919_v0 = vld [vmem:[%s7741_s20 + $0x28] sm:$0xff] }
0x2803   :  { %v4673_v2 = vmul.f32 0.03125, %v4667_v25  ;;  %v4920_v25 = vld [vmem:[%s7741_s20 + $0x30] sm:$0xff] }
0x2804   :  { %v4678_v52 = vsub.f32 %v4654_v33, %v4674_v1  ;;  %v6199_v1 = vpack.c.bf16 %v4919_v0, %v4918_v46 }
0x2805   :  { %v4677_v4 = vsub.f32 %v4653_v60, %v4673_v2  ;;  %v4688_v49 = vpop.xlane.xlu1 %4687  ;;  %v6569_v60 = vmov 0.0   ;;  %v4921_v2 = vld [vmem:[%s7741_s20 + $0x38] sm:$0xff] }
0x2806   :  { %v4696_v5 = vmul.f32 0.03125, %v4688_v49  ;;  %v4685_v20 = vpop.xlane.xlu0 %4684  ;;  %v4682_v6 = vmul.f32 %v4678_v52, %v4678_v52  ;;  %v4923_v49 = vld [vmem:[%s7741_s20 + $0x48] sm:$0xff] }
0x2807   :  { %v4695_v7 = vmul.f32 0.03125, %v4685_v20  ;;  %v4681_v8 = vmul.f32 %v4677_v4, %v4677_v4  ;;  %v4924_v20 = vld [vmem:[%s7741_s20 + $0x50] sm:$0xff] }
0x2808   :  { %v4700_v12 = vadd.f32 1e-05, %v4696_v5  ;;  %v4692_v21 = vsel %vm198_vm1, %v4682_v6, 0.0  ;;  %v4925_v6 = vld [vmem:[%s7741_s20 + $0x58] sm:$0xff] }
0x2809   :  { %v4699_v3 = vadd.f32 1e-05, %v4695_v7  ;;  %4693 = vadd.xlane.f32.xlu1 %v4692_v21  ;;  %v4689_v9 = vsel %vm198_vm1, %v4681_v8, 0.0  ;;  %v6208_v7 = vpack.c.bf16 %v4925_v6, %v4924_v20  ;;  %v4926_v8 = vld [vmem:[%s7741_s20 + $0x60] sm:$0xff] }
0x280a   :  { %6545 = vrsqrt.f32 %v4700_v12  ;;  %4690 = vadd.xlane.f32.xlu0 %v4689_v9  ;;  %v4927_v12 = vld [vmem:[%s7741_s20 + $0x68] sm:$0xff]  ;;  %v4929_v9 = vld [vmem:[%s7741_s20 + $0x78] sm:$0xff] }
0x280b   :  { %6547 = vrsqrt.f32 %v4699_v3  ;;  %v6211_v21 = vpack.c.bf16 %v4927_v12, %v4926_v8  ;;  %v4928_v3 = vld [vmem:[%s7741_s20 + $0x70] sm:$0xff] }
0x2814   :  { %v6546_v10 = vpop.eup %6545 }
0x2815   :  { %v6548_v35 = vpop.eup %6547  ;;  %v4708_v18 = vmul.f32 %v6546_v10, %v4676_v53  ;;  %v4834_v53 = vld [vmem:[%s7740_s18 + $0x10] sm:$0xff]  ;;  %v6214_v10 = vpack.c.bf16 %v4929_v9, %v4928_v3 }
0x2816   :  { %v4707_v38 = vmul.f32 %v6548_v35, %v4675_v37 }
0x2817   :  { %v4718_v32 = vmul.f32 %v5188_v11, %v4708_v18  ;;  %v5195_v18 = vld [vmem:[%s7743_s17] ss:$0 sm:$0xff] }
0x2818   :  { %v4717_v24 = vmul.f32 %v5188_v11, %v4707_v38 }
0x2819   :  { %v4728_v45 = vadd.f32 %v5189_v23, %v4718_v32 }
0x281a   :  { %v4727_v59 = vadd.f32 %v5189_v23, %v4717_v24 }
0x281c   :  { %5850 = vmatprep.mubr.msk.f32.mxu0 %vm198_vm1, %v4727_v59 }
0x281d   :  { %5851 = vmatmul.mubr.msk.f32.vlgmr.msra.gmra.mrb[52].mxu0 %vm198_vm1, %v4728_v45 }
0x2896   :  { %v4694_v30 = vpop.xlane.xlu1 %4693 }
0x2897   :  { %v4698_v34 = vmul.f32 0.03125, %v4694_v30  ;;  %v4691_v40 = vpop.xlane.xlu0 %4690 }
0x2898   :  { %v4697_v63 = vmul.f32 0.03125, %v4691_v40 }
0x2899   :  { %v4702_v27 = vadd.f32 1e-05, %v4698_v34 }
0x289a   :  { %v4701_v47 = vadd.f32 1e-05, %v4697_v63 }
0x289b   :  { %6549 = vrsqrt.f32 %v4702_v27 }
0x289c   :  { %6551 = vrsqrt.f32 %v4701_v47 }
0x28a5   :  { %v6550_v15 = vpop.eup %6549 }
0x28a6   :  { %v6552_v19 = vpop.eup %6551  ;;  %v4710_v36 = vmul.f32 %v6550_v15, %v4678_v52  ;;  %v6202_v52 = vpack.c.bf16 %v4921_v2, %v4920_v25 }
0x28a7   :  { %v4709_v41 = vmul.f32 %v6552_v19, %v4677_v4  ;;  %v4922_v4 = vld [vmem:[%s7741_s20 + $0x40] sm:$0xff] }
0x28a8   :  { %v4720_v16 = vmul.f32 %v5188_v11, %v4710_v36  ;;  %v6205_v5 = vpack.c.bf16 %v4923_v49, %v4922_v4 }
0x28a9   :  { %v4719_v56 = vmul.f32 %v5188_v11, %v4709_v41 }
0x28aa   :  { %v4730_v57 = vadd.f32 %v5189_v23, %v4720_v16 }
0x28ab   :  { %v4729_v17 = vadd.f32 %v5189_v23, %v4719_v56 }
0x28ad   :  { %5853 = vmatprep.mubr.msk.f32.mxu0 %vm198_vm1, %v4729_v17 }
0x28ae   :  { %5854 = vmatmul.mubr.msk.f32.gmra.mrb[54].mxu0 %vm198_vm1, %v4730_v57 }
0x28af   :  { %5864 = vmatprep.mubr.msk.f32.mxu0 %vm6568_vm5, %v6569_v60 }
0x28f0   :  { %v5852_v54 = vpop.f32.mrb[52].mxu0 }
0x28f1   :  { %v4837_v55 = vmul.f32 %v5852_v54, %v4833_v22  ;;  %v4813_v33 = vpop.f32.mrb[53].mxu0 }
0x28f2   :  { %v4836_v58 = vmul.f32 %v4832_v51, %v4813_v33 }
0x28f4   :  { %v6187_v62 = vpack.c.bf16 %v4837_v55, %v4836_v58 }
0x28f6   :  { %6188 = vmatpush3.bf16.msra.mxu0 %v6187_v62 }
0x28f7   :  { %6189 = vmatprep.subr.bf16.mxu0 %v6567_v48 }
0x2981   :  { %v5855_v50 = vpop.f32.mrb[54].mxu0 }
0x2982   :  { %v4839_v37 = vmul.f32 %v5855_v50, %v4835_v43  ;;  %v4823_v31 = vpop.f32.mrb[55].mxu0 }
0x2983   :  { %v4838_v61 = vmul.f32 %v4834_v53, %v4823_v31 }
0x2985   :  { %v6190_v42 = vpack.c.bf16 %v4839_v37, %v4838_v61 }
0x2987   :  { %6191 = vmatpush3.bf16.msra.mxu0 %v6190_v42 }
0x2988   :  { %6192 = vmatprep.subr.bf16.mxu0 %v6567_v48 }
0x298a   :  { %5865 = vmatmul.mubr.msk.f32.vlgmr.msra.gmra.mrb[56].mxu0 %vm198_vm1, %v4840_v39 }
0x298b   :  { %6194 = vmatpush3.bf16.msra.mxu0 %v6193_v28  ;;  %5899 = vmatprep.mubr.msk.f32.mxu0 %vm6568_vm5, %v6569_v60 }
0x298c   :  { %6195 = vmatprep.subr.bf16.mxu0 %v6567_v48 }
0x298f   :  { %6197 = vmatpush3.bf16.msra.mxu0 %v6196_v13 }
0x2990   :  { %6198 = vmatprep.subr.bf16.mxu0 %v6567_v48 }
0x2993   :  { %6200 = vmatpush3.bf16.msra.mxu0 %v6199_v1 }
0x2994   :  { %6201 = vmatprep.subr.bf16.mxu0 %v6567_v48 }
0x2997   :  { %6203 = vmatpush3.bf16.msra.mxu0 %v6202_v52 }
0x2998   :  { %6204 = vmatprep.subr.bf16.mxu0 %v6567_v48 }
0x299b   :  { %6206 = vmatpush3.bf16.msra.mxu0 %v6205_v5 }
0x299c   :  { %6207 = vmatprep.subr.bf16.mxu0 %v6567_v48 }
0x299f   :  { %6209 = vmatpush3.bf16.msra.mxu0 %v6208_v7 }
0x29a0   :  { %6210 = vmatprep.subr.bf16.mxu0 %v6567_v48 }
0x29a3   :  { %6212 = vmatpush3.bf16.msra.mxu0 %v6211_v21 }
0x29a4   :  { %6213 = vmatprep.subr.bf16.mxu0 %v6567_v48 }
0x29a7   :  { %6215 = vmatpush3.bf16.msra.mxu0 %v6214_v10 }
0x2a5d   :  { %v4910_v11 = vpop.f32.mrb[56].mxu0 }
0x2a5e   :  { %v5866_v35 = vpop.f32.mrb[57].mxu0  ;;  %5900 = vmatmul.mubr.f32.vlgmr.msra.gmra.mrb[58].mxu0 %v4910_v11 }
0x2b31   :  { %v5003_v38 = vpop.f32.mrb[58].mxu0 }
0x2b32   :  { %v5004_v23 = vadd.f32 %v5195_v18, %v5003_v38  ;;  %v5901_v32 = vpop.f32.mrb[59].mxu0 }
0x2b34   :  { %5008 = vst.msk [vmem:[%s7744_s21] sm:$0x3] %vm5007_vm6, %v5004_v23 }

</bundles_post_ra>
